<compile_context>
chip_gen: v7x
topology: tpu7x:2x2x1
jax: 0.10.0
libtpu: 0.0.40
codegen_flags: <defaults>
</compile_context>

<pallas_src>
import functools

import jax
import jax.numpy as jnp
import numpy as np
from jax.experimental import pallas as pl
from jax.experimental.pallas import tpu as pltpu

EPS = 1e-5
# Explicit scoped-VMEM budget: fits v7x (64 MiB physical) with headroom and is
# well below v5e/v6e's 128 MiB.
VMEM_LIMIT = 48 * 1024 * 1024


def _choose_tile_m(m):
    """Largest row tile (multiple of 128, <=1024) dividing M with >=2 steps."""
    for tm in (1024, 512, 256, 128):
        if m % tm == 0 and m // tm >= 2:
            return tm
    return m


# ----------------------------- Pallas kernels -------------------------------


def _conv1x1_stats_kernel(*refs, apply_bn_relu):
    """[optional folded-BN + ReLU on input] -> 1x1 conv (matmul) -> stats."""
    if apply_bn_relu:
        x_ref, scale_ref, shift_ref, w_ref, y_ref, sum_ref, ssq_ref = refs
        x = jnp.maximum(x_ref[...] * scale_ref[...] + shift_ref[...], 0.0)
    else:
        x_ref, w_ref, y_ref, sum_ref, ssq_ref = refs
        x = x_ref[...]

    # bf16 MXU inputs, f32 accumulation.
    y = jnp.dot(x.astype(jnp.bfloat16), w_ref[...],
                preferred_element_type=jnp.float32)
    y_ref[...] = y

    @pl.when(pl.program_id(0) == 0)
    def _():
        sum_ref[...] = jnp.zeros_like(sum_ref)
        ssq_ref[...] = jnp.zeros_like(ssq_ref)

    sum_ref[...] += jnp.sum(y, axis=0, keepdims=True)
    ssq_ref[...] += jnp.sum(y * y, axis=0, keepdims=True)


def _conv3x3_stats_kernel(y1_ref, scale_ref, shift_ref, w_ref,
                          y2_ref, sum_ref, ssq_ref):
    """bn1+relu on the fly -> 3x3 conv as 9 accumulated matmuls -> bn2 stats."""
    _, hp, wp, cin = y1_ref.shape
    h, w = hp - 2, wp - 2
    cout = w_ref.shape[-1]

    yp = y1_ref[0]                                        # (hp, wp, cin) f32
    act = jnp.maximum(yp * scale_ref[...] + shift_ref[...], 0.0)
    # The 1-px halo was zero-padded *before* the affine transform, so re-zero
    # the border afterwards (matches Conv2d zero padding).
    rows = jax.lax.broadcasted_iota(jnp.int32, (hp, wp, cin), 0)
    cols = jax.lax.broadcasted_iota(jnp.int32, (hp, wp, cin), 1)
    interior = (rows >= 1) & (rows <= h) & (cols >= 1) & (cols <= w)
    act = jnp.where(interior, act, 0.0)                   # stays f32

    acc = None
    for k in range(9):
        dy, dx = k // 3, k % 3
        win = act[dy:dy + h, dx:dx + w, :].reshape(h * w, cin)
        part = jnp.dot(win.astype(jnp.bfloat16), w_ref[k],
                       preferred_element_type=jnp.float32)
        acc = part if acc is None else acc + part

    y2_ref[...] = acc                                     # (h*w, cout) rows

    @pl.when(pl.program_id(0) == 0)
    def _():
        sum_ref[...] = jnp.zeros_like(sum_ref)
        ssq_ref[...] = jnp.zeros_like(ssq_ref)

    sum_ref[...] += jnp.sum(acc, axis=0, keepdims=True)
    ssq_ref[...] += jnp.sum(acc * acc, axis=0, keepdims=True)


def _bn_add_relu_kernel(y_ref, scale_ref, shift_ref, res_ref, o_ref):
    o_ref[...] = jnp.maximum(
        y_ref[...] * scale_ref[...] + shift_ref[...] + res_ref[...], 0.0)


# --------------------------- pallas_call wrappers ----------------------------


def conv1x1_stats(x2d, w_bf16, scale=None, shift=None, *, tile_m):
    m, k = x2d.shape
    c = w_bf16.shape[1]
    apply_bn_relu = scale is not None
    kernel = functools.partial(_conv1x1_stats_kernel,
                               apply_bn_relu=apply_bn_relu)

    in_specs = [pl.BlockSpec((tile_m, k), lambda i: (i, 0))]
    args = [x2d]
    if apply_bn_relu:
        in_specs += [pl.BlockSpec((1, k), lambda i: (0, 0)),
                     pl.BlockSpec((1, k), lambda i: (0, 0))]
        args += [scale, shift]
    in_specs += [pl.BlockSpec((k, c), lambda i: (0, 0))]
    args += [w_bf16]

    cost = pl.CostEstimate(
        flops=2 * m * k * c,
        transcendentals=0,
        bytes_accessed=4 * (m * k + m * c + 2 * c) + 2 * k * c)

    return pl.pallas_call(
        kernel,
        out_shape=(jax.ShapeDtypeStruct((m, c), jnp.float32),
                   jax.ShapeDtypeStruct((1, c), jnp.float32),
                   jax.ShapeDtypeStruct((1, c), jnp.float32)),
        grid=(m // tile_m,),
        in_specs=in_specs,
        out_specs=(pl.BlockSpec((tile_m, c), lambda i: (i, 0)),
                   pl.BlockSpec((1, c), lambda i: (0, 0)),
                   pl.BlockSpec((1, c), lambda i: (0, 0))),
        compiler_params=pltpu.CompilerParams(
            # Resident stats accumulator => reduction-style axis.
            dimension_semantics=("arbitrary",),
            vmem_limit_bytes=VMEM_LIMIT),
        cost_estimate=cost,
    )(*args)


def conv3x3_stats(y1p, scale, shift, w_bf16):
    n, hp, wp, cin = y1p.shape
    h, w = hp - 2, wp - 2
    cout = w_bf16.shape[-1]

    cost = pl.CostEstimate(
        flops=2 * n * h * w * 9 * cin * cout,
        transcendentals=0,
        bytes_accessed=4 * (n * hp * wp * cin + n * h * w * cout + 2 * cout)
        + 2 * 9 * cin * cout)

    return pl.pallas_call(
        _conv3x3_stats_kernel,
        out_shape=(jax.ShapeDtypeStruct((n * h * w, cout), jnp.float32),
                   jax.ShapeDtypeStruct((1, cout), jnp.float32),
                   jax.ShapeDtypeStruct((1, cout), jnp.float32)),
        grid=(n,),
        in_specs=[pl.BlockSpec((1, hp, wp, cin), lambda i: (i, 0, 0, 0)),
                  pl.BlockSpec((1, cin), lambda i: (0, 0)),
                  pl.BlockSpec((1, cin), lambda i: (0, 0)),
                  pl.BlockSpec((9, cin, cout), lambda i: (0, 0, 0))],
        out_specs=(pl.BlockSpec((h * w, cout), lambda i: (i, 0)),
                   pl.BlockSpec((1, cout), lambda i: (0, 0)),
                   pl.BlockSpec((1, cout), lambda i: (0, 0))),
        compiler_params=pltpu.CompilerParams(
            dimension_semantics=("arbitrary",),
            vmem_limit_bytes=VMEM_LIMIT),
        cost_estimate=cost,
    )(y1p, scale, shift, w_bf16)


def bn_add_relu(y2d, scale, shift, res2d, *, tile_m):
    m, c = y2d.shape
    # Note: at real ResNet sizes (planes >= 32) c = 4*planes >= 128, so this
    # output is lane-dense (unmasked vst).
    return pl.pallas_call(
        _bn_add_relu_kernel,
        out_shape=jax.ShapeDtypeStruct((m, c), jnp.float32),
        grid=(m // tile_m,),
        in_specs=[pl.BlockSpec((tile_m, c), lambda i: (i, 0)),
                  pl.BlockSpec((1, c), lambda i: (0, 0)),
                  pl.BlockSpec((1, c), lambda i: (0, 0)),
                  pl.BlockSpec((tile_m, c), lambda i: (i, 0))],
        out_specs=pl.BlockSpec((tile_m, c), lambda i: (i, 0)),
        compiler_params=pltpu.CompilerParams(
            dimension_semantics=("parallel",),   # independent tiles (megacore)
            vmem_limit_bytes=VMEM_LIMIT),
    )(y2d, scale, shift, res2d)


# ----------------------------- Bottleneck forward ----------------------------


def _bn_affine(sum_, ssq, gamma, beta, count):
    """Fold BN (per-batch biased stats, eps) + affine into scale/shift (f32)."""
    mean = sum_ / count
    var = ssq / count - mean * mean
    inv = jax.lax.rsqrt(var + EPS)
    scale = gamma[None, :] * inv
    shift = beta[None, :] - mean * scale
    return scale, shift


def bottleneck_forward(x_nchw, p):
    n, cin, h, w = x_nchw.shape
    planes = p["w1"].shape[0]
    cout = 4 * planes
    assert cin == cout, "downsample=None/stride=1 requires inplanes == planes*4"
    m = n * h * w
    tile_m = _choose_tile_m(m)

    # Single layout change at the block boundary: NCHW -> NHWC, flat (M, C).
    # TODO(synk): in a full network keep activations NHWC across blocks so this
    # transpose happens only once at the model boundary.
    x2d = jnp.transpose(x_nchw, (0, 2, 3, 1)).reshape(m, cin)

    w1m = p["w1"][:, :, 0, 0].T.astype(jnp.bfloat16)                # (Cin, P)
    w2m = jnp.transpose(p["w2"], (2, 3, 1, 0)).reshape(
        9, planes, planes).astype(jnp.bfloat16)                     # (9, P, P)
    w3m = p["w3"][:, :, 0, 0].T.astype(jnp.bfloat16)                # (P, 4P)

    # Stage 1: conv1 (1x1) + bn1 sum/sumsq accumulation.
    y1, s1, q1 = conv1x1_stats(x2d, w1m, tile_m=tile_m)
    sc1, sh1 = _bn_affine(s1, q1, p["g1"], p["b1"], m)

    # Stage 2: bn1+relu applied on the fly, 3x3 conv in-kernel (9 matmuls over
    # shifted windows of the halo-padded block), bn2 stats.
    # TODO(synk): for large feature maps also tile H and fetch halo rows with a
    # manual make_async_copy instead of whole-image blocks.
    y1p = jnp.pad(y1.reshape(n, h, w, planes),
                  ((0, 0), (1, 1), (1, 1), (0, 0)))
    y2, s2, q2 = conv3x3_stats(y1p, sc1, sh1, w2m)
    sc2, sh2 = _bn_affine(s2, q2, p["g2"], p["b2"], m)

    # Stage 3: bn2+relu on the fly, conv3 (1x1), bn3 stats.
    y3, s3, q3 = conv1x1_stats(y2, w3m, sc2, sh2, tile_m=tile_m)
    sc3, sh3 = _bn_affine(s3, q3, p["g3"], p["b3"], m)

    # Stage 4: bn3 + identity residual + relu.
    out2d = bn_add_relu(y3, sc3, sh3, x2d, tile_m=tile_m)

    return jnp.transpose(out2d.reshape(n, h, w, cout), (0, 3, 1, 2))


# ----------------------------- reference -------------------------------------


def ref_forward(x, p):
    """Precision-matched reference: identical module math (lax.conv + BN with
    biased per-batch stats), with conv inputs cast to bf16 and f32 accumulation
    exactly like the kernels feed the MXU."""

    def conv(a, wt, pad):
        return jax.lax.conv_general_dilated(
            a.astype(jnp.bfloat16), wt.astype(jnp.bfloat16), (1, 1),
            [(pad, pad), (pad, pad)],
            dimension_numbers=("NCHW", "OIHW", "NCHW"),
            preferred_element_type=jnp.float32)

    def bn(a, g, b):
        mu = a.mean(axis=(0, 2, 3), keepdims=True)
        var = ((a - mu) ** 2).mean(axis=(0, 2, 3), keepdims=True)
        return (g[None, :, None, None] * (a - mu) * jax.lax.rsqrt(var + EPS)
                + b[None, :, None, None])

    out = jax.nn.relu(bn(conv(x, p["w1"], 0), p["g1"], p["b1"]))
    out = jax.nn.relu(bn(conv(out, p["w2"], 1), p["g2"], p["b2"]))
    out = bn(conv(out, p["w3"], 0), p["g3"], p["b3"]) + x
    return jax.nn.relu(out)


# ----------------------------- main -------------------------------------------

if __name__ == "__main__":
    n, h, w = 2, 16, 16
    planes = 4
    inplanes = planes * 4          # 16; identity residual (downsample=None)

    key = jax.random.PRNGKey(0)
    ks = jax.random.split(key, 10)
    params = {
        "w1": 0.1 * jax.random.normal(ks[0], (planes, inplanes, 1, 1), jnp.float32),
        "w2": 0.1 * jax.random.normal(ks[1], (planes, planes, 3, 3), jnp.float32),
        "w3": 0.1 * jax.random.normal(ks[2], (planes * 4, planes, 1, 1), jnp.float32),
        "g1": 1.0 + 0.1 * jax.random.normal(ks[3], (planes,), jnp.float32),
        "b1": 0.1 * jax.random.normal(ks[4], (planes,), jnp.float32),
        "g2": 1.0 + 0.1 * jax.random.normal(ks[5], (planes,), jnp.float32),
        "b2": 0.1 * jax.random.normal(ks[6], (planes,), jnp.float32),
        "g3": 1.0 + 0.1 * jax.random.normal(ks[7], (planes * 4,), jnp.float32),
        "b3": 0.1 * jax.random.normal(ks[8], (planes * 4,), jnp.float32),
    }
    x = jax.random.normal(ks[9], (n, inplanes, h, w), jnp.float32)

    out = jax.block_until_ready(jax.jit(bottleneck_forward)(x, params))
    ref = jax.block_until_ready(ref_forward(x, params))

    assert out.shape == (n, planes * 4, h, w), out.shape
    # Tolerance reflects bf16 MXU inputs (f32 accumulation): kernel and
    # precision-matched reference agree to ~1e-4 typically; the slack covers
    # rare bf16 rounding-boundary divergence amplified by the BN normalization.
    np.testing.assert_allclose(np.asarray(out), np.asarray(ref),
                               rtol=2e-2, atol=2e-2)
    print("KERNEL_OK")
</pallas_src>

<mosaic_0001>
module attributes {stable_mosaic.version = 11 : i64} {
  func.func @_conv1x1_stats_kernel(%arg0: i32, %arg1: memref<256x16xf32, #tpu.memory_space<vmem>>, %arg2: memref<16x4xbf16, #tpu.memory_space<vmem>>, %arg3: memref<256x4xf32, #tpu.memory_space<vmem>>, %arg4: memref<1x4xf32, #tpu.memory_space<vmem>>, %arg5: memref<1x4xf32, #tpu.memory_space<vmem>>) attributes {dimension_semantics = [#tpu.dimension_semantics<arbitrary>], iteration_bounds = array<i64: 2>, scalar_prefetch = 0 : i64, scratch_operands = 0 : i64, tpu.core_type = #tpu.core_type<tc>, window_params = [{transform_indices = @transform_0, window_bounds = array<i64: 256, 16>}, {pipeline_mode = #tpu.pipeline_mode<synchronous>, transform_indices = @transform_1, window_bounds = array<i64: 16, 4>}, {transform_indices = @transform_2, window_bounds = array<i64: 256, 4>}, {pipeline_mode = #tpu.pipeline_mode<synchronous>, transform_indices = @transform_3, window_bounds = array<i64: 1, 4>}, {pipeline_mode = #tpu.pipeline_mode<synchronous>, transform_indices = @transform_4, window_bounds = array<i64: 1, 4>}]} {
    %c0 = arith.constant 0 : index
    %c0_0 = arith.constant 0 : index
    %0 = vector.load %arg1[%c0, %c0_0] : memref<256x16xf32, #tpu.memory_space<vmem>>, vector<256x16xf32>
    %1 = arith.truncf %0 : vector<256x16xf32> to vector<256x16xbf16>
    %c0_1 = arith.constant 0 : index
    %c0_2 = arith.constant 0 : index
    %2 = vector.load %arg2[%c0_1, %c0_2] : memref<16x4xbf16, #tpu.memory_space<vmem>>, vector<16x4xbf16>
    %cst = arith.constant dense<0.000000e+00> : vector<256x4xf32>
    %3 = tpu.matmul %1, %2, %cst {dimension_numbers = #tpu.dot_dimension_numbers<[1], [0], [0], [1], [0, 0, 1, 1], [], []>} : vector<256x16xbf16>, vector<16x4xbf16>, vector<256x4xf32> -> vector<256x4xf32>
    %c0_3 = arith.constant 0 : index
    %c0_4 = arith.constant 0 : index
    %4 = vector.load %arg3[%c0_3, %c0_4] : memref<256x4xf32, #tpu.memory_space<vmem>>, vector<256x4xf32>
    tpu.vector_store %arg3[%c0_3, %c0_4], %3 {strides = array<i32>} : memref<256x4xf32, #tpu.memory_space<vmem>>, vector<256x4xf32>,
    %c0_i32 = arith.constant 0 : i32
    %5 = arith.cmpi eq, %arg0, %c0_i32 : i32
    %6 = arith.extui %5 : i1 to i32
    %c0_i32_5 = arith.constant 0 : i32
    %7 = arith.cmpi ne, %6, %c0_i32_5 : i32
    scf.if %7 {
      %cst_16 = arith.constant 0.000000e+00 : f32
      %19 = vector.broadcast %cst_16 : f32 to vector<1x4xf32>
      %c0_17 = arith.constant 0 : index
      %c0_18 = arith.constant 0 : index
      %20 = vector.load %arg4[%c0_17, %c0_18] : memref<1x4xf32, #tpu.memory_space<vmem>>, vector<1x4xf32>
      tpu.vector_store %arg4[%c0_17, %c0_18], %19 {strides = array<i32>} : memref<1x4xf32, #tpu.memory_space<vmem>>, vector<1x4xf32>,
      %cst_19 = arith.constant 0.000000e+00 : f32
      %21 = vector.broadcast %cst_19 : f32 to vector<1x4xf32>
      %c0_20 = arith.constant 0 : index
      %c0_21 = arith.constant 0 : index
      %22 = vector.load %arg5[%c0_20, %c0_21] : memref<1x4xf32, #tpu.memory_space<vmem>>, vector<1x4xf32>
      tpu.vector_store %arg5[%c0_20, %c0_21], %21 {strides = array<i32>} : memref<1x4xf32, #tpu.memory_space<vmem>>, vector<1x4xf32>,
    } else {
    }
    %c0_6 = arith.constant 0 : index
    %c0_7 = arith.constant 0 : index
    %8 = vector.load %arg4[%c0_6, %c0_7] : memref<1x4xf32, #tpu.memory_space<vmem>>, vector<1x4xf32>
    %cst_8 = arith.constant dense<0.000000e+00> : vector<4xf32>
    %9 = vector.multi_reduction <add>, %3, %cst_8 [0] : vector<256x4xf32> to vector<4xf32>
    %10 = vector.shape_cast %9 : vector<4xf32> to vector<1x4xf32>
    %11 = arith.addf %8, %10 : vector<1x4xf32>
    %c0_9 = arith.constant 0 : index
    %c0_10 = arith.constant 0 : index
    %12 = vector.load %arg4[%c0_9, %c0_10] : memref<1x4xf32, #tpu.memory_space<vmem>>, vector<1x4xf32>
    tpu.vector_store %arg4[%c0_9, %c0_10], %11 {strides = array<i32>} : memref<1x4xf32, #tpu.memory_space<vmem>>, vector<1x4xf32>,
    %c0_11 = arith.constant 0 : index
    %c0_12 = arith.constant 0 : index
    %13 = vector.load %arg5[%c0_11, %c0_12] : memref<1x4xf32, #tpu.memory_space<vmem>>, vector<1x4xf32>
    %14 = arith.mulf %3, %3 : vector<256x4xf32>
    %cst_13 = arith.constant dense<0.000000e+00> : vector<4xf32>
    %15 = vector.multi_reduction <add>, %14, %cst_13 [0] : vector<256x4xf32> to vector<4xf32>
    %16 = vector.shape_cast %15 : vector<4xf32> to vector<1x4xf32>
    %17 = arith.addf %13, %16 : vector<1x4xf32>
    %c0_14 = arith.constant 0 : index
    %c0_15 = arith.constant 0 : index
    %18 = vector.load %arg5[%c0_14, %c0_15] : memref<1x4xf32, #tpu.memory_space<vmem>>, vector<1x4xf32>
    tpu.vector_store %arg5[%c0_14, %c0_15], %17 {strides = array<i32>} : memref<1x4xf32, #tpu.memory_space<vmem>>, vector<1x4xf32>,
    return
  }
  func.func @transform_0(%arg0: i32) -> (i32, i32) {
    %c0_i32 = arith.constant 0 : i32
    %c0_i32_0 = arith.constant 0 : i32
    return %arg0, %c0_i32 : i32, i32
  }
  func.func @transform_1(%arg0: i32) -> (i32, i32) {
    %c0_i32 = arith.constant 0 : i32
    %c0_i32_0 = arith.constant 0 : i32
    %c0_i32_1 = arith.constant 0 : i32
    return %c0_i32, %c0_i32_0 : i32, i32
  }
  func.func @transform_2(%arg0: i32) -> (i32, i32) {
    %c0_i32 = arith.constant 0 : i32
    %c0_i32_0 = arith.constant 0 : i32
    return %arg0, %c0_i32 : i32, i32
  }
  func.func @transform_3(%arg0: i32) -> (i32, i32) {
    %c0_i32 = arith.constant 0 : i32
    %c0_i32_0 = arith.constant 0 : i32
    %c0_i32_1 = arith.constant 0 : i32
    return %c0_i32, %c0_i32_0 : i32, i32
  }
  func.func @transform_4(%arg0: i32) -> (i32, i32) {
    %c0_i32 = arith.constant 0 : i32
    %c0_i32_0 = arith.constant 0 : i32
    %c0_i32_1 = arith.constant 0 : i32
    return %c0_i32, %c0_i32_0 : i32, i32
  }
}

module attributes {stable_mosaic.version = 11 : i64} {
  func.func @_conv3x3_stats_kernel(%arg0: i32, %arg1: memref<1x18x18x4xf32, #tpu.memory_space<vmem>>, %arg2: memref<1x4xf32, #tpu.memory_space<vmem>>, %arg3: memref<1x4xf32, #tpu.memory_space<vmem>>, %arg4: memref<9x4x4xbf16, #tpu.memory_space<vmem>>, %arg5: memref<256x4xf32, #tpu.memory_space<vmem>>, %arg6: memref<1x4xf32, #tpu.memory_space<vmem>>, %arg7: memref<1x4xf32, #tpu.memory_space<vmem>>) attributes {dimension_semantics = [#tpu.dimension_semantics<arbitrary>], iteration_bounds = array<i64: 2>, scalar_prefetch = 0 : i64, scratch_operands = 0 : i64, tpu.core_type = #tpu.core_type<tc>, window_params = [{transform_indices = @transform_0, window_bounds = array<i64: 1, 18, 18, 4>}, {pipeline_mode = #tpu.pipeline_mode<synchronous>, transform_indices = @transform_1, window_bounds = array<i64: 1, 4>}, {pipeline_mode = #tpu.pipeline_mode<synchronous>, transform_indices = @transform_2, window_bounds = array<i64: 1, 4>}, {pipeline_mode = #tpu.pipeline_mode<synchronous>, transform_indices = @transform_3, window_bounds = array<i64: 9, 4, 4>}, {transform_indices = @transform_4, window_bounds = array<i64: 256, 4>}, {pipeline_mode = #tpu.pipeline_mode<synchronous>, transform_indices = @transform_5, window_bounds = array<i64: 1, 4>}, {pipeline_mode = #tpu.pipeline_mode<synchronous>, transform_indices = @transform_6, window_bounds = array<i64: 1, 4>}]} {
    %c0 = arith.constant 0 : index
    %c0_0 = arith.constant 0 : index
    %c0_1 = arith.constant 0 : index
    %c0_2 = arith.constant 0 : index
    %0 = vector.load %arg1[%c0, %c0_0, %c0_1, %c0_2] : memref<1x18x18x4xf32, #tpu.memory_space<vmem>>, vector<1x18x18x4xf32>
    %1 = vector.shape_cast %0 : vector<1x18x18x4xf32> to vector<18x18x4xf32>
    %c0_3 = arith.constant 0 : index
    %c0_4 = arith.constant 0 : index
    %2 = vector.load %arg2[%c0_3, %c0_4] : memref<1x4xf32, #tpu.memory_space<vmem>>, vector<1x4xf32>
    %3 = vector.shape_cast %2 : vector<1x4xf32> to vector<1x1x4xf32>
    %4 = vector.broadcast %3 : vector<1x1x4xf32> to vector<18x18x4xf32>
    %5 = arith.mulf %1, %4 : vector<18x18x4xf32>
    %c0_5 = arith.constant 0 : index
    %c0_6 = arith.constant 0 : index
    %6 = vector.load %arg3[%c0_5, %c0_6] : memref<1x4xf32, #tpu.memory_space<vmem>>, vector<1x4xf32>
    %7 = vector.shape_cast %6 : vector<1x4xf32> to vector<1x1x4xf32>
    %8 = vector.broadcast %7 : vector<1x1x4xf32> to vector<18x18x4xf32>
    %9 = arith.addf %5, %8 : vector<18x18x4xf32>
    %cst = arith.constant 0.000000e+00 : f32
    %10 = vector.broadcast %cst : f32 to vector<18x18x4xf32>
    %11 = arith.maximumf %9, %10 : vector<18x18x4xf32>
    %12 = tpu.iota {dimensions = array<i32: 0>} : vector<18x18x4xi32>
    %13 = tpu.iota {dimensions = array<i32: 1>} : vector<18x18x4xi32>
    %c1_i32 = arith.constant 1 : i32
    %14 = vector.broadcast %c1_i32 : i32 to vector<18x18x4xi32>
    %15 = arith.cmpi sge, %12, %14 : vector<18x18x4xi32>
    %c16_i32 = arith.constant 16 : i32
    %16 = vector.broadcast %c16_i32 : i32 to vector<18x18x4xi32>
    %17 = arith.cmpi sle, %12, %16 : vector<18x18x4xi32>
    %18 = arith.andi %15, %17 : vector<18x18x4xi1>
    %c1_i32_7 = arith.constant 1 : i32
    %19 = vector.broadcast %c1_i32_7 : i32 to vector<18x18x4xi32>
    %20 = arith.cmpi sge, %13, %19 : vector<18x18x4xi32>
    %21 = arith.andi %18, %20 : vector<18x18x4xi1>
    %c16_i32_8 = arith.constant 16 : i32
    %22 = vector.broadcast %c16_i32_8 : i32 to vector<18x18x4xi32>
    %23 = arith.cmpi sle, %13, %22 : vector<18x18x4xi32>
    %24 = arith.andi %21, %23 : vector<18x18x4xi1>
    %cst_9 = arith.constant 0.000000e+00 : f32
    %25 = vector.broadcast %cst_9 : f32 to vector<18x18x4xf32>
    %26 = arith.select %24, %11, %25 : vector<18x18x4xi1>, vector<18x18x4xf32>
    %27 = vector.extract_strided_slice %26 {offsets = [0, 0, 0], sizes = [16, 16, 4], strides = [1, 1, 1]} : vector<18x18x4xf32> to vector<16x16x4xf32>
    %28 = vector.shape_cast %27 : vector<16x16x4xf32> to vector<256x4xf32>
    %29 = arith.truncf %28 : vector<256x4xf32> to vector<256x4xbf16>
    %c0_10 = arith.constant 0 : index
    %c0_11 = arith.constant 0 : index
    %c0_12 = arith.constant 0 : index
    %30 = vector.load %arg4[%c0_10, %c0_11, %c0_12] : memref<9x4x4xbf16, #tpu.memory_space<vmem>>, vector<1x4x4xbf16>
    %31 = vector.shape_cast %30 : vector<1x4x4xbf16> to vector<4x4xbf16>
    %cst_13 = arith.constant dense<0.000000e+00> : vector<256x4xf32>
    %32 = tpu.matmul %29, %31, %cst_13 {dimension_numbers = #tpu.dot_dimension_numbers<[1], [0], [0], [1], [0, 0, 1, 1], [], []>} : vector<256x4xbf16>, vector<4x4xbf16>, vector<256x4xf32> -> vector<256x4xf32>
    %33 = vector.extract_strided_slice %26 {offsets = [0, 1, 0], sizes = [16, 16, 4], strides = [1, 1, 1]} : vector<18x18x4xf32> to vector<16x16x4xf32>
    %34 = vector.shape_cast %33 : vector<16x16x4xf32> to vector<256x4xf32>
    %35 = arith.truncf %34 : vector<256x4xf32> to vector<256x4xbf16>
    %c1 = arith.constant 1 : index
    %c0_14 = arith.constant 0 : index
    %c0_15 = arith.constant 0 : index
    %36 = vector.load %arg4[%c1, %c0_14, %c0_15] : memref<9x4x4xbf16, #tpu.memory_space<vmem>>, vector<1x4x4xbf16>
    %37 = vector.shape_cast %36 : vector<1x4x4xbf16> to vector<4x4xbf16>
    %cst_16 = arith.constant dense<0.000000e+00> : vector<256x4xf32>
    %38 = tpu.matmul %35, %37, %cst_16 {dimension_numbers = #tpu.dot_dimension_numbers<[1], [0], [0], [1], [0, 0, 1, 1], [], []>} : vector<256x4xbf16>, vector<4x4xbf16>, vector<256x4xf32> -> vector<256x4xf32>
    %39 = arith.addf %32, %38 : vector<256x4xf32>
    %40 = vector.extract_strided_slice %26 {offsets = [0, 2, 0], sizes = [16, 16, 4], strides = [1, 1, 1]} : vector<18x18x4xf32> to vector<16x16x4xf32>
    %41 = vector.shape_cast %40 : vector<16x16x4xf32> to vector<256x4xf32>
    %42 = arith.truncf %41 : vector<256x4xf32> to vector<256x4xbf16>
    %c2 = arith.constant 2 : index
    %c0_17 = arith.constant 0 : index
    %c0_18 = arith.constant 0 : index
    %43 = vector.load %arg4[%c2, %c0_17, %c0_18] : memref<9x4x4xbf16, #tpu.memory_space<vmem>>, vector<1x4x4xbf16>
    %44 = vector.shape_cast %43 : vector<1x4x4xbf16> to vector<4x4xbf16>
    %cst_19 = arith.constant dense<0.000000e+00> : vector<256x4xf32>
    %45 = tpu.matmul %42, %44, %cst_19 {dimension_numbers = #tpu.dot_dimension_numbers<[1], [0], [0], [1], [0, 0, 1, 1], [], []>} : vector<256x4xbf16>, vector<4x4xbf16>, vector<256x4xf32> -> vector<256x4xf32>
    %46 = arith.addf %39, %45 : vector<256x4xf32>
    %47 = vector.extract_strided_slice %26 {offsets = [1, 0, 0], sizes = [16, 16, 4], strides = [1, 1, 1]} : vector<18x18x4xf32> to vector<16x16x4xf32>
    %48 = vector.shape_cast %47 : vector<16x16x4xf32> to vector<256x4xf32>
    %49 = arith.truncf %48 : vector<256x4xf32> to vector<256x4xbf16>
    %c3 = arith.constant 3 : index
    %c0_20 = arith.constant 0 : index
    %c0_21 = arith.constant 0 : index
    %50 = vector.load %arg4[%c3, %c0_20, %c0_21] : memref<9x4x4xbf16, #tpu.memory_space<vmem>>, vector<1x4x4xbf16>
    %51 = vector.shape_cast %50 : vector<1x4x4xbf16> to vector<4x4xbf16>
    %cst_22 = arith.constant dense<0.000000e+00> : vector<256x4xf32>
    %52 = tpu.matmul %49, %51, %cst_22 {dimension_numbers = #tpu.dot_dimension_numbers<[1], [0], [0], [1], [0, 0, 1, 1], [], []>} : vector<256x4xbf16>, vector<4x4xbf16>, vector<256x4xf32> -> vector<256x4xf32>
    %53 = arith.addf %46, %52 : vector<256x4xf32>
    %54 = vector.extract_strided_slice %26 {offsets = [1, 1, 0], sizes = [16, 16, 4], strides = [1, 1, 1]} : vector<18x18x4xf32> to vector<16x16x4xf32>
    %55 = vector.shape_cast %54 : vector<16x16x4xf32> to vector<256x4xf32>
    %56 = arith.truncf %55 : vector<256x4xf32> to vector<256x4xbf16>
    %c4 = arith.constant 4 : index
    %c0_23 = arith.constant 0 : index
    %c0_24 = arith.constant 0 : index
    %57 = vector.load %arg4[%c4, %c0_23, %c0_24] : memref<9x4x4xbf16, #tpu.memory_space<vmem>>, vector<1x4x4xbf16>
    %58 = vector.shape_cast %57 : vector<1x4x4xbf16> to vector<4x4xbf16>
    %cst_25 = arith.constant dense<0.000000e+00> : vector<256x4xf32>
    %59 = tpu.matmul %56, %58, %cst_25 {dimension_numbers = #tpu.dot_dimension_numbers<[1], [0], [0], [1], [0, 0, 1, 1], [], []>} : vector<256x4xbf16>, vector<4x4xbf16>, vector<256x4xf32> -> vector<256x4xf32>
    %60 = arith.addf %53, %59 : vector<256x4xf32>
    %61 = vector.extract_strided_slice %26 {offsets = [1, 2, 0], sizes = [16, 16, 4], strides = [1, 1, 1]} : vector<18x18x4xf32> to vector<16x16x4xf32>
    %62 = vector.shape_cast %61 : vector<16x16x4xf32> to vector<256x4xf32>
    %63 = arith.truncf %62 : vector<256x4xf32> to vector<256x4xbf16>
    %c5 = arith.constant 5 : index
    %c0_26 = arith.constant 0 : index
    %c0_27 = arith.constant 0 : index
    %64 = vector.load %arg4[%c5, %c0_26, %c0_27] : memref<9x4x4xbf16, #tpu.memory_space<vmem>>, vector<1x4x4xbf16>
    %65 = vector.shape_cast %64 : vector<1x4x4xbf16> to vector<4x4xbf16>
    %cst_28 = arith.constant dense<0.000000e+00> : vector<256x4xf32>
    %66 = tpu.matmul %63, %65, %cst_28 {dimension_numbers = #tpu.dot_dimension_numbers<[1], [0], [0], [1], [0, 0, 1, 1], [], []>} : vector<256x4xbf16>, vector<4x4xbf16>, vector<256x4xf32> -> vector<256x4xf32>
    %67 = arith.addf %60, %66 : vector<256x4xf32>
    %68 = vector.extract_strided_slice %26 {offsets = [2, 0, 0], sizes = [16, 16, 4], strides = [1, 1, 1]} : vector<18x18x4xf32> to vector<16x16x4xf32>
    %69 = vector.shape_cast %68 : vector<16x16x4xf32> to vector<256x4xf32>
    %70 = arith.truncf %69 : vector<256x4xf32> to vector<256x4xbf16>
    %c6 = arith.constant 6 : index
    %c0_29 = arith.constant 0 : index
    %c0_30 = arith.constant 0 : index
    %71 = vector.load %arg4[%c6, %c0_29, %c0_30] : memref<9x4x4xbf16, #tpu.memory_space<vmem>>, vector<1x4x4xbf16>
    %72 = vector.shape_cast %71 : vector<1x4x4xbf16> to vector<4x4xbf16>
    %cst_31 = arith.constant dense<0.000000e+00> : vector<256x4xf32>
    %73 = tpu.matmul %70, %72, %cst_31 {dimension_numbers = #tpu.dot_dimension_numbers<[1], [0], [0], [1], [0, 0, 1, 1], [], []>} : vector<256x4xbf16>, vector<4x4xbf16>, vector<256x4xf32> -> vector<256x4xf32>
    %74 = arith.addf %67, %73 : vector<256x4xf32>
    %75 = vector.extract_strided_slice %26 {offsets = [2, 1, 0], sizes = [16, 16, 4], strides = [1, 1, 1]} : vector<18x18x4xf32> to vector<16x16x4xf32>
    %76 = vector.shape_cast %75 : vector<16x16x4xf32> to vector<256x4xf32>
    %77 = arith.truncf %76 : vector<256x4xf32> to vector<256x4xbf16>
    %c7 = arith.constant 7 : index
    %c0_32 = arith.constant 0 : index
    %c0_33 = arith.constant 0 : index
    %78 = vector.load %arg4[%c7, %c0_32, %c0_33] : memref<9x4x4xbf16, #tpu.memory_space<vmem>>, vector<1x4x4xbf16>
    %79 = vector.shape_cast %78 : vector<1x4x4xbf16> to vector<4x4xbf16>
    %cst_34 = arith.constant dense<0.000000e+00> : vector<256x4xf32>
    %80 = tpu.matmul %77, %79, %cst_34 {dimension_numbers = #tpu.dot_dimension_numbers<[1], [0], [0], [1], [0, 0, 1, 1], [], []>} : vector<256x4xbf16>, vector<4x4xbf16>, vector<256x4xf32> -> vector<256x4xf32>
    %81 = arith.addf %74, %80 : vector<256x4xf32>
    %82 = vector.extract_strided_slice %26 {offsets = [2, 2, 0], sizes = [16, 16, 4], strides = [1, 1, 1]} : vector<18x18x4xf32> to vector<16x16x4xf32>
    %83 = vector.shape_cast %82 : vector<16x16x4xf32> to vector<256x4xf32>
    %84 = arith.truncf %83 : vector<256x4xf32> to vector<256x4xbf16>
    %c8 = arith.constant 8 : index
    %c0_35 = arith.constant 0 : index
    %c0_36 = arith.constant 0 : index
    %85 = vector.load %arg4[%c8, %c0_35, %c0_36] : memref<9x4x4xbf16, #tpu.memory_space<vmem>>, vector<1x4x4xbf16>
    %86 = vector.shape_cast %85 : vector<1x4x4xbf16> to vector<4x4xbf16>
    %cst_37 = arith.constant dense<0.000000e+00> : vector<256x4xf32>
    %87 = tpu.matmul %84, %86, %cst_37 {dimension_numbers = #tpu.dot_dimension_numbers<[1], [0], [0], [1], [0, 0, 1, 1], [], []>} : vector<256x4xbf16>, vector<4x4xbf16>, vector<256x4xf32> -> vector<256x4xf32>
    %88 = arith.addf %81, %87 : vector<256x4xf32>
    %c0_38 = arith.constant 0 : index
    %c0_39 = arith.constant 0 : index
    %89 = vector.load %arg5[%c0_38, %c0_39] : memref<256x4xf32, #tpu.memory_space<vmem>>, vector<256x4xf32>
    tpu.vector_store %arg5[%c0_38, %c0_39], %88 {strides = array<i32>} : memref<256x4xf32, #tpu.memory_space<vmem>>, vector<256x4xf32>,
    %c0_i32 = arith.constant 0 : i32
    %90 = arith.cmpi eq, %arg0, %c0_i32 : i32
    %91 = arith.extui %90 : i1 to i32
    %c0_i32_40 = arith.constant 0 : i32
    %92 = arith.cmpi ne, %91, %c0_i32_40 : i32
    scf.if %92 {
      %cst_51 = arith.constant 0.000000e+00 : f32
      %104 = vector.broadcast %cst_51 : f32 to vector<1x4xf32>
      %c0_52 = arith.constant 0 : index
      %c0_53 = arith.constant 0 : index
      %105 = vector.load %arg6[%c0_52, %c0_53] : memref<1x4xf32, #tpu.memory_space<vmem>>, vector<1x4xf32>
      tpu.vector_store %arg6[%c0_52, %c0_53], %104 {strides = array<i32>} : memref<1x4xf32, #tpu.memory_space<vmem>>, vector<1x4xf32>,
      %cst_54 = arith.constant 0.000000e+00 : f32
      %106 = vector.broadcast %cst_54 : f32 to vector<1x4xf32>
      %c0_55 = arith.constant 0 : index
      %c0_56 = arith.constant 0 : index
      %107 = vector.load %arg7[%c0_55, %c0_56] : memref<1x4xf32, #tpu.memory_space<vmem>>, vector<1x4xf32>
      tpu.vector_store %arg7[%c0_55, %c0_56], %106 {strides = array<i32>} : memref<1x4xf32, #tpu.memory_space<vmem>>, vector<1x4xf32>,
    } else {
    }
    %c0_41 = arith.constant 0 : index
    %c0_42 = arith.constant 0 : index
    %93 = vector.load %arg6[%c0_41, %c0_42] : memref<1x4xf32, #tpu.memory_space<vmem>>, vector<1x4xf32>
    %cst_43 = arith.constant dense<0.000000e+00> : vector<4xf32>
    %94 = vector.multi_reduction <add>, %88, %cst_43 [0] : vector<256x4xf32> to vector<4xf32>
    %95 = vector.shape_cast %94 : vector<4xf32> to vector<1x4xf32>
    %96 = arith.addf %93, %95 : vector<1x4xf32>
    %c0_44 = arith.constant 0 : index
    %c0_45 = arith.constant 0 : index
    %97 = vector.load %arg6[%c0_44, %c0_45] : memref<1x4xf32, #tpu.memory_space<vmem>>, vector<1x4xf32>
    tpu.vector_store %arg6[%c0_44, %c0_45], %96 {strides = array<i32>} : memref<1x4xf32, #tpu.memory_space<vmem>>, vector<1x4xf32>,
    %c0_46 = arith.constant 0 : index
    %c0_47 = arith.constant 0 : index
    %98 = vector.load %arg7[%c0_46, %c0_47] : memref<1x4xf32, #tpu.memory_space<vmem>>, vector<1x4xf32>
    %99 = arith.mulf %88, %88 : vector<256x4xf32>
    %cst_48 = arith.constant dense<0.000000e+00> : vector<4xf32>
    %100 = vector.multi_reduction <add>, %99, %cst_48 [0] : vector<256x4xf32> to vector<4xf32>
    %101 = vector.shape_cast %100 : vector<4xf32> to vector<1x4xf32>
    %102 = arith.addf %98, %101 : vector<1x4xf32>
    %c0_49 = arith.constant 0 : index
    %c0_50 = arith.constant 0 : index
    %103 = vector.load %arg7[%c0_49, %c0_50] : memref<1x4xf32, #tpu.memory_space<vmem>>, vector<1x4xf32>
    tpu.vector_store %arg7[%c0_49, %c0_50], %102 {strides = array<i32>} : memref<1x4xf32, #tpu.memory_space<vmem>>, vector<1x4xf32>,
    return
  }
  func.func @transform_0(%arg0: i32) -> (i32, i32, i32, i32) {
    %c0_i32 = arith.constant 0 : i32
    %c0_i32_0 = arith.constant 0 : i32
    %c0_i32_1 = arith.constant 0 : i32
    %c0_i32_2 = arith.constant 0 : i32
    return %arg0, %c0_i32, %c0_i32_0, %c0_i32_1 : i32, i32, i32, i32
  }
  func.func @transform_1(%arg0: i32) -> (i32, i32) {
    %c0_i32 = arith.constant 0 : i32
    %c0_i32_0 = arith.constant 0 : i32
    %c0_i32_1 = arith.constant 0 : i32
    return %c0_i32, %c0_i32_0 : i32, i32
  }
  func.func @transform_2(%arg0: i32) -> (i32, i32) {
    %c0_i32 = arith.constant 0 : i32
    %c0_i32_0 = arith.constant 0 : i32
    %c0_i32_1 = arith.constant 0 : i32
    return %c0_i32, %c0_i32_0 : i32, i32
  }
  func.func @transform_3(%arg0: i32) -> (i32, i32, i32) {
    %c0_i32 = arith.constant 0 : i32
    %c0_i32_0 = arith.constant 0 : i32
    %c0_i32_1 = arith.constant 0 : i32
    %c0_i32_2 = arith.constant 0 : i32
    return %c0_i32, %c0_i32_0, %c0_i32_1 : i32, i32, i32
  }
  func.func @transform_4(%arg0: i32) -> (i32, i32) {
    %c0_i32 = arith.constant 0 : i32
    %c0_i32_0 = arith.constant 0 : i32
    return %arg0, %c0_i32 : i32, i32
  }
  func.func @transform_5(%arg0: i32) -> (i32, i32) {
    %c0_i32 = arith.constant 0 : i32
    %c0_i32_0 = arith.constant 0 : i32
    %c0_i32_1 = arith.constant 0 : i32
    return %c0_i32, %c0_i32_0 : i32, i32
  }
  func.func @transform_6(%arg0: i32) -> (i32, i32) {
    %c0_i32 = arith.constant 0 : i32
    %c0_i32_0 = arith.constant 0 : i32
    %c0_i32_1 = arith.constant 0 : i32
    return %c0_i32, %c0_i32_0 : i32, i32
  }
}

module attributes {stable_mosaic.version = 11 : i64} {
  func.func @_conv1x1_stats_kernel(%arg0: i32, %arg1: memref<256x4xf32, #tpu.memory_space<vmem>>, %arg2: memref<1x4xf32, #tpu.memory_space<vmem>>, %arg3: memref<1x4xf32, #tpu.memory_space<vmem>>, %arg4: memref<4x16xbf16, #tpu.memory_space<vmem>>, %arg5: memref<256x16xf32, #tpu.memory_space<vmem>>, %arg6: memref<1x16xf32, #tpu.memory_space<vmem>>, %arg7: memref<1x16xf32, #tpu.memory_space<vmem>>) attributes {dimension_semantics = [#tpu.dimension_semantics<arbitrary>], iteration_bounds = array<i64: 2>, scalar_prefetch = 0 : i64, scratch_operands = 0 : i64, tpu.core_type = #tpu.core_type<tc>, window_params = [{transform_indices = @transform_0, window_bounds = array<i64: 256, 4>}, {pipeline_mode = #tpu.pipeline_mode<synchronous>, transform_indices = @transform_1, window_bounds = array<i64: 1, 4>}, {pipeline_mode = #tpu.pipeline_mode<synchronous>, transform_indices = @transform_2, window_bounds = array<i64: 1, 4>}, {pipeline_mode = #tpu.pipeline_mode<synchronous>, transform_indices = @transform_3, window_bounds = array<i64: 4, 16>}, {transform_indices = @transform_4, window_bounds = array<i64: 256, 16>}, {pipeline_mode = #tpu.pipeline_mode<synchronous>, transform_indices = @transform_5, window_bounds = array<i64: 1, 16>}, {pipeline_mode = #tpu.pipeline_mode<synchronous>, transform_indices = @transform_6, window_bounds = array<i64: 1, 16>}]} {
    %c0 = arith.constant 0 : index
    %c0_0 = arith.constant 0 : index
    %0 = vector.load %arg1[%c0, %c0_0] : memref<256x4xf32, #tpu.memory_space<vmem>>, vector<256x4xf32>
    %c0_1 = arith.constant 0 : index
    %c0_2 = arith.constant 0 : index
    %1 = vector.load %arg2[%c0_1, %c0_2] : memref<1x4xf32, #tpu.memory_space<vmem>>, vector<1x4xf32>
    %2 = vector.broadcast %1 : vector<1x4xf32> to vector<256x4xf32>
    %3 = arith.mulf %0, %2 : vector<256x4xf32>
    %c0_3 = arith.constant 0 : index
    %c0_4 = arith.constant 0 : index
    %4 = vector.load %arg3[%c0_3, %c0_4] : memref<1x4xf32, #tpu.memory_space<vmem>>, vector<1x4xf32>
    %5 = vector.broadcast %4 : vector<1x4xf32> to vector<256x4xf32>
    %6 = arith.addf %3, %5 : vector<256x4xf32>
    %cst = arith.constant 0.000000e+00 : f32
    %7 = vector.broadcast %cst : f32 to vector<256x4xf32>
    %8 = arith.maximumf %6, %7 : vector<256x4xf32>
    %9 = arith.truncf %8 : vector<256x4xf32> to vector<256x4xbf16>
    %c0_5 = arith.constant 0 : index
    %c0_6 = arith.constant 0 : index
    %10 = vector.load %arg4[%c0_5, %c0_6] : memref<4x16xbf16, #tpu.memory_space<vmem>>, vector<4x16xbf16>
    %cst_7 = arith.constant dense<0.000000e+00> : vector<256x16xf32>
    %11 = tpu.matmul %9, %10, %cst_7 {dimension_numbers = #tpu.dot_dimension_numbers<[1], [0], [0], [1], [0, 0, 1, 1], [], []>} : vector<256x4xbf16>, vector<4x16xbf16>, vector<256x16xf32> -> vector<256x16xf32>
    %c0_8 = arith.constant 0 : index
    %c0_9 = arith.constant 0 : index
    %12 = vector.load %arg5[%c0_8, %c0_9] : memref<256x16xf32, #tpu.memory_space<vmem>>, vector<256x16xf32>
    tpu.vector_store %arg5[%c0_8, %c0_9], %11 {strides = array<i32>} : memref<256x16xf32, #tpu.memory_space<vmem>>, vector<256x16xf32>,
    %c0_i32 = arith.constant 0 : i32
    %13 = arith.cmpi eq, %arg0, %c0_i32 : i32
    %14 = arith.extui %13 : i1 to i32
    %c0_i32_10 = arith.constant 0 : i32
    %15 = arith.cmpi ne, %14, %c0_i32_10 : i32
    scf.if %15 {
      %cst_21 = arith.constant 0.000000e+00 : f32
      %27 = vector.broadcast %cst_21 : f32 to vector<1x16xf32>
      %c0_22 = arith.constant 0 : index
      %c0_23 = arith.constant 0 : index
      %28 = vector.load %arg6[%c0_22, %c0_23] : memref<1x16xf32, #tpu.memory_space<vmem>>, vector<1x16xf32>
      tpu.vector_store %arg6[%c0_22, %c0_23], %27 {strides = array<i32>} : memref<1x16xf32, #tpu.memory_space<vmem>>, vector<1x16xf32>,
      %cst_24 = arith.constant 0.000000e+00 : f32
      %29 = vector.broadcast %cst_24 : f32 to vector<1x16xf32>
      %c0_25 = arith.constant 0 : index
      %c0_26 = arith.constant 0 : index
      %30 = vector.load %arg7[%c0_25, %c0_26] : memref<1x16xf32, #tpu.memory_space<vmem>>, vector<1x16xf32>
      tpu.vector_store %arg7[%c0_25, %c0_26], %29 {strides = array<i32>} : memref<1x16xf32, #tpu.memory_space<vmem>>, vector<1x16xf32>,
    } else {
    }
    %c0_11 = arith.constant 0 : index
    %c0_12 = arith.constant 0 : index
    %16 = vector.load %arg6[%c0_11, %c0_12] : memref<1x16xf32, #tpu.memory_space<vmem>>, vector<1x16xf32>
    %cst_13 = arith.constant dense<0.000000e+00> : vector<16xf32>
    %17 = vector.multi_reduction <add>, %11, %cst_13 [0] : vector<256x16xf32> to vector<16xf32>
    %18 = vector.shape_cast %17 : vector<16xf32> to vector<1x16xf32>
    %19 = arith.addf %16, %18 : vector<1x16xf32>
    %c0_14 = arith.constant 0 : index
    %c0_15 = arith.constant 0 : index
    %20 = vector.load %arg6[%c0_14, %c0_15] : memref<1x16xf32, #tpu.memory_space<vmem>>, vector<1x16xf32>
    tpu.vector_store %arg6[%c0_14, %c0_15], %19 {strides = array<i32>} : memref<1x16xf32, #tpu.memory_space<vmem>>, vector<1x16xf32>,
    %c0_16 = arith.constant 0 : index
    %c0_17 = arith.constant 0 : index
    %21 = vector.load %arg7[%c0_16, %c0_17] : memref<1x16xf32, #tpu.memory_space<vmem>>, vector<1x16xf32>
    %22 = arith.mulf %11, %11 : vector<256x16xf32>
    %cst_18 = arith.constant dense<0.000000e+00> : vector<16xf32>
    %23 = vector.multi_reduction <add>, %22, %cst_18 [0] : vector<256x16xf32> to vector<16xf32>
    %24 = vector.shape_cast %23 : vector<16xf32> to vector<1x16xf32>
    %25 = arith.addf %21, %24 : vector<1x16xf32>
    %c0_19 = arith.constant 0 : index
    %c0_20 = arith.constant 0 : index
    %26 = vector.load %arg7[%c0_19, %c0_20] : memref<1x16xf32, #tpu.memory_space<vmem>>, vector<1x16xf32>
    tpu.vector_store %arg7[%c0_19, %c0_20], %25 {strides = array<i32>} : memref<1x16xf32, #tpu.memory_space<vmem>>, vector<1x16xf32>,
    return
  }
  func.func @transform_0(%arg0: i32) -> (i32, i32) {
    %c0_i32 = arith.constant 0 : i32
    %c0_i32_0 = arith.constant 0 : i32
    return %arg0, %c0_i32 : i32, i32
  }
  func.func @transform_1(%arg0: i32) -> (i32, i32) {
    %c0_i32 = arith.constant 0 : i32
    %c0_i32_0 = arith.constant 0 : i32
    %c0_i32_1 = arith.constant 0 : i32
    return %c0_i32, %c0_i32_0 : i32, i32
  }
  func.func @transform_2(%arg0: i32) -> (i32, i32) {
    %c0_i32 = arith.constant 0 : i32
    %c0_i32_0 = arith.constant 0 : i32
    %c0_i32_1 = arith.constant 0 : i32
    return %c0_i32, %c0_i32_0 : i32, i32
  }
  func.func @transform_3(%arg0: i32) -> (i32, i32) {
    %c0_i32 = arith.constant 0 : i32
    %c0_i32_0 = arith.constant 0 : i32
    %c0_i32_1 = arith.constant 0 : i32
    return %c0_i32, %c0_i32_0 : i32, i32
  }
  func.func @transform_4(%arg0: i32) -> (i32, i32) {
    %c0_i32 = arith.constant 0 : i32
    %c0_i32_0 = arith.constant 0 : i32
    return %arg0, %c0_i32 : i32, i32
  }
  func.func @transform_5(%arg0: i32) -> (i32, i32) {
    %c0_i32 = arith.constant 0 : i32
    %c0_i32_0 = arith.constant 0 : i32
    %c0_i32_1 = arith.constant 0 : i32
    return %c0_i32, %c0_i32_0 : i32, i32
  }
  func.func @transform_6(%arg0: i32) -> (i32, i32) {
    %c0_i32 = arith.constant 0 : i32
    %c0_i32_0 = arith.constant 0 : i32
    %c0_i32_1 = arith.constant 0 : i32
    return %c0_i32, %c0_i32_0 : i32, i32
  }
}

module attributes {stable_mosaic.version = 11 : i64} {
  func.func @_bn_add_relu_kernel(%arg0: i32, %arg1: memref<256x16xf32, #tpu.memory_space<vmem>>, %arg2: memref<1x16xf32, #tpu.memory_space<vmem>>, %arg3: memref<1x16xf32, #tpu.memory_space<vmem>>, %arg4: memref<256x16xf32, #tpu.memory_space<vmem>>, %arg5: memref<256x16xf32, #tpu.memory_space<vmem>>) attributes {dimension_semantics = [#tpu.dimension_semantics<parallel>], iteration_bounds = array<i64: 2>, scalar_prefetch = 0 : i64, scratch_operands = 0 : i64, tpu.core_type = #tpu.core_type<tc>, window_params = [{transform_indices = @transform_0, window_bounds = array<i64: 256, 16>}, {pipeline_mode = #tpu.pipeline_mode<synchronous>, transform_indices = @transform_1, window_bounds = array<i64: 1, 16>}, {pipeline_mode = #tpu.pipeline_mode<synchronous>, transform_indices = @transform_2, window_bounds = array<i64: 1, 16>}, {transform_indices = @transform_3, window_bounds = array<i64: 256, 16>}, {transform_indices = @transform_4, window_bounds = array<i64: 256, 16>}]} {
    %c0 = arith.constant 0 : index
    %c0_0 = arith.constant 0 : index
    %0 = vector.load %arg1[%c0, %c0_0] : memref<256x16xf32, #tpu.memory_space<vmem>>, vector<256x16xf32>
    %c0_1 = arith.constant 0 : index
    %c0_2 = arith.constant 0 : index
    %1 = vector.load %arg2[%c0_1, %c0_2] : memref<1x16xf32, #tpu.memory_space<vmem>>, vector<1x16xf32>
    %2 = vector.broadcast %1 : vector<1x16xf32> to vector<256x16xf32>
    %3 = arith.mulf %0, %2 : vector<256x16xf32>
    %c0_3 = arith.constant 0 : index
    %c0_4 = arith.constant 0 : index
    %4 = vector.load %arg3[%c0_3, %c0_4] : memref<1x16xf32, #tpu.memory_space<vmem>>, vector<1x16xf32>
    %5 = vector.broadcast %4 : vector<1x16xf32> to vector<256x16xf32>
    %6 = arith.addf %3, %5 : vector<256x16xf32>
    %c0_5 = arith.constant 0 : index
    %c0_6 = arith.constant 0 : index
    %7 = vector.load %arg4[%c0_5, %c0_6] : memref<256x16xf32, #tpu.memory_space<vmem>>, vector<256x16xf32>
    %8 = arith.addf %6, %7 : vector<256x16xf32>
    %cst = arith.constant 0.000000e+00 : f32
    %9 = vector.broadcast %cst : f32 to vector<256x16xf32>
    %10 = arith.maximumf %8, %9 : vector<256x16xf32>
    %c0_7 = arith.constant 0 : index
    %c0_8 = arith.constant 0 : index
    %11 = vector.load %arg5[%c0_7, %c0_8] : memref<256x16xf32, #tpu.memory_space<vmem>>, vector<256x16xf32>
    tpu.vector_store %arg5[%c0_7, %c0_8], %10 {strides = array<i32>} : memref<256x16xf32, #tpu.memory_space<vmem>>, vector<256x16xf32>,
    return
  }
  func.func @transform_0(%arg0: i32) -> (i32, i32) {
    %c0_i32 = arith.constant 0 : i32
    %c0_i32_0 = arith.constant 0 : i32
    return %arg0, %c0_i32 : i32, i32
  }
  func.func @transform_1(%arg0: i32) -> (i32, i32) {
    %c0_i32 = arith.constant 0 : i32
    %c0_i32_0 = arith.constant 0 : i32
    %c0_i32_1 = arith.constant 0 : i32
    return %c0_i32, %c0_i32_0 : i32, i32
  }
  func.func @transform_2(%arg0: i32) -> (i32, i32) {
    %c0_i32 = arith.constant 0 : i32
    %c0_i32_0 = arith.constant 0 : i32
    %c0_i32_1 = arith.constant 0 : i32
    return %c0_i32, %c0_i32_0 : i32, i32
  }
  func.func @transform_3(%arg0: i32) -> (i32, i32) {
    %c0_i32 = arith.constant 0 : i32
    %c0_i32_0 = arith.constant 0 : i32
    return %arg0, %c0_i32 : i32, i32
  }
  func.func @transform_4(%arg0: i32) -> (i32, i32) {
    %c0_i32 = arith.constant 0 : i32
    %c0_i32_0 = arith.constant 0 : i32
    return %arg0, %c0_i32 : i32, i32
  }
}

</mosaic_0001>

<bundles_post_ra>
// kernel: bottleneck_forward.4
= control target key start
LH: loop header
LB: loop body
LE: loop exit
PB: predicated region body
PF: predicated region fallthrough
CT: control target
= control target key end

     0   :  { %s874_s15 = smov 0   ;;  %s1297_s0 = inlined_call_operand.vmem [shape: f32[512,16], index: 0, kind: input, shape index: {}]   ;;  %s1298_s1 = inlined_call_operand.vmem [shape: bf16[16,4], index: 1, kind: input, shape index: {}]   ;;  %s1299_s2 = inlined_call_operand.vmem [shape: f32[512,4], index: 2, kind: output, shape index: {0}]   ;;  %s1300_s3 = inlined_call_operand.vmem [shape: f32[1,4], index: 3, kind: output, shape index: {1}]   ;;  %s1301_s4 = inlined_call_operand.vmem [shape: f32[1,4], index: 4, kind: output, shape index: {2}]  }
   0x1 LB: > { %s748_s16 = sadd.s32 4294967295, %s846_s15   ;;  %p752_p0 = scmp.ge.s32.totalorder %s846_s15, 1  ;;  %s846_s15 = sphi %s874_s15, %s15_s15  }
   0x2   : > { %p158_p1 = scmp.lt.s32.totalorder %s846_s15, 3 }
   0x4   : > { %p159_p2 = pnand %p752_p0, %p158_p1 }
   0x5   : > { %v839_v0 = vld [vmem:[%s1298_s1] sm:$0xff] (!%p159_p2)   ;;  %s753_s19 = sshll.u32 (!%p159_p2), %s748_s16, 5  ;;  %vm253_vm0 = vcmask (!%p159_p2), 130048   ;;  %vm463_vm1 = vcmask (!%p159_p2), 31744   ;;  %p774_p4 = scmp.ne.s32.totalorder (!%p159_p2), %s748_s16, 0 }
   0x6   : > { %162 = sbr.rel (%p159_p2) target bundleno = 344 (0x158), region = 28  ;;  %p185_p3 = scmp.lt.s32.totalorder (!%p159_p2), %s753_s19, 63  ;;  %794 = vmatprep.subr.bf16.mxu0 (!%p159_p2), %v839_v0  ;;  %828 = vmatprep.subr.bf16.mxu1 (!%p159_p2), %v839_v0 }
   0x7   : > { %795 = vmatpush3.bf16.msra.mxu0 (!%p159_p2), %v839_v0  ;;  %829 = vmatpush3.bf16.msra.mxu1 (!%p159_p2), %v839_v0 }
   0xd   : > { %s1303_s19 = smov (!%p185_p3, %s753_s19), 63  ;;  %vm500_vm2 = vcmask (!%p774_p4), 24576  }
   0xe   : > { %s754_s20 = sshll.u32 %s1303_s19, 3 }
   0xf   : > { %s895_s23 = scalar_lea.vmem %s1297_s0, %s754_s20  ;;  %s950_s26 = scalar_lea.vmem %s1299_s2, %s754_s20 }
  0x10   : > { %v197_v1 = vld [vmem:[%s895_s23] sm:$0xff]  ;;  %v198_v2 = vld [vmem:[%s895_s23 + $0x8] sm:$0xff]  ;;  %v199_v6 = vld [vmem:[%s895_s23 + $0x10] sm:$0xff] }
  0x11   : > { %v213_v3 = vld [vmem:[%s895_s23 + $0x80] sm:$0xff]  ;;  %v229_v4 = vpack.c.bf16 %v198_v2, %v197_v1  ;;  %v214_v5 = vld [vmem:[%s895_s23 + $0x88] sm:$0xff]  ;;  %v200_v7 = vld [vmem:[%s895_s23 + $0x18] sm:$0xff] }
  0x12   : > { %v237_v8 = vpack.c.bf16 %v214_v5, %v213_v3  ;;  %v230_v9 = vpack.c.bf16 %v200_v7, %v199_v6  ;;  %v215_v10 = vld [vmem:[%s895_s23 + $0x90] sm:$0xff]  ;;  %v216_v11 = vld [vmem:[%s895_s23 + $0x98] sm:$0xff]  ;;  %v201_v12 = vld [vmem:[%s895_s23 + $0x20] sm:$0xff] }
  0x13   : > { %796 = vmatprep.mubr.msk.bf16.mxu0 %vm253_vm0, %v229_v4  ;;  %v238_v13 = vpack.c.bf16 %v216_v11, %v215_v10  ;;  %v202_v14 = vld [vmem:[%s895_s23 + $0x28] sm:$0xff]  ;;  %v217_v15 = vld [vmem:[%s895_s23 + $0xa0] sm:$0xff]  ;;  %v203_v19 = vld [vmem:[%s895_s23 + $0x30] sm:$0xff] }
  0x14   : > { %v218_v16 = vld [vmem:[%s895_s23 + $0xa8] sm:$0xff]  ;;  %812 = vmatprep.mubr.msk.bf16.mxu1 %vm253_vm0, %v237_v8  ;;  %797 = vmatmul.mubr.msk.bf16.vlgmr.msra.gmra.mrb[0].mxu0 %vm253_vm0, %v230_v9  ;;  %v231_v17 = vpack.c.bf16 %v202_v14, %v201_v12  ;;  %v204_v20 = vld [vmem:[%s895_s23 + $0x38] sm:$0xff]  ;;  %v219_v21 = vld [vmem:[%s895_s23 + $0xb0] sm:$0xff] }
  0x15   : > { %v239_v18 = vpack.c.bf16 %v218_v16, %v217_v15  ;;  %813 = vmatmul.mubr.msk.bf16.vlgmr.msra.gmra.mrb[0].mxu1 %vm253_vm0, %v238_v13  ;;  %v220_v22 = vld [vmem:[%s895_s23 + $0xb8] sm:$0xff]  ;;  %v205_v23 = vld [vmem:[%s895_s23 + $0x40] sm:$0xff]  ;;  %v206_v24 = vld [vmem:[%s895_s23 + $0x48] sm:$0xff]  ;;  %v232_v27 = vpack.c.bf16 %v204_v20, %v203_v19 }
  0x16   : > { %800 = vmatprep.mubr.msk.bf16.mxu0 %vm253_vm0, %v231_v17  ;;  %v221_v25 = vld [vmem:[%s895_s23 + $0xc0] sm:$0xff]  ;;  %v222_v26 = vld [vmem:[%s895_s23 + $0xc8] sm:$0xff]  ;;  %v240_v28 = vpack.c.bf16 %v220_v22, %v219_v21  ;;  %v233_v29 = vpack.c.bf16 %v206_v24, %v205_v23  ;;  %v207_v31 = vld [vmem:[%s895_s23 + $0x50] sm:$0xff]  ;;  %v848_v17 = vmov (!%p774_p4), 0.0  }
  0x17   : > { %816 = vmatprep.mubr.msk.bf16.mxu1 %vm253_vm0, %v239_v18  ;;  %v241_v30 = vpack.c.bf16 %v222_v26, %v221_v25  ;;  %v208_v32 = vld [vmem:[%s895_s23 + $0x58] sm:$0xff]  ;;  %v223_v33 = vld [vmem:[%s895_s23 + $0xd0] sm:$0xff]  ;;  %v209_v35 = vld [vmem:[%s895_s23 + $0x60] sm:$0xff]  ;;  %501 = vst.msk [vmem:[%s1300_s3] sm:$0x1] (!%p774_p4), %vm500_vm2, %v848_v17 }
  0x18   : > { %v224_v34 = vld [vmem:[%s895_s23 + $0xd8] sm:$0xff]  ;;  %v210_v36 = vld [vmem:[%s895_s23 + $0x68] sm:$0xff]  ;;  %v225_v37 = vld [vmem:[%s895_s23 + $0xe0] sm:$0xff]  ;;  %v234_v39 = vpack.c.bf16 %v208_v32, %v207_v31  ;;  %502 = vst.msk [vmem:[%s1301_s4] sm:$0x1] (!%p774_p4), %vm500_vm2, %v848_v17 }
  0x19   : > { %v226_v38 = vld [vmem:[%s895_s23 + $0xe8] sm:$0xff]  ;;  %v242_v40 = vpack.c.bf16 %v224_v34, %v223_v33  ;;  %v235_v41 = vpack.c.bf16 %v210_v36, %v209_v35  ;;  %v211_v43 = vld [vmem:[%s895_s23 + $0x70] sm:$0xff]  ;;  %v212_v44 = vld [vmem:[%s895_s23 + $0x78] sm:$0xff] }
  0x1a   : > { %v243_v42 = vpack.c.bf16 %v226_v38, %v225_v37  ;;  %v227_v45 = vld [vmem:[%s895_s23 + $0xf0] sm:$0xff]  ;;  %v228_v46 = vld [vmem:[%s895_s23 + $0xf8] sm:$0xff]  ;;  %v236_v47 = vpack.c.bf16 %v212_v44, %v211_v43 }
  0x1b   : > { %v244_v48 = vpack.c.bf16 %v228_v46, %v227_v45 }
  0x1c   : > { %801 = vmatmul.mubr.msk.bf16.gmra.mrb[4].mxu0 %vm253_vm0, %v232_v27 }
  0x1d   : > { %817 = vmatmul.mubr.msk.bf16.gmra.mrb[4].mxu1 %vm253_vm0, %v240_v28  ;;  %804 = vmatprep.mubr.msk.bf16.mxu0 %vm253_vm0, %v233_v29 }
  0x1e   : > { %820 = vmatprep.mubr.msk.bf16.mxu1 %vm253_vm0, %v241_v30 }
  0x24   : > { %805 = vmatmul.mubr.msk.bf16.gmra.mrb[8].mxu0 %vm253_vm0, %v234_v39 }
  0x25   : > { %821 = vmatmul.mubr.msk.bf16.gmra.mrb[8].mxu1 %vm253_vm0, %v242_v40  ;;  %808 = vmatprep.mubr.msk.bf16.mxu0 %vm253_vm0, %v235_v41 }
  0x26   : > { %824 = vmatprep.mubr.msk.bf16.mxu1 %vm253_vm0, %v243_v42 }
  0x2c   : > { %809 = vmatmul.mubr.msk.bf16.gmra.mrb[12].mxu0 %vm253_vm0, %v236_v47 }
  0x2d   : > { %825 = vmatmul.mubr.msk.bf16.gmra.mrb[12].mxu1 %vm253_vm0, %v244_v48 }
  0xe7   : > { %v952_v49 = vpop.f32.mrb[0].mxu0 }
  0xe8   : > { %466 = vst.msk [vmem:[%s950_s26 + $0x10] sm:$0xff] %vm463_vm1, %v952_v49  ;;  %v957_v50 = vpop.f32.mrb[0].mxu1  ;;  %v959_v51 = vpop.f32.mrb[1].mxu0 }
  0xe9   : > { %482 = vst.msk [vmem:[%s950_s26 + $0x90] sm:$0xff] %vm463_vm1, %v957_v50  ;;  %464 = vst.msk [vmem:[%s950_s26] sm:$0xff] %vm463_vm1, %v959_v51  ;;  %v967_v52 = vpop.f32.mrb[1].mxu1  ;;  %v969_v53 = vpop.f32.mrb[2].mxu0 }
  0xea   : > { %480 = vst.msk [vmem:[%s950_s26 + $0x80] sm:$0xff] %vm463_vm1, %v967_v52  ;;  %467 = vst.msk [vmem:[%s950_s26 + $0x18] sm:$0xff] %vm463_vm1, %v969_v53  ;;  %v977_v54 = vpop.f32.mrb[2].mxu1  ;;  %v979_v55 = vpop.f32.mrb[3].mxu0 }
  0xeb   : > { %483 = vst.msk [vmem:[%s950_s26 + $0x98] sm:$0xff] %vm463_vm1, %v977_v54  ;;  %465 = vst.msk [vmem:[%s950_s26 + $0x8] sm:$0xff] %vm463_vm1, %v979_v55  ;;  %v987_v56 = vpop.f32.mrb[3].mxu1 }
  0xec   : > { %481 = vst.msk [vmem:[%s950_s26 + $0x88] sm:$0xff] %vm463_vm1, %v987_v56 }
  0xef   : > { %v992_v57 = vpop.f32.mrb[4].mxu0 }
  0xf0   : > { %470 = vst.msk [vmem:[%s950_s26 + $0x30] sm:$0xff] %vm463_vm1, %v992_v57  ;;  %v997_v58 = vpop.f32.mrb[4].mxu1  ;;  %v999_v59 = vpop.f32.mrb[5].mxu0 }
  0xf1   : > { %486 = vst.msk [vmem:[%s950_s26 + $0xb0] sm:$0xff] %vm463_vm1, %v997_v58  ;;  %468 = vst.msk [vmem:[%s950_s26 + $0x20] sm:$0xff] %vm463_vm1, %v999_v59  ;;  %v1007_v60 = vpop.f32.mrb[5].mxu1  ;;  %v1009_v61 = vpop.f32.mrb[6].mxu0 }
  0xf2   : > { %484 = vst.msk [vmem:[%s950_s26 + $0xa0] sm:$0xff] %vm463_vm1, %v1007_v60  ;;  %471 = vst.msk [vmem:[%s950_s26 + $0x38] sm:$0xff] %vm463_vm1, %v1009_v61  ;;  %v1017_v62 = vpop.f32.mrb[6].mxu1  ;;  %v1019_v63 = vpop.f32.mrb[7].mxu0 }
  0xf3   : > { %487 = vst.msk [vmem:[%s950_s26 + $0xb8] sm:$0xff] %vm463_vm1, %v1017_v62  ;;  %469 = vst.msk [vmem:[%s950_s26 + $0x28] sm:$0xff] %vm463_vm1, %v1019_v63  ;;  %v1027_v0 = vpop.f32.mrb[7].mxu1 }
  0xf4   : > { %485 = vst.msk [vmem:[%s950_s26 + $0xa8] sm:$0xff] %vm463_vm1, %v1027_v0 }
  0xf7   : > { %v1032_v1 = vpop.f32.mrb[8].mxu0 }
  0xf8   : > { %474 = vst.msk [vmem:[%s950_s26 + $0x50] sm:$0xff] %vm463_vm1, %v1032_v1  ;;  %v1037_v2 = vpop.f32.mrb[8].mxu1  ;;  %v1039_v3 = vpop.f32.mrb[9].mxu0 }
  0xf9   : > { %490 = vst.msk [vmem:[%s950_s26 + $0xd0] sm:$0xff] %vm463_vm1, %v1037_v2  ;;  %472 = vst.msk [vmem:[%s950_s26 + $0x40] sm:$0xff] %vm463_vm1, %v1039_v3  ;;  %v1047_v4 = vpop.f32.mrb[9].mxu1  ;;  %v1049_v5 = vpop.f32.mrb[10].mxu0 }
  0xfa   : > { %488 = vst.msk [vmem:[%s950_s26 + $0xc0] sm:$0xff] %vm463_vm1, %v1047_v4  ;;  %475 = vst.msk [vmem:[%s950_s26 + $0x58] sm:$0xff] %vm463_vm1, %v1049_v5  ;;  %v1057_v6 = vpop.f32.mrb[10].mxu1  ;;  %v1059_v7 = vpop.f32.mrb[11].mxu0 }
  0xfb   : > { %491 = vst.msk [vmem:[%s950_s26 + $0xd8] sm:$0xff] %vm463_vm1, %v1057_v6  ;;  %473 = vst.msk [vmem:[%s950_s26 + $0x48] sm:$0xff] %vm463_vm1, %v1059_v7  ;;  %v1067_v8 = vpop.f32.mrb[11].mxu1 }
  0xfc   : > { %489 = vst.msk [vmem:[%s950_s26 + $0xc8] sm:$0xff] %vm463_vm1, %v1067_v8 }
  0xfe   : > { %499 = sbr.rel (%p774_p4) target bundleno = 261 (0x105), region = 32 }
  0xff   : > { %v1072_v9 = vpop.f32.mrb[12].mxu0 }
 0x100   : > { %478 = vst.msk [vmem:[%s950_s26 + $0x70] sm:$0xff] %vm463_vm1, %v1072_v9  ;;  %v1077_v10 = vpop.f32.mrb[12].mxu1  ;;  %v1079_v11 = vpop.f32.mrb[13].mxu0 }
 0x101   : > { %494 = vst.msk [vmem:[%s950_s26 + $0xf0] sm:$0xff] %vm463_vm1, %v1077_v10  ;;  %476 = vst.msk [vmem:[%s950_s26 + $0x60] sm:$0xff] %vm463_vm1, %v1079_v11  ;;  %v1087_v12 = vpop.f32.mrb[13].mxu1  ;;  %v1089_v13 = vpop.f32.mrb[14].mxu0 }
 0x102   : > { %492 = vst.msk [vmem:[%s950_s26 + $0xe0] sm:$0xff] %vm463_vm1, %v1087_v12  ;;  %479 = vst.msk [vmem:[%s950_s26 + $0x78] sm:$0xff] %vm463_vm1, %v1089_v13  ;;  %v1097_v14 = vpop.f32.mrb[14].mxu1  ;;  %v1099_v15 = vpop.f32.mrb[15].mxu0 }
 0x103   : > { %495 = vst.msk [vmem:[%s950_s26 + $0xf8] sm:$0xff] %vm463_vm1, %v1097_v14  ;;  %477 = vst.msk [vmem:[%s950_s26 + $0x68] sm:$0xff] %vm463_vm1, %v1099_v15  ;;  %v1107_v16 = vpop.f32.mrb[15].mxu1 }
 0x104   : > { %493 = vst.msk [vmem:[%s950_s26 + $0xe8] sm:$0xff] %vm463_vm1, %v1107_v16 }
 0x105 PF: > { %v504_v18 = vsel %vm463_vm1, %v959_v51, 0.0  ;;  %v505_v19 = vsel %vm463_vm1, %v979_v55, 0.0  ;;  %v507_v20 = vsel %vm463_vm1, %v952_v49, 0.0  ;;  %v509_v22 = vsel %vm463_vm1, %v969_v53, 0.0 }
 0x106   : > { %v506_v21 = vadd.f32 %v505_v19, %v504_v18  ;;  %v511_v24 = vsel %vm463_vm1, %v999_v59, 0.0  ;;  %v513_v26 = vsel %vm463_vm1, %v1019_v63, 0.0  ;;  %v515_v28 = vsel %vm463_vm1, %v992_v57, 0.0 }
 0x107   : > { %v517_v30 = vsel %vm463_vm1, %v1009_v61, 0.0  ;;  %v519_v32 = vsel %vm463_vm1, %v1039_v3, 0.0  ;;  %v521_v34 = vsel %vm463_vm1, %v1059_v7, 0.0  ;;  %v577_v35 = vmul.f32 %v959_v51, %v959_v51 }
 0x108   : > { %v508_v23 = vadd.f32 %v507_v20, %v506_v21  ;;  %v578_v36 = vmul.f32 %v979_v55, %v979_v55  ;;  %v579_v38 = vmul.f32 %v952_v49, %v952_v49  ;;  %v523_v39 = vsel %vm463_vm1, %v1032_v1, 0.0 }
 0x109   : > { %v580_v40 = vmul.f32 %v969_v53, %v969_v53  ;;  %v525_v42 = vsel %vm463_vm1, %v1049_v5, 0.0  ;;  %v581_v43 = vmul.f32 %v999_v59, %v999_v59  ;;  %v609_v44 = vsel %vm463_vm1, %v577_v35, 0.0 }
 0x10a   : > { %v510_v25 = vadd.f32 %v509_v22, %v508_v23  ;;  %v610_v45 = vsel %vm463_vm1, %v578_v36, 0.0  ;;  %v612_v48 = vsel %vm463_vm1, %v579_v38, 0.0  ;;  %v527_v49 = vsel %vm463_vm1, %v1079_v11, 0.0 }
 0x10b   : > { %v611_v47 = vadd.f32 %v610_v45, %v609_v44  ;;  %v582_v51 = vmul.f32 %v1019_v63, %v1019_v63  ;;  %v614_v53 = vsel %vm463_vm1, %v580_v40, 0.0  ;;  %v529_v59 = vsel %vm463_vm1, %v1099_v15, 0.0 }
 0x10c   : > { %v512_v27 = vadd.f32 %v511_v24, %v510_v25  ;;  %v583_v18 = vmul.f32 %v992_v57, %v992_v57  ;;  %v616_v19 = vsel %vm463_vm1, %v581_v43, 0.0  ;;  %v531_v22 = vsel %vm463_vm1, %v1072_v9, 0.0 }
 0x10d   : > { %v613_v17 = vadd.f32 %v612_v48, %v611_v47  ;;  %v584_v63 = vmul.f32 %v1009_v61, %v1009_v61  ;;  %v618_v23 = vsel %vm463_vm1, %v582_v51, 0.0  ;;  %v585_v57 = vmul.f32 %v1039_v3, %v1039_v3 }
 0x10e   : > { %v514_v29 = vadd.f32 %v513_v26, %v512_v27  ;;  %v533_v26 = vsel %vm463_vm1, %v1089_v13, 0.0  ;;  %v620_v27 = vsel %vm463_vm1, %v583_v18, 0.0  ;;  %v586_v61 = vmul.f32 %v1059_v7, %v1059_v7 }
 0x10f   : > { %v615_v21 = vadd.f32 %v614_v53, %v613_v17  ;;  %v587_v3 = vmul.f32 %v1032_v1, %v1032_v1  ;;  %v624_v35 = vsel %vm463_vm1, %v585_v57, 0.0  ;;  %v539_v38 = vsel %vm463_vm1, %v957_v50, 0.0 }
 0x110   : > { %v516_v31 = vadd.f32 %v515_v28, %v514_v29  ;;  %v588_v7 = vmul.f32 %v1049_v5, %v1049_v5  ;;  %v589_v1 = vmul.f32 %v1079_v11, %v1079_v11  ;;  %v590_v5 = vmul.f32 %v1099_v15, %v1099_v15 }
 0x111   : > { %v617_v25 = vadd.f32 %v616_v19, %v615_v21  ;;  %v628_v43 = vsel %vm463_vm1, %v587_v3, 0.0  ;;  %v545_v51 = vsel %vm463_vm1, %v1027_v0, 0.0  ;;  %v591_v11 = vmul.f32 %v1072_v9, %v1072_v9 }
 0x112   : > { %v518_v33 = vadd.f32 %v517_v30, %v516_v31  ;;  %v535_v30 = vsel %vm463_vm1, %v967_v52, 0.0  ;;  %v622_v31 = vsel %vm463_vm1, %v584_v63, 0.0  ;;  %v630_v47 = vsel %vm463_vm1, %v588_v7, 0.0 }
 0x113   : > { %v619_v29 = vadd.f32 %v618_v23, %v617_v25  ;;  %v632_v53 = vsel %vm463_vm1, %v589_v1, 0.0  ;;  %v592_v15 = vmul.f32 %v1089_v13, %v1089_v13  ;;  %v634_v18 = vsel %vm463_vm1, %v590_v5, 0.0 }
 0x114   : > { %v520_v37 = vadd.f32 %v519_v32, %v518_v33  ;;  %v549_v21 = vsel %vm463_vm1, %v1017_v62, 0.0  ;;  %v593_v9 = vmul.f32 %v967_v52, %v967_v52  ;;  %v594_v13 = vmul.f32 %v987_v56, %v987_v56 }
 0x115   : > { %v621_v33 = vadd.f32 %v620_v27, %v619_v29  ;;  %v638_v25 = vsel %vm463_vm1, %v592_v15, 0.0  ;;  %v553_v27 = vsel %vm463_vm1, %v1067_v8, 0.0  ;;  %v595_v52 = vmul.f32 %v957_v50, %v957_v50 }
 0x116   : > { %v522_v41 = vadd.f32 %v521_v34, %v520_v37  ;;  %v537_v34 = vsel %vm463_vm1, %v987_v56, 0.0  ;;  %v596_v56 = vmul.f32 %v977_v54, %v977_v54  ;;  %v597_v50 = vmul.f32 %v1007_v60, %v1007_v60 }
 0x117   : > { %v623_v37 = vadd.f32 %v622_v31, %v621_v33  ;;  %v642_v31 = vsel %vm463_vm1, %v594_v13, 0.0  ;;  %v644_v3 = vsel %vm463_vm1, %v595_v52, 0.0  ;;  %v565_v5 = vsel %vm463_vm1, %v1097_v14, 0.0 }
 0x118   : > { %v524_v46 = vadd.f32 %v523_v39, %v522_v41  ;;  %v626_v39 = vsel %vm463_vm1, %v586_v61, 0.0  ;;  %v555_v61 = vsel %vm463_vm1, %v1037_v2, 0.0  ;;  %vm574_vm3 = vcmask 24576  }
 0x119   : > { %v625_v41 = vadd.f32 %v624_v35, %v623_v37  ;;  %v559_v37 = vsel %vm463_vm1, %v1087_v12, 0.0 }
 0x11a   : > { %v526_v55 = vadd.f32 %v525_v42, %v524_v46  ;;  %v541_v42 = vsel %vm463_vm1, %v977_v54, 0.0  ;;  %v543_v46 = vsel %vm463_vm1, %v1007_v60, 0.0  ;;  %v598_v54 = vmul.f32 %v1027_v0, %v1027_v0 }
 0x11b   : > { %v627_v45 = vadd.f32 %v626_v39, %v625_v41  ;;  %v599_v60 = vmul.f32 %v997_v58, %v997_v58  ;;  %v648_v41 = vsel %vm463_vm1, %v597_v50, 0.0  ;;  %v600_v0 = vmul.f32 %v1017_v62, %v1017_v62  ;;  %v576_v50 = vld [vmem:[%s1301_s4] sm:$0x1] }
 0x11c   : > { %v528_v20 = vadd.f32 %v527_v49, %v526_v55 }
 0x11d   : > { %v629_v49 = vadd.f32 %v628_v43, %v627_v45  ;;  %v563_v43 = vsel %vm463_vm1, %v1077_v10, 0.0 }
 0x11e   : > { %v530_v24 = vadd.f32 %v529_v59, %v528_v20  ;;  %v547_v59 = vsel %vm463_vm1, %v997_v58, 0.0  ;;  %v601_v58 = vmul.f32 %v1047_v4, %v1047_v4 }
 0x11f   : > { %v631_v17 = vadd.f32 %v630_v47, %v629_v49  ;;  %v652_v47 = vsel %vm463_vm1, %v599_v60, 0.0 }
 0x120   : > { %v532_v28 = vadd.f32 %v531_v22, %v530_v24  ;;  %v636_v22 = vsel %vm463_vm1, %v591_v11, 0.0  ;;  %v551_v24 = vsel %vm463_vm1, %v1047_v4, 0.0  ;;  %v654_v11 = vsel %vm463_vm1, %v600_v0, 0.0 }
 0x121   : > { %v633_v20 = vadd.f32 %v632_v53, %v631_v17  ;;  %v656_v17 = vsel %vm463_vm1, %v601_v58, 0.0  ;;  %v604_v4 = vmul.f32 %v1057_v6, %v1057_v6 }
 0x122   : > { %v534_v32 = vadd.f32 %v533_v26, %v532_v28  ;;  %v640_v28 = vsel %vm463_vm1, %v593_v9, 0.0 }
 0x123   : > { %v635_v23 = vadd.f32 %v634_v18, %v633_v20 }
 0x124   : > { %v536_v36 = vadd.f32 %v535_v30, %v534_v32 }
 0x125   : > { %v637_v57 = vadd.f32 %v636_v22, %v635_v23 }
 0x126   : > { %v538_v40 = vadd.f32 %v537_v34, %v536_v36  ;;  %v557_v34 = vsel %vm463_vm1, %v1057_v6, 0.0  ;;  %v607_v6 = vmul.f32 %v1077_v10, %v1077_v10 }
 0x127   : > { %v639_v30 = vadd.f32 %v638_v25, %v637_v57  ;;  %v608_v57 = vmul.f32 %v1097_v14, %v1097_v14 }
 0x128   : > { %v540_v44 = vadd.f32 %v539_v38, %v538_v40  ;;  %v646_v38 = vsel %vm463_vm1, %v596_v56, 0.0  ;;  %v561_v40 = vsel %vm463_vm1, %v1107_v16, 0.0 }
 0x129   : > { %v641_v33 = vadd.f32 %v640_v28, %v639_v30  ;;  %v668_v28 = vsel %vm463_vm1, %v607_v6, 0.0  ;;  %v670_v30 = vsel %vm463_vm1, %v608_v57, 0.0 }
 0x12a   : > { %v542_v48 = vadd.f32 %v541_v42, %v540_v44  ;;  %v650_v44 = vsel %vm463_vm1, %v598_v54, 0.0 }
 0x12b   : > { %v643_v36 = vadd.f32 %v642_v31, %v641_v33 }
 0x12c   : > { %v544_v55 = vadd.f32 %v543_v46, %v542_v48 }
 0x12d   : > { %v645_v39 = vadd.f32 %v644_v3, %v643_v36 }
 0x12e   : > { %v546_v19 = vadd.f32 %v545_v51, %v544_v55  ;;  %v602_v51 = vmul.f32 %v1067_v8, %v1067_v8  ;;  %v603_v55 = vmul.f32 %v1037_v2, %v1037_v2  ;;  %v605_v8 = vmul.f32 %v1087_v12, %v1087_v12  ;;  %v503_v12 = vld [vmem:[%s1300_s3] sm:$0x1] }
 0x12f   : > { %v647_v1 = vadd.f32 %v646_v38, %v645_v39  ;;  %v606_v2 = vmul.f32 %v1107_v16, %v1107_v16 }
 0x130   : > { %v548_v63 = vadd.f32 %v547_v59, %v546_v19  ;;  %v658_v18 = vsel %vm463_vm1, %v602_v51, 0.0  ;;  %v664_v13 = vsel %vm463_vm1, %v605_v8, 0.0 }
 0x131   : > { %v649_v46 = vadd.f32 %v648_v41, %v647_v1  ;;  %v666_v16 = vsel %vm463_vm1, %v606_v2, 0.0 }
 0x132   : > { %v550_v26 = vadd.f32 %v549_v21, %v548_v63  ;;  %v660_v21 = vsel %vm463_vm1, %v603_v55, 0.0  ;;  %v662_v63 = vsel %vm463_vm1, %v604_v4, 0.0 }
 0x133   : > { %v651_v49 = vadd.f32 %v650_v44, %v649_v46 }
 0x134   : > { %v552_v29 = vadd.f32 %v551_v24, %v550_v26 }
 0x135   : > { %v653_v53 = vadd.f32 %v652_v47, %v651_v49 }
 0x136   : > { %v554_v32 = vadd.f32 %v553_v27, %v552_v29 }
 0x137   : > { %v655_v15 = vadd.f32 %v654_v11, %v653_v53 }
 0x138   : > { %v556_v35 = vadd.f32 %v555_v61, %v554_v32 }
 0x139   : > { %v657_v20 = vadd.f32 %v656_v17, %v655_v15 }
 0x13a   : > { %v558_v7 = vadd.f32 %v557_v34, %v556_v35 }
 0x13b   : > { %v659_v22 = vadd.f32 %v658_v18, %v657_v20 }
 0x13c   : > { %v560_v42 = vadd.f32 %v559_v37, %v558_v7 }
 0x13d   : > { %v661_v24 = vadd.f32 %v660_v21, %v659_v22 }
 0x13e   : > { %v562_v45 = vadd.f32 %v561_v40, %v560_v42 }
 0x13f   : > { %v663_v26 = vadd.f32 %v662_v63, %v661_v24 }
 0x140   : > { %v564_v48 = vadd.f32 %v563_v43, %v562_v45 }
 0x141   : > { %v665_v52 = vadd.f32 %v664_v13, %v663_v26 }
 0x142   : > { %v566_v62 = vadd.f32 %v565_v5, %v564_v48 }
 0x143   : > { %v667_v10 = vadd.f32 %v666_v16, %v665_v52 }
 0x144   : > { %v567_v59 = vrot.slane %v566_v62, 4 }
 0x145   : > { %v669_v61 = vadd.f32 %v668_v28, %v667_v10 }
 0x146   : > { %v568_v19 = vadd.f32 %v567_v59, %v566_v62 }
 0x147   : > { %v671_v56 = vadd.f32 %v670_v30, %v669_v61 }
 0x148   : > { %v569_v9 = vrot.slane %v568_v19, 2 }
 0x149   : > { %v672_v31 = vrot.slane %v671_v56, 4 }
 0x14a   : > { %v570_v23 = vadd.f32 %v569_v9, %v568_v19 }
 0x14b   : > { %v673_v14 = vadd.f32 %v672_v31, %v671_v56 }
 0x14c   : > { %v571_v25 = vrot.slane %v570_v23, 1 }
 0x14d   : > { %v674_v32 = vrot.slane %v673_v14, 2 }
 0x14e   : > { %v572_v27 = vadd.f32 %v571_v25, %v570_v23 }
 0x14f   : > { %v675_v33 = vadd.f32 %v674_v32, %v673_v14 }
 0x150   : > { %v573_v29 = vadd.f32 %v572_v27, %v503_v12 }
 0x151   : > { %v676_v34 = vrot.slane %v675_v33, 1 }
 0x152   : > { %575 = vst.msk [vmem:[%s1300_s3] sm:$0x1] %vm574_vm3, %v573_v29 }
 0x153   : > { %v677_v3 = vadd.f32 %v676_v34, %v675_v33 }
 0x155   : > { %v678_v35 = vadd.f32 %v677_v3, %v576_v50 }
 0x157   : > { %679 = vst.msk [vmem:[%s1301_s4] sm:$0x1] %vm574_vm3, %v678_v35 }
 0x158 PF: > { %s15_s15 = sadd.s32 1, %s846_s15  }
 0x159   : > { %p12_p5 = scmp.ge.s32.totalorder %s15_s15, 4  }
 0x15b   :  { %14 = sbr.rel (!%p12_p5) target bundleno = 1 (0x1), region = 78 }

// kernel: bottleneck_forward.6
= control target key start
LH: loop header
LB: loop body
LE: loop exit
PB: predicated region body
PF: predicated region fallthrough
CT: control target
= control target key end

     0   :  { %s1047_s21 = smov 0   ;;  %s1544_s0 = inlined_call_operand.vmem [shape: f32[512,4], index: 0, kind: input, shape index: {}]   ;;  %s1545_s1 = inlined_call_operand.vmem [shape: f32[1,4], index: 1, kind: input, shape index: {}]   ;;  %s1546_s2 = inlined_call_operand.vmem [shape: f32[1,4], index: 2, kind: input, shape index: {}]   ;;  %s1547_s3 = inlined_call_operand.vmem [shape: bf16[4,16], index: 3, kind: input, shape index: {}]   ;;  %s1548_s4 = inlined_call_operand.vmem [shape: f32[512,16], index: 4, kind: output, shape index: {0}]   ;;  %s1549_s5 = inlined_call_operand.vmem [shape: f32[1,16], index: 5, kind: output, shape index: {1}]   ;;  %s1550_s6 = inlined_call_operand.vmem [shape: f32[1,16], index: 6, kind: output, shape index: {2}]  }
   0x1 LB: > { %s909_s22 = sadd.s32 4294967295, %s1009_s21   ;;  %p913_p0 = scmp.ge.s32.totalorder %s1009_s21, 1  ;;  %s1009_s21 = sphi %s1047_s21, %s17_s21  }
   0x2   : > { %p208_p1 = scmp.lt.s32.totalorder %s1009_s21, 3 }
   0x4   : > { %p209_p2 = pnand %p913_p0, %p208_p1 }
   0x5   : > { %v409_v0 = vld [vmem:[%s1547_s3] sm:$0x3] (!%p209_p2)  ;;  %vm459_vm0 = vcmask (!%p209_p2), 1041408   ;;  %s914_s25 = sshll.u32 (!%p209_p2), %s909_s22, 5  ;;  %vm410_vm1 = vcmask (!%p209_p2), 31744   ;;  %vm624_vm2 = vcmask (!%p209_p2), 130048  }
   0x6   : > { %212 = sbr.rel (%p209_p2) target bundleno = 351 (0x15f), region = 36  ;;  %992 = vmatprep.subr.msk.bf16.mxu0 (!%p209_p2), %vm459_vm0, %v409_v0  ;;  %993 = vmatprep.subr.msk.bf16.mxu1 (!%p209_p2), %vm459_vm0, %v409_v0  ;;  %v461_v1 = vsel (!%p209_p2), %vm459_vm0, %v409_v0, 0  ;;  %p239_p3 = scmp.lt.s32.totalorder (!%p209_p2), %s914_s25, 63  ;;  %v1066_v2 = vld [vmem:[%s1545_s1] ss:$0 sm:$0xff] (!%p209_p2) }
   0x7   : > { %957 = vmatpush3.bf16.msra.mxu0 (!%p209_p2), %v461_v1  ;;  %991 = vmatpush3.bf16.msra.mxu1 (!%p209_p2), %v461_v1  ;;  %v1078_v3 = vld [vmem:[%s1546_s2] ss:$0 sm:$0xff] (!%p209_p2)  ;;  %p936_p4 = scmp.ne.s32.totalorder (!%p209_p2), %s909_s22, 0 }
   0xd   : > { %s1552_s25 = smov (!%p239_p3, %s914_s25), 63  ;;  %vm661_vm3 = vcmask (!%p936_p4), 122880  }
   0xe   : > { %s915_s26 = sshll.u32 %s1552_s25, 3 }
   0xf   : > { %s1073_s7 = scalar_lea.vmem %s1544_s0, %s915_s26  ;;  %s1197_s12 = scalar_lea.vmem %s1548_s4, %s915_s26 }
  0x10   : > { %v251_v4 = vld [vmem:[%s1073_s7] sm:$0xff]  ;;  %v252_v5 = vld [vmem:[%s1073_s7 + $0x8] sm:$0xff]  ;;  %v253_v11 = vld [vmem:[%s1073_s7 + $0x10] sm:$0xff] }
  0x11   : > { %v267_v6 = vld [vmem:[%s1073_s7 + $0x80] sm:$0xff]  ;;  %v290_v7 = vmul.f32 %v1066_v2, %v251_v4  ;;  %v291_v8 = vmul.f32 %v1066_v2, %v252_v5  ;;  %v268_v9 = vld [vmem:[%s1073_s7 + $0x88] sm:$0xff]  ;;  %v254_v12 = vld [vmem:[%s1073_s7 + $0x18] sm:$0xff]  ;;  %v292_v14 = vmul.f32 %v1066_v2, %v253_v11 }
  0x12   : > { %v306_v10 = vmul.f32 %v1066_v2, %v267_v6  ;;  %v307_v13 = vmul.f32 %v1066_v2, %v268_v9  ;;  %v293_v15 = vmul.f32 %v1066_v2, %v254_v12  ;;  %v269_v16 = vld [vmem:[%s1073_s7 + $0x90] sm:$0xff]  ;;  %v270_v17 = vld [vmem:[%s1073_s7 + $0x98] sm:$0xff]  ;;  %v255_v26 = vld [vmem:[%s1073_s7 + $0x20] sm:$0xff] }
  0x13   : > { %v329_v18 = vadd.f32 %v1078_v3, %v290_v7  ;;  %v330_v19 = vadd.f32 %v1078_v3, %v291_v8  ;;  %v308_v21 = vmul.f32 %v1066_v2, %v269_v16  ;;  %v331_v23 = vadd.f32 %v1078_v3, %v292_v14  ;;  %v256_v27 = vld [vmem:[%s1073_s7 + $0x28] sm:$0xff]  ;;  %v271_v32 = vld [vmem:[%s1073_s7 + $0xa0] sm:$0xff]  ;;  %v257_v38 = vld [vmem:[%s1073_s7 + $0x30] sm:$0xff] }
  0x14   : > { %v345_v20 = vadd.f32 %v1078_v3, %v306_v10  ;;  %v346_v22 = vadd.f32 %v1078_v3, %v307_v13  ;;  %v332_v24 = vadd.f32 %v1078_v3, %v293_v15  ;;  %v309_v25 = vmul.f32 %v1066_v2, %v270_v17  ;;  %v272_v37 = vld [vmem:[%s1073_s7 + $0xa8] sm:$0xff]  ;;  %v258_v43 = vld [vmem:[%s1073_s7 + $0x38] sm:$0xff]  ;;  %v273_v52 = vld [vmem:[%s1073_s7 + $0xb0] sm:$0xff] }
  0x15   : > { %v361_v28 = vmax.f32 %v329_v18, 0.0  ;;  %v362_v29 = vmax.f32 %v330_v19, 0.0  ;;  %v347_v31 = vadd.f32 %v1078_v3, %v308_v21  ;;  %v363_v34 = vmax.f32 %v331_v23, 0.0  ;;  %v274_v53 = vld [vmem:[%s1073_s7 + $0xb8] sm:$0xff]  ;;  %v259_v57 = vld [vmem:[%s1073_s7 + $0x40] sm:$0xff]  ;;  %v260_v62 = vld [vmem:[%s1073_s7 + $0x48] sm:$0xff] }
  0x16   : > { %v377_v30 = vmax.f32 %v345_v20, 0.0  ;;  %v378_v33 = vmax.f32 %v346_v22, 0.0  ;;  %v364_v35 = vmax.f32 %v332_v24, 0.0  ;;  %v348_v36 = vadd.f32 %v1078_v3, %v309_v25  ;;  %v275_v5 = vld [vmem:[%s1073_s7 + $0xc0] sm:$0xff]  ;;  %v276_v6 = vld [vmem:[%s1073_s7 + $0xc8] sm:$0xff]  ;;  %v261_v15 = vld [vmem:[%s1073_s7 + $0x50] sm:$0xff] }
  0x17   : > { %v393_v39 = vpack.c.bf16 %v362_v29, %v361_v28  ;;  %v379_v40 = vmax.f32 %v347_v31, 0.0  ;;  %v294_v41 = vmul.f32 %v1066_v2, %v255_v26  ;;  %v295_v42 = vmul.f32 %v1066_v2, %v256_v27  ;;  %v262_v20 = vld [vmem:[%s1073_s7 + $0x58] sm:$0xff]  ;;  %v277_v21 = vld [vmem:[%s1073_s7 + $0xd0] sm:$0xff]  ;;  %v263_v31 = vld [vmem:[%s1073_s7 + $0x60] sm:$0xff] }
  0x18   : > { %v401_v44 = vpack.c.bf16 %v378_v33, %v377_v30  ;;  %v394_v45 = vpack.c.bf16 %v364_v35, %v363_v34  ;;  %v380_v46 = vmax.f32 %v348_v36, 0.0  ;;  %v310_v47 = vmul.f32 %v1066_v2, %v271_v32  ;;  %v278_v26 = vld [vmem:[%s1073_s7 + $0xd8] sm:$0xff]  ;;  %v264_v36 = vld [vmem:[%s1073_s7 + $0x68] sm:$0xff] }
  0x19   : > { %958 = vmatprep.mubr.msk.bf16.mxu0 %vm410_vm1, %v393_v39  ;;  %v333_v48 = vadd.f32 %v1078_v3, %v294_v41  ;;  %v334_v49 = vadd.f32 %v1078_v3, %v295_v42  ;;  %v311_v50 = vmul.f32 %v1066_v2, %v272_v37  ;;  %v296_v51 = vmul.f32 %v1066_v2, %v257_v38  ;;  %v279_v41 = vld [vmem:[%s1073_s7 + $0xe0] sm:$0xff] }
  0x1a   : > { %974 = vmatprep.mubr.msk.bf16.mxu1 %vm410_vm1, %v401_v44  ;;  %959 = vmatmul.mubr.msk.bf16.vlgmr.msra.gmra.mrb[0].mxu0 %vm410_vm1, %v394_v45  ;;  %v402_v54 = vpack.c.bf16 %v380_v46, %v379_v40  ;;  %v349_v55 = vadd.f32 %v1078_v3, %v310_v47  ;;  %v297_v56 = vmul.f32 %v1066_v2, %v258_v43  ;;  %v280_v46 = vld [vmem:[%s1073_s7 + $0xe8] sm:$0xff]  ;;  %v265_v47 = vld [vmem:[%s1073_s7 + $0x70] sm:$0xff] }
  0x1b   : > { %v365_v58 = vmax.f32 %v333_v48, 0.0  ;;  %v366_v59 = vmax.f32 %v334_v49, 0.0  ;;  %v350_v60 = vadd.f32 %v1078_v3, %v311_v50  ;;  %v335_v61 = vadd.f32 %v1078_v3, %v296_v51 }
  0x1c   : > { %975 = vmatmul.mubr.msk.bf16.vlgmr.msra.gmra.mrb[0].mxu1 %vm410_vm1, %v402_v54  ;;  %v381_v63 = vmax.f32 %v349_v55, 0.0  ;;  %v336_v0 = vadd.f32 %v1078_v3, %v297_v56  ;;  %v312_v1 = vmul.f32 %v1066_v2, %v273_v52  ;;  %v313_v4 = vmul.f32 %v1066_v2, %v274_v53  ;;  %v266_v52 = vld [vmem:[%s1073_s7 + $0x78] sm:$0xff] }
  0x1d   : > { %v395_v7 = vpack.c.bf16 %v366_v59, %v365_v58  ;;  %v382_v8 = vmax.f32 %v350_v60, 0.0  ;;  %v367_v9 = vmax.f32 %v335_v61, 0.0  ;;  %v298_v10 = vmul.f32 %v1066_v2, %v259_v57  ;;  %v281_v61 = vld [vmem:[%s1073_s7 + $0xf0] sm:$0xff] }
  0x1e   : > { %v368_v11 = vmax.f32 %v336_v0, 0.0  ;;  %v351_v12 = vadd.f32 %v1078_v3, %v312_v1  ;;  %v352_v13 = vadd.f32 %v1078_v3, %v313_v4  ;;  %v299_v14 = vmul.f32 %v1066_v2, %v260_v62  ;;  %v282_v62 = vld [vmem:[%s1073_s7 + $0xf8] sm:$0xff] }
  0x1f   : > { %962 = vmatprep.mubr.msk.bf16.mxu0 %vm410_vm1, %v395_v7  ;;  %v403_v16 = vpack.c.bf16 %v382_v8, %v381_v63  ;;  %v337_v17 = vadd.f32 %v1078_v3, %v298_v10  ;;  %v314_v18 = vmul.f32 %v1066_v2, %v275_v5  ;;  %v315_v19 = vmul.f32 %v1066_v2, %v276_v6 }
  0x20   : > { %v396_v22 = vpack.c.bf16 %v368_v11, %v367_v9  ;;  %v383_v23 = vmax.f32 %v351_v12, 0.0  ;;  %v384_v24 = vmax.f32 %v352_v13, 0.0  ;;  %v338_v25 = vadd.f32 %v1078_v3, %v299_v14 }
  0x21   : > { %978 = vmatprep.mubr.msk.bf16.mxu1 %vm410_vm1, %v403_v16  ;;  %v369_v27 = vmax.f32 %v337_v17, 0.0  ;;  %v353_v28 = vadd.f32 %v1078_v3, %v314_v18  ;;  %v354_v29 = vadd.f32 %v1078_v3, %v315_v19  ;;  %v300_v30 = vmul.f32 %v1066_v2, %v261_v15 }
  0x22   : > { %963 = vmatmul.mubr.msk.bf16.gmra.mrb[4].mxu0 %vm410_vm1, %v396_v22  ;;  %v404_v32 = vpack.c.bf16 %v384_v24, %v383_v23  ;;  %v370_v33 = vmax.f32 %v338_v25, 0.0  ;;  %v301_v34 = vmul.f32 %v1066_v2, %v262_v20  ;;  %v316_v35 = vmul.f32 %v1066_v2, %v277_v21 }
  0x23   : > { %v385_v37 = vmax.f32 %v353_v28, 0.0  ;;  %v386_v38 = vmax.f32 %v354_v29, 0.0  ;;  %v339_v39 = vadd.f32 %v1078_v3, %v300_v30  ;;  %v317_v40 = vmul.f32 %v1066_v2, %v278_v26 }
  0x24   : > { %979 = vmatmul.mubr.msk.bf16.gmra.mrb[4].mxu1 %vm410_vm1, %v404_v32  ;;  %v397_v42 = vpack.c.bf16 %v370_v33, %v369_v27  ;;  %v340_v43 = vadd.f32 %v1078_v3, %v301_v34  ;;  %v355_v44 = vadd.f32 %v1078_v3, %v316_v35  ;;  %v302_v45 = vmul.f32 %v1066_v2, %v263_v31 }
  0x25   : > { %v405_v48 = vpack.c.bf16 %v386_v38, %v385_v37  ;;  %v371_v49 = vmax.f32 %v339_v39, 0.0  ;;  %v356_v50 = vadd.f32 %v1078_v3, %v317_v40  ;;  %v303_v51 = vmul.f32 %v1066_v2, %v264_v36 }
  0x26   : > { %966 = vmatprep.mubr.msk.bf16.mxu0 %vm410_vm1, %v397_v42  ;;  %v372_v53 = vmax.f32 %v340_v43, 0.0  ;;  %v387_v54 = vmax.f32 %v355_v44, 0.0  ;;  %v341_v55 = vadd.f32 %v1078_v3, %v302_v45  ;;  %v318_v56 = vmul.f32 %v1066_v2, %v279_v41 }
  0x27   : > { %982 = vmatprep.mubr.msk.bf16.mxu1 %vm410_vm1, %v405_v48  ;;  %v388_v57 = vmax.f32 %v356_v50, 0.0  ;;  %v342_v58 = vadd.f32 %v1078_v3, %v303_v51  ;;  %v319_v59 = vmul.f32 %v1066_v2, %v280_v46  ;;  %v304_v60 = vmul.f32 %v1066_v2, %v265_v47 }
  0x28   : > { %v398_v63 = vpack.c.bf16 %v372_v53, %v371_v49  ;;  %v373_v0 = vmax.f32 %v341_v55, 0.0  ;;  %v357_v1 = vadd.f32 %v1078_v3, %v318_v56  ;;  %v305_v4 = vmul.f32 %v1066_v2, %v266_v52 }
  0x29   : > { %v406_v5 = vpack.c.bf16 %v388_v57, %v387_v54  ;;  %v374_v6 = vmax.f32 %v342_v58, 0.0  ;;  %v358_v7 = vadd.f32 %v1078_v3, %v319_v59  ;;  %v343_v8 = vadd.f32 %v1078_v3, %v304_v60 }
  0x2a   : > { %967 = vmatmul.mubr.msk.bf16.gmra.mrb[8].mxu0 %vm410_vm1, %v398_v63  ;;  %v389_v9 = vmax.f32 %v357_v1, 0.0  ;;  %v344_v10 = vadd.f32 %v1078_v3, %v305_v4  ;;  %v320_v11 = vmul.f32 %v1066_v2, %v281_v61  ;;  %v321_v12 = vmul.f32 %v1066_v2, %v282_v62 }
  0x2b   : > { %v399_v13 = vpack.c.bf16 %v374_v6, %v373_v0  ;;  %v390_v14 = vmax.f32 %v358_v7, 0.0  ;;  %v375_v15 = vmax.f32 %v343_v8, 0.0  ;;  %v1011_v54 = vmov (!%p936_p4), 0.0  }
  0x2c   : > { %983 = vmatmul.mubr.msk.bf16.gmra.mrb[8].mxu1 %vm410_vm1, %v406_v5  ;;  %v376_v16 = vmax.f32 %v344_v10, 0.0  ;;  %v359_v17 = vadd.f32 %v1078_v3, %v320_v11  ;;  %v360_v18 = vadd.f32 %v1078_v3, %v321_v12  ;;  %662 = vst.msk [vmem:[%s1549_s5] sm:$0x1] (!%p936_p4), %vm661_vm3, %v1011_v54  ;;  %663 = vst.msk [vmem:[%s1550_s6] sm:$0x1] (!%p936_p4), %vm661_vm3, %v1011_v54 }
  0x2d   : > { %970 = vmatprep.mubr.msk.bf16.mxu0 %vm410_vm1, %v399_v13  ;;  %v407_v19 = vpack.c.bf16 %v390_v14, %v389_v9 }
  0x2e   : > { %v400_v20 = vpack.c.bf16 %v376_v16, %v375_v15  ;;  %v391_v21 = vmax.f32 %v359_v17, 0.0  ;;  %v392_v22 = vmax.f32 %v360_v18, 0.0 }
  0x2f   : > { %986 = vmatprep.mubr.msk.bf16.mxu1 %vm410_vm1, %v407_v19 }
  0x30   : > { %v408_v2 = vpack.c.bf16 %v392_v22, %v391_v21 }
  0x32   : > { %971 = vmatmul.mubr.msk.bf16.gmra.mrb[12].mxu0 %vm410_vm1, %v400_v20 }
  0x34   : > { %987 = vmatmul.mubr.msk.bf16.gmra.mrb[12].mxu1 %vm410_vm1, %v408_v2 }
  0xed   : > { %v1199_v3 = vpop.f32.mrb[0].mxu0 }
  0xee   : > { %627 = vst.msk [vmem:[%s1197_s12 + $0x10] sm:$0xff] %vm624_vm2, %v1199_v3  ;;  %v1204_v23 = vpop.f32.mrb[1].mxu0 }
  0xef   : > { %v1206_v24 = vpop.f32.mrb[0].mxu1  ;;  %625 = vst.msk [vmem:[%s1197_s12] sm:$0xff] %vm624_vm2, %v1204_v23  ;;  %v1211_v25 = vpop.f32.mrb[2].mxu0 }
  0xf0   : > { %643 = vst.msk [vmem:[%s1197_s12 + $0x90] sm:$0xff] %vm624_vm2, %v1206_v24  ;;  %v1216_v26 = vpop.f32.mrb[1].mxu1  ;;  %628 = vst.msk [vmem:[%s1197_s12 + $0x18] sm:$0xff] %vm624_vm2, %v1211_v25  ;;  %v1221_v27 = vpop.f32.mrb[3].mxu0 }
  0xf1   : > { %641 = vst.msk [vmem:[%s1197_s12 + $0x80] sm:$0xff] %vm624_vm2, %v1216_v26  ;;  %v1226_v28 = vpop.f32.mrb[2].mxu1  ;;  %626 = vst.msk [vmem:[%s1197_s12 + $0x8] sm:$0xff] %vm624_vm2, %v1221_v27 }
  0xf2   : > { %644 = vst.msk [vmem:[%s1197_s12 + $0x98] sm:$0xff] %vm624_vm2, %v1226_v28  ;;  %v1234_v29 = vpop.f32.mrb[3].mxu1 }
  0xf3   : > { %642 = vst.msk [vmem:[%s1197_s12 + $0x88] sm:$0xff] %vm624_vm2, %v1234_v29 }
  0xf5   : > { %v1239_v30 = vpop.f32.mrb[4].mxu0 }
  0xf6   : > { %631 = vst.msk [vmem:[%s1197_s12 + $0x30] sm:$0xff] %vm624_vm2, %v1239_v30  ;;  %v1244_v31 = vpop.f32.mrb[5].mxu0 }
  0xf7   : > { %v1246_v32 = vpop.f32.mrb[4].mxu1  ;;  %629 = vst.msk [vmem:[%s1197_s12 + $0x20] sm:$0xff] %vm624_vm2, %v1244_v31  ;;  %v1251_v33 = vpop.f32.mrb[6].mxu0 }
  0xf8   : > { %647 = vst.msk [vmem:[%s1197_s12 + $0xb0] sm:$0xff] %vm624_vm2, %v1246_v32  ;;  %v1256_v34 = vpop.f32.mrb[5].mxu1  ;;  %632 = vst.msk [vmem:[%s1197_s12 + $0x38] sm:$0xff] %vm624_vm2, %v1251_v33  ;;  %v1261_v35 = vpop.f32.mrb[7].mxu0 }
  0xf9   : > { %645 = vst.msk [vmem:[%s1197_s12 + $0xa0] sm:$0xff] %vm624_vm2, %v1256_v34  ;;  %v1266_v36 = vpop.f32.mrb[6].mxu1  ;;  %630 = vst.msk [vmem:[%s1197_s12 + $0x28] sm:$0xff] %vm624_vm2, %v1261_v35 }
  0xfa   : > { %648 = vst.msk [vmem:[%s1197_s12 + $0xb8] sm:$0xff] %vm624_vm2, %v1266_v36  ;;  %v1274_v37 = vpop.f32.mrb[7].mxu1 }
  0xfb   : > { %646 = vst.msk [vmem:[%s1197_s12 + $0xa8] sm:$0xff] %vm624_vm2, %v1274_v37 }
  0xfd   : > { %v1279_v38 = vpop.f32.mrb[8].mxu0 }
  0xfe   : > { %635 = vst.msk [vmem:[%s1197_s12 + $0x50] sm:$0xff] %vm624_vm2, %v1279_v38  ;;  %v1284_v39 = vpop.f32.mrb[9].mxu0 }
  0xff   : > { %v1286_v40 = vpop.f32.mrb[8].mxu1  ;;  %633 = vst.msk [vmem:[%s1197_s12 + $0x40] sm:$0xff] %vm624_vm2, %v1284_v39  ;;  %v1291_v41 = vpop.f32.mrb[10].mxu0 }
 0x100   : > { %651 = vst.msk [vmem:[%s1197_s12 + $0xd0] sm:$0xff] %vm624_vm2, %v1286_v40  ;;  %v1296_v42 = vpop.f32.mrb[9].mxu1  ;;  %636 = vst.msk [vmem:[%s1197_s12 + $0x58] sm:$0xff] %vm624_vm2, %v1291_v41  ;;  %v1301_v43 = vpop.f32.mrb[11].mxu0 }
 0x101   : > { %649 = vst.msk [vmem:[%s1197_s12 + $0xc0] sm:$0xff] %vm624_vm2, %v1296_v42  ;;  %v1306_v44 = vpop.f32.mrb[10].mxu1  ;;  %634 = vst.msk [vmem:[%s1197_s12 + $0x48] sm:$0xff] %vm624_vm2, %v1301_v43 }
 0x102   : > { %652 = vst.msk [vmem:[%s1197_s12 + $0xd8] sm:$0xff] %vm624_vm2, %v1306_v44  ;;  %v1314_v45 = vpop.f32.mrb[11].mxu1 }
 0x103   : > { %650 = vst.msk [vmem:[%s1197_s12 + $0xc8] sm:$0xff] %vm624_vm2, %v1314_v45 }
 0x105   : > { %v1319_v46 = vpop.f32.mrb[12].mxu0  ;;  %660 = sbr.rel (%p936_p4) target bundleno = 268 (0x10c), region = 40 }
 0x106   : > { %639 = vst.msk [vmem:[%s1197_s12 + $0x70] sm:$0xff] %vm624_vm2, %v1319_v46  ;;  %v1324_v47 = vpop.f32.mrb[13].mxu0 }
 0x107   : > { %v1326_v48 = vpop.f32.mrb[12].mxu1  ;;  %637 = vst.msk [vmem:[%s1197_s12 + $0x60] sm:$0xff] %vm624_vm2, %v1324_v47  ;;  %v1331_v49 = vpop.f32.mrb[14].mxu0 }
 0x108   : > { %655 = vst.msk [vmem:[%s1197_s12 + $0xf0] sm:$0xff] %vm624_vm2, %v1326_v48  ;;  %v1336_v50 = vpop.f32.mrb[13].mxu1  ;;  %640 = vst.msk [vmem:[%s1197_s12 + $0x78] sm:$0xff] %vm624_vm2, %v1331_v49  ;;  %v1341_v51 = vpop.f32.mrb[15].mxu0 }
 0x109   : > { %653 = vst.msk [vmem:[%s1197_s12 + $0xe0] sm:$0xff] %vm624_vm2, %v1336_v50  ;;  %v1346_v52 = vpop.f32.mrb[14].mxu1  ;;  %638 = vst.msk [vmem:[%s1197_s12 + $0x68] sm:$0xff] %vm624_vm2, %v1341_v51 }
 0x10a   : > { %656 = vst.msk [vmem:[%s1197_s12 + $0xf8] sm:$0xff] %vm624_vm2, %v1346_v52  ;;  %v1354_v53 = vpop.f32.mrb[15].mxu1 }
 0x10b   : > { %654 = vst.msk [vmem:[%s1197_s12 + $0xe8] sm:$0xff] %vm624_vm2, %v1354_v53 }
 0x10c PF: > { %v665_v55 = vsel %vm624_vm2, %v1204_v23, 0.0  ;;  %v666_v56 = vsel %vm624_vm2, %v1221_v27, 0.0  ;;  %v668_v57 = vsel %vm624_vm2, %v1199_v3, 0.0  ;;  %v670_v59 = vsel %vm624_vm2, %v1211_v25, 0.0 }
 0x10d   : > { %v667_v58 = vadd.f32 %v666_v56, %v665_v55  ;;  %v672_v61 = vsel %vm624_vm2, %v1244_v31, 0.0  ;;  %v674_v63 = vsel %vm624_vm2, %v1261_v35, 0.0  ;;  %v676_v1 = vsel %vm624_vm2, %v1239_v30, 0.0 }
 0x10e   : > { %v678_v5 = vsel %vm624_vm2, %v1251_v33, 0.0  ;;  %v680_v7 = vsel %vm624_vm2, %v1284_v39, 0.0  ;;  %v682_v9 = vsel %vm624_vm2, %v1301_v43, 0.0  ;;  %v738_v10 = vmul.f32 %v1204_v23, %v1204_v23 }
 0x10f   : > { %v669_v60 = vadd.f32 %v668_v57, %v667_v58  ;;  %v739_v11 = vmul.f32 %v1221_v27, %v1221_v27  ;;  %v740_v13 = vmul.f32 %v1199_v3, %v1199_v3  ;;  %v684_v14 = vsel %vm624_vm2, %v1279_v38, 0.0 }
 0x110   : > { %v741_v15 = vmul.f32 %v1211_v25, %v1211_v25  ;;  %v686_v17 = vsel %vm624_vm2, %v1291_v41, 0.0  ;;  %v742_v18 = vmul.f32 %v1244_v31, %v1244_v31  ;;  %v770_v19 = vsel %vm624_vm2, %v738_v10, 0.0 }
 0x111   : > { %v671_v62 = vadd.f32 %v670_v59, %v669_v60  ;;  %v771_v20 = vsel %vm624_vm2, %v739_v11, 0.0  ;;  %v773_v2 = vsel %vm624_vm2, %v740_v13, 0.0  ;;  %v688_v3 = vsel %vm624_vm2, %v1324_v47, 0.0 }
 0x112   : > { %v772_v22 = vadd.f32 %v771_v20, %v770_v19  ;;  %v743_v23 = vmul.f32 %v1261_v35, %v1261_v35  ;;  %v775_v25 = vsel %vm624_vm2, %v741_v15, 0.0  ;;  %v690_v31 = vsel %vm624_vm2, %v1341_v51, 0.0 }
 0x113   : > { %v673_v0 = vadd.f32 %v672_v61, %v671_v62  ;;  %v744_v55 = vmul.f32 %v1239_v30, %v1239_v30  ;;  %v777_v56 = vsel %vm624_vm2, %v742_v18, 0.0  ;;  %v692_v59 = vsel %vm624_vm2, %v1319_v46, 0.0 }
 0x114   : > { %v774_v54 = vadd.f32 %v773_v2, %v772_v22  ;;  %v745_v35 = vmul.f32 %v1251_v33, %v1251_v33  ;;  %v779_v60 = vsel %vm624_vm2, %v743_v23, 0.0  ;;  %v746_v30 = vmul.f32 %v1284_v39, %v1284_v39 }
 0x115   : > { %v675_v4 = vadd.f32 %v674_v63, %v673_v0  ;;  %v694_v63 = vsel %vm624_vm2, %v1331_v49, 0.0  ;;  %v781_v0 = vsel %vm624_vm2, %v744_v55, 0.0  ;;  %v747_v33 = vmul.f32 %v1301_v43, %v1301_v43 }
 0x116   : > { %v776_v58 = vadd.f32 %v775_v25, %v774_v54  ;;  %v748_v39 = vmul.f32 %v1279_v38, %v1279_v38  ;;  %v785_v10 = vsel %vm624_vm2, %v746_v30, 0.0  ;;  %v700_v13 = vsel %vm624_vm2, %v1206_v24, 0.0 }
 0x117   : > { %v677_v6 = vadd.f32 %v676_v1, %v675_v4  ;;  %v749_v43 = vmul.f32 %v1291_v41, %v1291_v41  ;;  %v750_v38 = vmul.f32 %v1324_v47, %v1324_v47  ;;  %v751_v41 = vmul.f32 %v1341_v51, %v1341_v51 }
 0x118   : > { %v778_v62 = vadd.f32 %v777_v56, %v776_v58  ;;  %v789_v18 = vsel %vm624_vm2, %v748_v39, 0.0  ;;  %v706_v23 = vsel %vm624_vm2, %v1274_v37, 0.0  ;;  %v752_v47 = vmul.f32 %v1319_v46, %v1319_v46 }
 0x119   : > { %v679_v8 = vadd.f32 %v678_v5, %v677_v6  ;;  %v696_v5 = vsel %vm624_vm2, %v1216_v26, 0.0  ;;  %v783_v6 = vsel %vm624_vm2, %v745_v35, 0.0  ;;  %v791_v22 = vsel %vm624_vm2, %v749_v43, 0.0 }
 0x11a   : > { %v780_v4 = vadd.f32 %v779_v60, %v778_v62  ;;  %v793_v25 = vsel %vm624_vm2, %v750_v38, 0.0  ;;  %v753_v51 = vmul.f32 %v1331_v49, %v1331_v49  ;;  %v795_v55 = vsel %vm624_vm2, %v751_v41, 0.0 }
 0x11b   : > { %v681_v12 = vadd.f32 %v680_v7, %v679_v8  ;;  %v710_v58 = vsel %vm624_vm2, %v1266_v36, 0.0  ;;  %v754_v46 = vmul.f32 %v1216_v26, %v1216_v26  ;;  %v755_v49 = vmul.f32 %v1234_v29, %v1234_v29 }
 0x11c   : > { %v782_v8 = vadd.f32 %v781_v0, %v780_v4  ;;  %v799_v62 = vsel %vm624_vm2, %v753_v51, 0.0  ;;  %v714_v0 = vsel %vm624_vm2, %v1314_v45, 0.0  ;;  %v756_v26 = vmul.f32 %v1206_v24, %v1206_v24 }
 0x11d   : > { %v683_v16 = vadd.f32 %v682_v9, %v681_v12  ;;  %v698_v9 = vsel %vm624_vm2, %v1234_v29, 0.0  ;;  %v757_v29 = vmul.f32 %v1226_v28, %v1226_v28  ;;  %v758_v24 = vmul.f32 %v1256_v34, %v1256_v34 }
 0x11e   : > { %v784_v12 = vadd.f32 %v783_v6, %v782_v8  ;;  %v803_v6 = vsel %vm624_vm2, %v755_v49, 0.0  ;;  %v805_v39 = vsel %vm624_vm2, %v756_v26, 0.0  ;;  %v726_v41 = vsel %vm624_vm2, %v1346_v52, 0.0 }
 0x11f   : > { %v685_v21 = vadd.f32 %v684_v14, %v683_v16  ;;  %v787_v14 = vsel %vm624_vm2, %v747_v33, 0.0  ;;  %v716_v33 = vsel %vm624_vm2, %v1286_v40, 0.0  ;;  %vm735_vm4 = vcmask 122880  }
 0x120   : > { %v786_v16 = vadd.f32 %v785_v10, %v784_v12  ;;  %v720_v12 = vsel %vm624_vm2, %v1336_v50, 0.0 }
 0x121   : > { %v687_v27 = vadd.f32 %v686_v17, %v685_v21  ;;  %v702_v17 = vsel %vm624_vm2, %v1226_v28, 0.0  ;;  %v704_v21 = vsel %vm624_vm2, %v1256_v34, 0.0  ;;  %v759_v28 = vmul.f32 %v1274_v37, %v1274_v37 }
 0x122   : > { %v788_v20 = vadd.f32 %v787_v14, %v786_v16  ;;  %v760_v34 = vmul.f32 %v1246_v32, %v1246_v32  ;;  %v809_v16 = vsel %vm624_vm2, %v758_v24, 0.0  ;;  %v761_v37 = vmul.f32 %v1266_v36, %v1266_v36  ;;  %v737_v24 = vld [vmem:[%s1550_s6] sm:$0x1] }
 0x123   : > { %v689_v57 = vadd.f32 %v688_v3, %v687_v27 }
 0x124   : > { %v790_v3 = vadd.f32 %v789_v18, %v788_v20  ;;  %v724_v18 = vsel %vm624_vm2, %v1326_v48, 0.0 }
 0x125   : > { %v691_v61 = vadd.f32 %v690_v31, %v689_v57  ;;  %v708_v31 = vsel %vm624_vm2, %v1246_v32, 0.0  ;;  %v762_v32 = vmul.f32 %v1296_v42, %v1296_v42 }
 0x126   : > { %v792_v54 = vadd.f32 %v791_v22, %v790_v3  ;;  %v813_v22 = vsel %vm624_vm2, %v760_v34, 0.0 }
 0x127   : > { %v693_v1 = vadd.f32 %v692_v59, %v691_v61  ;;  %v797_v59 = vsel %vm624_vm2, %v752_v47, 0.0  ;;  %v712_v61 = vsel %vm624_vm2, %v1296_v42, 0.0  ;;  %v815_v47 = vsel %vm624_vm2, %v761_v37, 0.0 }
 0x128   : > { %v794_v57 = vadd.f32 %v793_v25, %v792_v54  ;;  %v817_v54 = vsel %vm624_vm2, %v762_v32, 0.0  ;;  %v765_v42 = vmul.f32 %v1306_v44, %v1306_v44 }
 0x129   : > { %v695_v7 = vadd.f32 %v694_v63, %v693_v1  ;;  %v801_v1 = vsel %vm624_vm2, %v754_v46, 0.0 }
 0x12a   : > { %v796_v60 = vadd.f32 %v795_v55, %v794_v57 }
 0x12b   : > { %v697_v11 = vadd.f32 %v696_v5, %v695_v7 }
 0x12c   : > { %v798_v30 = vadd.f32 %v797_v59, %v796_v60 }
 0x12d   : > { %v699_v15 = vadd.f32 %v698_v9, %v697_v11  ;;  %v718_v9 = vsel %vm624_vm2, %v1306_v44, 0.0  ;;  %v768_v44 = vmul.f32 %v1326_v48, %v1326_v48 }
 0x12e   : > { %v800_v5 = vadd.f32 %v799_v62, %v798_v30  ;;  %v769_v30 = vmul.f32 %v1346_v52, %v1346_v52 }
 0x12f   : > { %v701_v19 = vadd.f32 %v700_v13, %v699_v15  ;;  %v807_v13 = vsel %vm624_vm2, %v757_v29, 0.0  ;;  %v722_v15 = vsel %vm624_vm2, %v1354_v53, 0.0 }
 0x130   : > { %v802_v8 = vadd.f32 %v801_v1, %v800_v5  ;;  %v829_v1 = vsel %vm624_vm2, %v768_v44, 0.0  ;;  %v831_v5 = vsel %vm624_vm2, %v769_v30, 0.0 }
 0x131   : > { %v703_v2 = vadd.f32 %v702_v17, %v701_v19  ;;  %v811_v19 = vsel %vm624_vm2, %v759_v28, 0.0 }
 0x132   : > { %v804_v11 = vadd.f32 %v803_v6, %v802_v8 }
 0x133   : > { %v705_v27 = vadd.f32 %v704_v21, %v703_v2 }
 0x134   : > { %v806_v14 = vadd.f32 %v805_v39, %v804_v11 }
 0x135   : > { %v707_v56 = vadd.f32 %v706_v23, %v705_v27  ;;  %v763_v23 = vmul.f32 %v1314_v45, %v1314_v45  ;;  %v764_v27 = vmul.f32 %v1286_v40, %v1286_v40  ;;  %v766_v45 = vmul.f32 %v1336_v50, %v1336_v50  ;;  %v664_v50 = vld [vmem:[%s1549_s5] sm:$0x1] }
 0x136   : > { %v808_v38 = vadd.f32 %v807_v13, %v806_v14  ;;  %v767_v40 = vmul.f32 %v1354_v53, %v1354_v53 }
 0x137   : > { %v709_v35 = vadd.f32 %v708_v31, %v707_v56  ;;  %v819_v55 = vsel %vm624_vm2, %v763_v23, 0.0  ;;  %v825_v49 = vsel %vm624_vm2, %v766_v45, 0.0 }
 0x138   : > { %v810_v21 = vadd.f32 %v809_v16, %v808_v38  ;;  %v827_v53 = vsel %vm624_vm2, %v767_v40, 0.0 }
 0x139   : > { %v711_v63 = vadd.f32 %v710_v58, %v709_v35  ;;  %v821_v58 = vsel %vm624_vm2, %v764_v27, 0.0  ;;  %v823_v35 = vsel %vm624_vm2, %v765_v42, 0.0 }
 0x13a   : > { %v812_v3 = vadd.f32 %v811_v19, %v810_v21 }
 0x13b   : > { %v713_v4 = vadd.f32 %v712_v61, %v711_v63 }
 0x13c   : > { %v814_v25 = vadd.f32 %v813_v22, %v812_v3 }
 0x13d   : > { %v715_v7 = vadd.f32 %v714_v0, %v713_v4 }
 0x13e   : > { %v816_v51 = vadd.f32 %v815_v47, %v814_v25 }
 0x13f   : > { %v717_v10 = vadd.f32 %v716_v33, %v715_v7 }
 0x140   : > { %v818_v57 = vadd.f32 %v817_v54, %v816_v51 }
 0x141   : > { %v719_v43 = vadd.f32 %v718_v9, %v717_v10 }
 0x142   : > { %v820_v59 = vadd.f32 %v819_v55, %v818_v57 }
 0x143   : > { %v721_v17 = vadd.f32 %v720_v12, %v719_v43 }
 0x144   : > { %v822_v61 = vadd.f32 %v821_v58, %v820_v59 }
 0x145   : > { %v723_v20 = vadd.f32 %v722_v15, %v721_v17 }
 0x146   : > { %v824_v63 = vadd.f32 %v823_v35, %v822_v61 }
 0x147   : > { %v725_v2 = vadd.f32 %v724_v18, %v723_v20 }
 0x148   : > { %v826_v26 = vadd.f32 %v825_v49, %v824_v63 }
 0x149   : > { %v727_v36 = vadd.f32 %v726_v41, %v725_v2 }
 0x14a   : > { %v828_v48 = vadd.f32 %v827_v53, %v826_v26 }
 0x14b   : > { %v728_v31 = vrot.slane %v727_v36, 4 }
 0x14c   : > { %v830_v33 = vadd.f32 %v829_v1, %v828_v48 }
 0x14d   : > { %v729_v56 = vadd.f32 %v728_v31, %v727_v36 }
 0x14e   : > { %v832_v29 = vadd.f32 %v831_v5, %v830_v33 }
 0x14f   : > { %v730_v46 = vrot.slane %v729_v56, 2 }
 0x150   : > { %v833_v6 = vrot.slane %v832_v29, 4 }
 0x151   : > { %v731_v60 = vadd.f32 %v730_v46, %v729_v56 }
 0x152   : > { %v834_v52 = vadd.f32 %v833_v6, %v832_v29 }
 0x153   : > { %v732_v62 = vrot.slane %v731_v60, 1 }
 0x154   : > { %v835_v7 = vrot.slane %v834_v52, 2 }
 0x155   : > { %v733_v0 = vadd.f32 %v732_v62, %v731_v60 }
 0x156   : > { %v836_v8 = vadd.f32 %v835_v7, %v834_v52 }
 0x157   : > { %v734_v4 = vadd.f32 %v733_v0, %v664_v50 }
 0x158   : > { %v837_v9 = vrot.slane %v836_v8, 1 }
 0x159   : > { %736 = vst.msk [vmem:[%s1549_s5] sm:$0x1] %vm735_vm4, %v734_v4 }
 0x15a   : > { %v838_v39 = vadd.f32 %v837_v9, %v836_v8 }
 0x15c   : > { %v839_v10 = vadd.f32 %v838_v39, %v737_v24 }
 0x15e   : > { %840 = vst.msk [vmem:[%s1550_s6] sm:$0x1] %vm735_vm4, %v839_v10 }
 0x15f PF: > { %s17_s21 = sadd.s32 1, %s1009_s21  }
 0x160   : > { %p14_p5 = scmp.ge.s32.totalorder %s17_s21, 4  }
 0x162   :  { %16 = sbr.rel (!%p14_p5) target bundleno = 1 (0x1), region = 86 }

// kernel: bottleneck_forward.7
= control target key start
LH: loop header
LB: loop body
LE: loop exit
PB: predicated region body
PF: predicated region fallthrough
CT: control target
= control target key end

     0   :  { %s586_s15 = smov 0   ;;  %s819_s0 = inlined_call_operand.vmem [shape: f32[512,16], index: 0, kind: input, shape index: {}]   ;;  %s820_s1 = inlined_call_operand.vmem [shape: f32[1,16], index: 1, kind: input, shape index: {}]   ;;  %s821_s2 = inlined_call_operand.vmem [shape: f32[1,16], index: 2, kind: input, shape index: {}]   ;;  %s822_s3 = inlined_call_operand.vmem [shape: f32[512,16], index: 3, kind: input, shape index: {}]   ;;  %s823_s4 = inlined_call_operand.vmem [shape: f32[512,16], index: 4, kind: output, shape index: {}]  }
   0x1 LB: > { %s530_s16 = sadd.s32 4294967295, %s559_s15   ;;  %p534_p0 = scmp.ge.s32.totalorder %s559_s15, 1  ;;  %s559_s15 = sphi %s586_s15, %s14_s15  }
   0x2   : > { %p174_p1 = scmp.lt.s32.totalorder %s559_s15, 3 }
   0x4   : > { %p175_p2 = pnand %p534_p0, %p174_p1 }
   0x5   : > { %s535_s17 = sshll.u32 (!%p175_p2), %s530_s16, 5  ;;  %v599_v0 = vld [vmem:[%s820_s1] ss:$0 sm:$0xff] (!%p175_p2)  ;;  %vm429_vm0 = vcmask (!%p175_p2), 130048  }
   0x6   : > { %178 = sbr.rel (%p175_p2) target bundleno = 55 (0x37), region = 36  ;;  %p206_p3 = scmp.lt.s32.totalorder (!%p175_p2), %s535_s17, 63  ;;  %v617_v2 = vld [vmem:[%s821_s2] ss:$0 sm:$0xff] (!%p175_p2) }
   0xd   : > { %s825_s17 = smov (!%p206_p3, %s535_s17), 63 }
   0xe   : > { %s594_s18 = sshll.u32 %s825_s17, 3 }
   0xf   : > { %s605_s23 = scalar_lea.vmem %s819_s0, %s594_s18  ;;  %s611_s26 = scalar_lea.vmem %s822_s3, %s594_s18 }
  0x10   : > { %v223_v1 = vld [vmem:[%s605_s23] sm:$0xff]  ;;  %v224_v3 = vld [vmem:[%s605_s23 + $0x8] sm:$0xff]  ;;  %v225_v7 = vld [vmem:[%s605_s23 + $0x10] sm:$0xff]  ;;  %s647_s5 = scalar_lea.vmem %s823_s4, %s594_s18 }
  0x11   : > { %v262_v4 = vmul.f32 %v599_v0, %v223_v1  ;;  %v333_v5 = vld [vmem:[%s611_s26] sm:$0xff]  ;;  %v263_v6 = vmul.f32 %v599_v0, %v224_v3  ;;  %v334_v8 = vld [vmem:[%s611_s26 + $0x8] sm:$0xff]  ;;  %v264_v9 = vmul.f32 %v599_v0, %v225_v7  ;;  %v226_v10 = vld [vmem:[%s605_s23 + $0x18] sm:$0xff] }
  0x12   : > { %v227_v11 = vld [vmem:[%s605_s23 + $0x20] sm:$0xff]  ;;  %v335_v14 = vld [vmem:[%s611_s26 + $0x10] sm:$0xff]  ;;  %v265_v15 = vmul.f32 %v599_v0, %v226_v10  ;;  %v336_v16 = vld [vmem:[%s611_s26 + $0x18] sm:$0xff] }
  0x13   : > { %v301_v12 = vadd.f32 %v617_v2, %v262_v4  ;;  %v302_v13 = vadd.f32 %v617_v2, %v263_v6  ;;  %v266_v17 = vmul.f32 %v599_v0, %v227_v11  ;;  %v228_v18 = vld [vmem:[%s605_s23 + $0x28] sm:$0xff]  ;;  %v303_v19 = vadd.f32 %v617_v2, %v264_v9  ;;  %v337_v20 = vld [vmem:[%s611_s26 + $0x20] sm:$0xff]  ;;  %v229_v22 = vld [vmem:[%s605_s23 + $0x30] sm:$0xff] }
  0x14   : > { %v267_v21 = vmul.f32 %v599_v0, %v228_v18  ;;  %v230_v23 = vld [vmem:[%s605_s23 + $0x38] sm:$0xff]  ;;  %v304_v26 = vadd.f32 %v617_v2, %v265_v15  ;;  %v338_v28 = vld [vmem:[%s611_s26 + $0x28] sm:$0xff]  ;;  %v268_v31 = vmul.f32 %v599_v0, %v229_v22  ;;  %v231_v33 = vld [vmem:[%s605_s23 + $0x40] sm:$0xff] }
  0x15   : > { %v365_v24 = vadd.f32 %v333_v5, %v301_v12  ;;  %v366_v25 = vadd.f32 %v334_v8, %v302_v13  ;;  %v305_v27 = vadd.f32 %v617_v2, %v266_v17  ;;  %v367_v29 = vadd.f32 %v335_v14, %v303_v19  ;;  %v232_v34 = vld [vmem:[%s605_s23 + $0x48] sm:$0xff]  ;;  %v339_v39 = vld [vmem:[%s611_s26 + $0x30] sm:$0xff]  ;;  %v340_v40 = vld [vmem:[%s611_s26 + $0x38] sm:$0xff] }
  0x16   : > { %v306_v30 = vadd.f32 %v617_v2, %v267_v21  ;;  %v269_v32 = vmul.f32 %v599_v0, %v230_v23  ;;  %v368_v37 = vadd.f32 %v336_v16, %v304_v26  ;;  %v233_v41 = vld [vmem:[%s605_s23 + $0x50] sm:$0xff]  ;;  %v307_v44 = vadd.f32 %v617_v2, %v268_v31  ;;  %v234_v46 = vld [vmem:[%s605_s23 + $0x58] sm:$0xff]  ;;  %v235_v47 = vld [vmem:[%s605_s23 + $0x60] sm:$0xff] }
  0x17   : > { %v397_v35 = vmax.f32 %v365_v24, 0.0  ;;  %v398_v36 = vmax.f32 %v366_v25, 0.0  ;;  %v369_v38 = vadd.f32 %v337_v20, %v305_v27  ;;  %v399_v42 = vmax.f32 %v367_v29, 0.0  ;;  %v236_v52 = vld [vmem:[%s605_s23 + $0x68] sm:$0xff]  ;;  %v341_v56 = vld [vmem:[%s611_s26 + $0x40] sm:$0xff]  ;;  %v343_v61 = vld [vmem:[%s611_s26 + $0x50] sm:$0xff] }
  0x18   : > { %v370_v43 = vadd.f32 %v338_v28, %v306_v30  ;;  %v308_v45 = vadd.f32 %v617_v2, %v269_v32  ;;  %v400_v48 = vmax.f32 %v368_v37, 0.0  ;;  %v270_v50 = vmul.f32 %v599_v0, %v231_v33  ;;  %v342_v57 = vld [vmem:[%s611_s26 + $0x48] sm:$0xff]  ;;  %v237_v1 = vld [vmem:[%s605_s23 + $0x70] sm:$0xff]  ;;  %v238_v3 = vld [vmem:[%s605_s23 + $0x78] sm:$0xff] }
  0x19   : > { %430 = vst.msk [vmem:[%s647_s5] sm:$0xff] %vm429_vm0, %v397_v35  ;;  %431 = vst.msk [vmem:[%s647_s5 + $0x8] sm:$0xff] %vm429_vm0, %v398_v36  ;;  %v401_v49 = vmax.f32 %v369_v38, 0.0  ;;  %v271_v51 = vmul.f32 %v599_v0, %v232_v34  ;;  %v371_v54 = vadd.f32 %v339_v39, %v307_v44  ;;  %v272_v58 = vmul.f32 %v599_v0, %v233_v41  ;;  %v344_v7 = vld [vmem:[%s611_s26 + $0x58] sm:$0xff]  ;;  %v345_v8 = vld [vmem:[%s611_s26 + $0x60] sm:$0xff] }
  0x1a   : > { %432 = vst.msk [vmem:[%s647_s5 + $0x10] sm:$0xff] %vm429_vm0, %v399_v42  ;;  %v402_v53 = vmax.f32 %v370_v43, 0.0  ;;  %v372_v55 = vadd.f32 %v340_v40, %v308_v45  ;;  %433 = vst.msk [vmem:[%s647_s5 + $0x18] sm:$0xff] %vm429_vm0, %v400_v48  ;;  %v309_v59 = vadd.f32 %v617_v2, %v270_v50  ;;  %v273_v62 = vmul.f32 %v599_v0, %v234_v46  ;;  %v346_v14 = vld [vmem:[%s611_s26 + $0x68] sm:$0xff]  ;;  %v239_v19 = vld [vmem:[%s605_s23 + $0x80] sm:$0xff] }
  0x1b   : > { %434 = vst.msk [vmem:[%s647_s5 + $0x20] sm:$0xff] %vm429_vm0, %v401_v49  ;;  %v310_v60 = vadd.f32 %v617_v2, %v271_v51  ;;  %v274_v63 = vmul.f32 %v599_v0, %v235_v47  ;;  %v403_v4 = vmax.f32 %v371_v54, 0.0  ;;  %v311_v6 = vadd.f32 %v617_v2, %v272_v58  ;;  %v240_v20 = vld [vmem:[%s605_s23 + $0x88] sm:$0xff]  ;;  %v347_v25 = vld [vmem:[%s611_s26 + $0x70] sm:$0xff]  ;;  %v348_v26 = vld [vmem:[%s611_s26 + $0x78] sm:$0xff] }
  0x1c   : > { %435 = vst.msk [vmem:[%s647_s5 + $0x28] sm:$0xff] %vm429_vm0, %v402_v53  ;;  %v404_v5 = vmax.f32 %v372_v55, 0.0  ;;  %v275_v9 = vmul.f32 %v599_v0, %v236_v52  ;;  %v373_v10 = vadd.f32 %v341_v56, %v309_v59  ;;  %v312_v12 = vadd.f32 %v617_v2, %v273_v62  ;;  %v241_v27 = vld [vmem:[%s605_s23 + $0x90] sm:$0xff]  ;;  %v242_v32 = vld [vmem:[%s605_s23 + $0x98] sm:$0xff]  ;;  %v243_v33 = vld [vmem:[%s605_s23 + $0xa0] sm:$0xff] }
  0x1d   : > { %v374_v11 = vadd.f32 %v342_v57, %v310_v60  ;;  %v313_v13 = vadd.f32 %v617_v2, %v274_v63  ;;  %436 = vst.msk [vmem:[%s647_s5 + $0x30] sm:$0xff] %vm429_vm0, %v403_v4  ;;  %v375_v15 = vadd.f32 %v343_v61, %v311_v6  ;;  %v276_v17 = vmul.f32 %v599_v0, %v237_v1  ;;  %v244_v38 = vld [vmem:[%s605_s23 + $0xa8] sm:$0xff]  ;;  %v349_v42 = vld [vmem:[%s611_s26 + $0x80] sm:$0xff]  ;;  %v351_v47 = vld [vmem:[%s611_s26 + $0x90] sm:$0xff] }
  0x1e   : > { %437 = vst.msk [vmem:[%s647_s5 + $0x38] sm:$0xff] %vm429_vm0, %v404_v5  ;;  %v314_v16 = vadd.f32 %v617_v2, %v275_v9  ;;  %v277_v18 = vmul.f32 %v599_v0, %v238_v3  ;;  %v405_v21 = vmax.f32 %v373_v10, 0.0  ;;  %v376_v23 = vadd.f32 %v344_v7, %v312_v12  ;;  %v350_v43 = vld [vmem:[%s611_s26 + $0x88] sm:$0xff]  ;;  %v245_v50 = vld [vmem:[%s605_s23 + $0xb0] sm:$0xff]  ;;  %v246_v51 = vld [vmem:[%s605_s23 + $0xb8] sm:$0xff] }
  0x1f   : > { %v406_v22 = vmax.f32 %v374_v11, 0.0  ;;  %v377_v24 = vadd.f32 %v345_v8, %v313_v13  ;;  %v407_v28 = vmax.f32 %v375_v15, 0.0  ;;  %v315_v30 = vadd.f32 %v617_v2, %v276_v17  ;;  %v352_v55 = vld [vmem:[%s611_s26 + $0x98] sm:$0xff]  ;;  %v353_v56 = vld [vmem:[%s611_s26 + $0xa0] sm:$0xff]  ;;  %v354_v62 = vld [vmem:[%s611_s26 + $0xa8] sm:$0xff] }
  0x20   : > { %v378_v29 = vadd.f32 %v346_v14, %v314_v16  ;;  %v316_v31 = vadd.f32 %v617_v2, %v277_v18  ;;  %438 = vst.msk [vmem:[%s647_s5 + $0x40] sm:$0xff] %vm429_vm0, %v405_v21  ;;  %v408_v34 = vmax.f32 %v376_v23, 0.0  ;;  %v278_v36 = vmul.f32 %v599_v0, %v239_v19  ;;  %v247_v5 = vld [vmem:[%s605_s23 + $0xc0] sm:$0xff]  ;;  %v248_v6 = vld [vmem:[%s605_s23 + $0xc8] sm:$0xff]  ;;  %v355_v11 = vld [vmem:[%s611_s26 + $0xb0] sm:$0xff] }
  0x21   : > { %439 = vst.msk [vmem:[%s647_s5 + $0x48] sm:$0xff] %vm429_vm0, %v406_v22  ;;  %v409_v35 = vmax.f32 %v377_v24, 0.0  ;;  %v279_v37 = vmul.f32 %v599_v0, %v240_v20  ;;  %440 = vst.msk [vmem:[%s647_s5 + $0x50] sm:$0xff] %vm429_vm0, %v407_v28  ;;  %v379_v40 = vadd.f32 %v347_v25, %v315_v30  ;;  %v280_v44 = vmul.f32 %v599_v0, %v241_v27  ;;  %v356_v12 = vld [vmem:[%s611_s26 + $0xb8] sm:$0xff]  ;;  %v249_v13 = vld [vmem:[%s605_s23 + $0xd0] sm:$0xff] }
  0x22   : > { %v410_v39 = vmax.f32 %v378_v29, 0.0  ;;  %v380_v41 = vadd.f32 %v348_v26, %v316_v31  ;;  %441 = vst.msk [vmem:[%s647_s5 + $0x58] sm:$0xff] %vm429_vm0, %v408_v34  ;;  %v317_v45 = vadd.f32 %v617_v2, %v278_v36  ;;  %v281_v48 = vmul.f32 %v599_v0, %v242_v32  ;;  %v250_v18 = vld [vmem:[%s605_s23 + $0xd8] sm:$0xff]  ;;  %v251_v19 = vld [vmem:[%s605_s23 + $0xe0] sm:$0xff]  ;;  %v252_v24 = vld [vmem:[%s605_s23 + $0xe8] sm:$0xff] }
  0x23   : > { %442 = vst.msk [vmem:[%s647_s5 + $0x60] sm:$0xff] %vm429_vm0, %v409_v35  ;;  %v318_v46 = vadd.f32 %v617_v2, %v279_v37  ;;  %v282_v49 = vmul.f32 %v599_v0, %v243_v33  ;;  %v411_v52 = vmax.f32 %v379_v40, 0.0  ;;  %v319_v54 = vadd.f32 %v617_v2, %v280_v44  ;;  %v357_v28 = vld [vmem:[%s611_s26 + $0xc0] sm:$0xff]  ;;  %v358_v29 = vld [vmem:[%s611_s26 + $0xc8] sm:$0xff]  ;;  %v359_v33 = vld [vmem:[%s611_s26 + $0xd0] sm:$0xff] }
  0x24   : > { %443 = vst.msk [vmem:[%s647_s5 + $0x68] sm:$0xff] %vm429_vm0, %v410_v39  ;;  %v412_v53 = vmax.f32 %v380_v41, 0.0  ;;  %v283_v57 = vmul.f32 %v599_v0, %v244_v38  ;;  %v381_v58 = vadd.f32 %v349_v42, %v317_v45  ;;  %v320_v60 = vadd.f32 %v617_v2, %v281_v48  ;;  %v253_v36 = vld [vmem:[%s605_s23 + $0xf0] sm:$0xff]  ;;  %v254_v37 = vld [vmem:[%s605_s23 + $0xf8] sm:$0xff]  ;;  %v361_v42 = vld [vmem:[%s611_s26 + $0xe0] sm:$0xff] }
  0x25   : > { %v382_v59 = vadd.f32 %v350_v43, %v318_v46  ;;  %v321_v61 = vadd.f32 %v617_v2, %v282_v49  ;;  %444 = vst.msk [vmem:[%s647_s5 + $0x70] sm:$0xff] %vm429_vm0, %v411_v52  ;;  %v383_v63 = vadd.f32 %v351_v47, %v319_v54  ;;  %v284_v3 = vmul.f32 %v599_v0, %v245_v50  ;;  %v360_v41 = vld [vmem:[%s611_s26 + $0xd8] sm:$0xff]  ;;  %v362_v48 = vld [vmem:[%s611_s26 + $0xe8] sm:$0xff] }
  0x26   : > { %445 = vst.msk [vmem:[%s647_s5 + $0x78] sm:$0xff] %vm429_vm0, %v412_v53  ;;  %v322_v1 = vadd.f32 %v617_v2, %v283_v57  ;;  %v285_v4 = vmul.f32 %v599_v0, %v246_v51  ;;  %v413_v7 = vmax.f32 %v381_v58, 0.0  ;;  %v384_v9 = vadd.f32 %v352_v55, %v320_v60  ;;  %v363_v57 = vld [vmem:[%s611_s26 + $0xf0] sm:$0xff]  ;;  %v364_v58 = vld [vmem:[%s611_s26 + $0xf8] sm:$0xff] }
  0x27   : > { %v414_v8 = vmax.f32 %v382_v59, 0.0  ;;  %v385_v10 = vadd.f32 %v353_v56, %v321_v61  ;;  %v415_v14 = vmax.f32 %v383_v63, 0.0  ;;  %v323_v16 = vadd.f32 %v617_v2, %v284_v3 }
  0x28   : > { %v386_v15 = vadd.f32 %v354_v62, %v322_v1  ;;  %v324_v17 = vadd.f32 %v617_v2, %v285_v4  ;;  %446 = vst.msk [vmem:[%s647_s5 + $0x80] sm:$0xff] %vm429_vm0, %v413_v7  ;;  %v416_v20 = vmax.f32 %v384_v9, 0.0  ;;  %v286_v22 = vmul.f32 %v599_v0, %v247_v5 }
  0x29   : > { %447 = vst.msk [vmem:[%s647_s5 + $0x88] sm:$0xff] %vm429_vm0, %v414_v8  ;;  %v417_v21 = vmax.f32 %v385_v10, 0.0  ;;  %v287_v23 = vmul.f32 %v599_v0, %v248_v6  ;;  %448 = vst.msk [vmem:[%s647_s5 + $0x90] sm:$0xff] %vm429_vm0, %v415_v14  ;;  %v387_v26 = vadd.f32 %v355_v11, %v323_v16  ;;  %v288_v30 = vmul.f32 %v599_v0, %v249_v13 }
  0x2a   : > { %v418_v25 = vmax.f32 %v386_v15, 0.0  ;;  %v388_v27 = vadd.f32 %v356_v12, %v324_v17  ;;  %449 = vst.msk [vmem:[%s647_s5 + $0x98] sm:$0xff] %vm429_vm0, %v416_v20  ;;  %v325_v31 = vadd.f32 %v617_v2, %v286_v22  ;;  %v289_v34 = vmul.f32 %v599_v0, %v250_v18 }
  0x2b   : > { %450 = vst.msk [vmem:[%s647_s5 + $0xa0] sm:$0xff] %vm429_vm0, %v417_v21  ;;  %v326_v32 = vadd.f32 %v617_v2, %v287_v23  ;;  %v290_v35 = vmul.f32 %v599_v0, %v251_v19  ;;  %v419_v38 = vmax.f32 %v387_v26, 0.0  ;;  %v327_v40 = vadd.f32 %v617_v2, %v288_v30 }
  0x2c   : > { %451 = vst.msk [vmem:[%s647_s5 + $0xa8] sm:$0xff] %vm429_vm0, %v418_v25  ;;  %v420_v39 = vmax.f32 %v388_v27, 0.0  ;;  %v291_v43 = vmul.f32 %v599_v0, %v252_v24  ;;  %v389_v44 = vadd.f32 %v357_v28, %v325_v31  ;;  %v328_v46 = vadd.f32 %v617_v2, %v289_v34 }
  0x2d   : > { %v390_v45 = vadd.f32 %v358_v29, %v326_v32  ;;  %v329_v47 = vadd.f32 %v617_v2, %v290_v35  ;;  %452 = vst.msk [vmem:[%s647_s5 + $0xb0] sm:$0xff] %vm429_vm0, %v419_v38  ;;  %v391_v49 = vadd.f32 %v359_v33, %v327_v40  ;;  %v292_v51 = vmul.f32 %v599_v0, %v253_v36 }
  0x2e   : > { %453 = vst.msk [vmem:[%s647_s5 + $0xb8] sm:$0xff] %vm429_vm0, %v420_v39  ;;  %v330_v50 = vadd.f32 %v617_v2, %v291_v43  ;;  %v293_v52 = vmul.f32 %v599_v0, %v254_v37  ;;  %v421_v53 = vmax.f32 %v389_v44, 0.0  ;;  %v392_v55 = vadd.f32 %v360_v41, %v328_v46 }
  0x2f   : > { %v422_v54 = vmax.f32 %v390_v45, 0.0  ;;  %v393_v56 = vadd.f32 %v361_v42, %v329_v47  ;;  %v423_v59 = vmax.f32 %v391_v49, 0.0  ;;  %v331_v61 = vadd.f32 %v617_v2, %v292_v51 }
  0x30   : > { %v394_v60 = vadd.f32 %v362_v48, %v330_v50  ;;  %v332_v62 = vadd.f32 %v617_v2, %v293_v52  ;;  %454 = vst.msk [vmem:[%s647_s5 + $0xc0] sm:$0xff] %vm429_vm0, %v421_v53  ;;  %v424_v0 = vmax.f32 %v392_v55, 0.0 }
  0x31   : > { %455 = vst.msk [vmem:[%s647_s5 + $0xc8] sm:$0xff] %vm429_vm0, %v422_v54  ;;  %v425_v63 = vmax.f32 %v393_v56, 0.0  ;;  %456 = vst.msk [vmem:[%s647_s5 + $0xd0] sm:$0xff] %vm429_vm0, %v423_v59  ;;  %v395_v3 = vadd.f32 %v363_v57, %v331_v61 }
  0x32   : > { %v426_v1 = vmax.f32 %v394_v60, 0.0  ;;  %v396_v4 = vadd.f32 %v364_v58, %v332_v62  ;;  %457 = vst.msk [vmem:[%s647_s5 + $0xd8] sm:$0xff] %vm429_vm0, %v424_v0 }
  0x33   : > { %458 = vst.msk [vmem:[%s647_s5 + $0xe0] sm:$0xff] %vm429_vm0, %v425_v63  ;;  %v427_v5 = vmax.f32 %v395_v3, 0.0 }
  0x34   : > { %459 = vst.msk [vmem:[%s647_s5 + $0xe8] sm:$0xff] %vm429_vm0, %v426_v1  ;;  %v428_v6 = vmax.f32 %v396_v4, 0.0 }
  0x35   : > { %460 = vst.msk [vmem:[%s647_s5 + $0xf0] sm:$0xff] %vm429_vm0, %v427_v5 }
  0x36   : > { %461 = vst.msk [vmem:[%s647_s5 + $0xf8] sm:$0xff] %vm429_vm0, %v428_v6 }
  0x37 PF: > { %s14_s15 = sadd.s32 1, %s559_s15  }
  0x38   : > { %p11_p4 = scmp.ge.s32.totalorder %s14_s15, 4  }
  0x3a   :  { %13 = sbr.rel (!%p11_p4) target bundleno = 1 (0x1), region = 69 }

// kernel: bottleneck_forward.5
= control target key start
LH: loop header
LB: loop body
LE: loop exit
PB: predicated region body
PF: predicated region fallthrough
CT: control target
= control target key end

     0   :  { %s4031_s21 = smov 0   ;;  %s5373_s0 = inlined_call_operand.vmem [shape: f32[2,18,18,4], index: 0, kind: input, shape index: {}]   ;;  %s5374_s1 = inlined_call_operand.vmem [shape: f32[1,4], index: 1, kind: input, shape index: {}]   ;;  %s5375_s2 = inlined_call_operand.vmem [shape: f32[1,4], index: 2, kind: input, shape index: {}]   ;;  %s5376_s3 = inlined_call_operand.vmem [shape: bf16[9,4,4], index: 3, kind: input, shape index: {}]   ;;  %s5377_s4 = inlined_call_operand.vmem [shape: f32[512,4], index: 4, kind: output, shape index: {0}]   ;;  %s5378_s5 = inlined_call_operand.vmem [shape: f32[1,4], index: 5, kind: output, shape index: {1}]   ;;  %s5379_s6 = inlined_call_operand.vmem [shape: f32[1,4], index: 6, kind: output, shape index: {2}]  }
   0x1 LB: > { %s4037_s22 = sadd.s32 4294967295, %s3991_s21   ;;  %p3086_p0 = scmp.ge.s32.totalorder %s3991_s21, 1  ;;  %s3991_s21 = sphi %s4031_s21, %s17_s21  }
   0x2   : > { %p207_p1 = scmp.lt.s32.totalorder %s3991_s21, 3 }
   0x4   : > { %p208_p2 = pnand %p3086_p0, %p207_p1 }
   0x6   : > { %211 = sbr.rel (%p208_p2) target bundleno = 626 (0x272), region = 36 }
   0xd   : > { %v3092_v0 = vld [vmem:[%s5376_s3 + $0x2] sm:$0x3]  ;;  %vm800_vm0 = vcmask 1041408   ;;  %v3158_v1 = vld [vmem:[%s5376_s3 + $0x8] sm:$0x3]  ;;  %v479_v2 = vlaneseq  ;;  %v5380_v5 = vmov 0.0  }
   0xe   : > { %3962 = vmatprep.subr.msk.bf16.mxu1 %vm800_vm0, %v3092_v0  ;;  %3966 = vmatprep.subr.msk.bf16.mxu0 %vm800_vm0, %v3158_v1  ;;  %v802_v3 = vsel %vm800_vm0, %v3092_v0, 0  ;;  %v4051_v4 = vsel %vm800_vm0, %v3158_v1, 0  ;;  %v621_v6 = vrot.slane %v5380_v5, 1  ;;  %p237_p3 = scmp.lt.s32.totalorder %s4037_s22, 1  ;;  %vm751_vm1 = vcmask 31744   ;;  %s3088_s30 = sshll.u32 %s4037_s22, 5 }
   0xf   : > { %5410 = vst [vmem:[#allocation2_spill] sm:$0xff] %v4051_v4  ;;  %3399 = vmatpush3.bf16.msra.mxu1 %v802_v3  ;;  %3535 = vmatpush3.bf16.msra.mxu0 %v4051_v4  ;;  %v4056_v7 = vshrl.u32 %v479_v2, 7  ;;  %v571_v9 = vld [vmem:[%s5376_s3] sm:$0x3]  ;;  %v3175_v10 = vld [vmem:[%s5376_s3 + $0xa] sm:$0x3] }
  0x10   : > { %v4058_v8 = vpack.c.bf16 %v621_v6, %v621_v6  ;;  %s238_s27 = scalar_select %p237_p3, %s4037_s22, 1  ;;  %3963 = vmatprep.subr.msk.bf16.mxu1 %vm800_vm0, %v571_v9  ;;  %3968 = vmatprep.subr.msk.bf16.mxu0 %vm800_vm0, %v3175_v10  ;;  %v4074_v11 = vld [vmem:[%s5374_s1] ss:$0 sm:$0xff]  ;;  %v4082_v13 = vld [vmem:[%s5376_s3 + $0xc] sm:$0x3]  ;;  %vm620_vm3 = vcmask 1046528  }
  0x11   : > { %v4077_v12 = vadd.s32 16, %v4056_v7  ;;  %v4092_v14 = vld [vmem:[%s5375_s2] ss:$0 sm:$0xff]  ;;  %vm483_vm2 = vcmp.ge.s32.totalorder %v4056_v7, 1  ;;  %v4099_v18 = vsel %vm800_vm0, %v571_v9, 0  ;;  %v4102_v19 = vsel %vm800_vm0, %v3175_v10, 0 }
  0x12   : > { %5411 = vst [vmem:[#allocation3_spill] sm:$0xff] %v4058_v8  ;;  %3400 = vmatprep.mubr.msk.bf16.mxu1 %vm751_vm1, %v4058_v8  ;;  %s3972_s8 = smul.u32 432, %s238_s27  ;;  %v4112_v26 = vsel %vm800_vm0, %v4082_v13, 0  ;;  %vm1177_vm5 = vcmask 1045504   ;;  %p243_p4 = scmp.lt.s32.totalorder %s3088_s30, 63 }
  0x13   : > { %vm494_vm4 = vcmp.le.s32.totalorder %v4077_v12, 16  ;;  %p3242_p5 = scmp.ne.s32.totalorder %s4037_s22, 0 }
  0x14   : > { %s4087_s15 = scalar_lea.vmem %s5373_s0, %s3972_s8  ;;  %s5450_s30 = smov (!%p243_p4, %s3088_s30), 63  ;;  %vm2834_vm6 = vcmask (!%p3242_p5), 24576  }
  0x15   : > { %v252_v15 = vld [vmem:[%s4087_s15 + $0x18] sm:$0xff]  ;;  %v253_v16 = vld [vmem:[%s4087_s15 + $0x20] sm:$0xff]  ;;  %v254_v17 = vld [vmem:[%s4087_s15 + $0x28] sm:$0x3]  ;;  %s3089_s7 = sshll.u32 %s5450_s30, 3 }
  0x16   : > { %v313_v20 = vmul.f32 %v4074_v11, %v252_v15  ;;  %v314_v21 = vmul.f32 %v4074_v11, %v253_v16  ;;  %v315_v22 = vmul.f32 %v4074_v11, %v254_v17  ;;  %v255_v23 = vld [vmem:[%s4087_s15 + $0x30] sm:$0xff]  ;;  %v256_v24 = vld [vmem:[%s4087_s15 + $0x38] sm:$0xff]  ;;  %v257_v25 = vld [vmem:[%s4087_s15 + $0x40] sm:$0x3]  ;;  %s5027_s10 = scalar_lea.vmem %s5377_s4, %s3089_s7 }
  0x17   : > { %v316_v27 = vmul.f32 %v4074_v11, %v255_v23  ;;  %v317_v28 = vmul.f32 %v4074_v11, %v256_v24  ;;  %v318_v29 = vmul.f32 %v4074_v11, %v257_v25  ;;  %v258_v30 = vld [vmem:[%s4087_s15 + $0x48] sm:$0xff]  ;;  %v259_v31 = vld [vmem:[%s4087_s15 + $0x50] sm:$0xff]  ;;  %v260_v32 = vld [vmem:[%s4087_s15 + $0x58] sm:$0x3] }
  0x18   : > { %v374_v33 = vadd.f32 %v4092_v14, %v313_v20  ;;  %v375_v34 = vadd.f32 %v4092_v14, %v314_v21  ;;  %v376_v35 = vadd.f32 %v4092_v14, %v315_v22  ;;  %v319_v36 = vmul.f32 %v4074_v11, %v258_v30  ;;  %v261_v61 = vld [vmem:[%s4087_s15 + $0x60] sm:$0xff]  ;;  %v262_v2 = vld [vmem:[%s4087_s15 + $0x68] sm:$0xff]  ;;  %v263_v3 = vld [vmem:[%s4087_s15 + $0x70] sm:$0x3] }
  0x19   : > { %v377_v37 = vadd.f32 %v4092_v14, %v316_v27  ;;  %v378_v38 = vadd.f32 %v4092_v14, %v317_v28  ;;  %v379_v39 = vadd.f32 %v4092_v14, %v318_v29  ;;  %v320_v40 = vmul.f32 %v4074_v11, %v259_v31  ;;  %v264_v6 = vld [vmem:[%s4087_s15 + $0x78] sm:$0xff]  ;;  %v265_v17 = vld [vmem:[%s4087_s15 + $0x80] sm:$0xff]  ;;  %v266_v28 = vld [vmem:[%s4087_s15 + $0x88] sm:$0x3] }
  0x1a   : > { %v428_v41 = vmax.f32 %v374_v33, 0.0  ;;  %v4129_v42 = vmax.f32 %v375_v34, 0.0  ;;  %v430_v43 = vmax.f32 %v376_v35, 0.0  ;;  %v321_v44 = vmul.f32 %v4074_v11, %v260_v32  ;;  %v4185_v30 = vld [vmem:[%s5376_s3 + $0x4] sm:$0x3] }
  0x1b   : > { %v431_v45 = vmax.f32 %v377_v37, 0.0  ;;  %v4132_v46 = vmax.f32 %v378_v38, 0.0  ;;  %v433_v47 = vmax.f32 %v379_v39, 0.0  ;;  %v380_v48 = vadd.f32 %v4092_v14, %v319_v36 }
  0x1c   : > { %v4137_v49 = vsel %vm483_vm2, %v428_v41, 0.0  ;;  %v4141_v50 = vsel %vm494_vm4, %v430_v43, 0.0  ;;  %v627_v51 = vrot.slane %v4129_v42, 1  ;;  %v381_v52 = vadd.f32 %v4092_v14, %v320_v40 }
  0x1d   : > { %v626_v53 = vrot.slane %v4137_v49, 1  ;;  %v629_v54 = vrot.slane %v4141_v50, 1  ;;  %v4149_v55 = vsel %vm483_vm2, %v431_v45, 0.0  ;;  %v4153_v56 = vsel %vm494_vm4, %v433_v47, 0.0 }
  0x1e   : > { %v631_v57 = vrot.slane %v4149_v55, 1  ;;  %v632_v58 = vrot.slane %v4132_v46, 1  ;;  %v634_v59 = vrot.slane %v4153_v56, 1  ;;  %v1188_v60 = vrot.slane %v4149_v55, 2 }
  0x1f   : > { %v628_v62 = vsel %vm620_vm3, %v626_v53, %v627_v51  ;;  %v630_v63 = vsel %vm620_vm3, %v627_v51, %v629_v54  ;;  %v1189_v0 = vrot.slane %v4132_v46, 2  ;;  %v1191_v1 = vrot.slane %v4153_v56, 2  ;;  %v268_v53 = vld [vmem:[%s4087_s15 + $0x98] sm:$0xff] }
  0x20   : > { %v734_v9 = vpack.c.bf16 %v630_v63, %v628_v62  ;;  %v633_v10 = vsel %vm620_vm3, %v631_v57, %v632_v58  ;;  %v635_v15 = vsel %vm620_vm3, %v632_v58, %v634_v59  ;;  %v382_v16 = vadd.f32 %v4092_v14, %v321_v44 }
  0x21   : > { %v4171_v20 = vpack.c.bf16 %v635_v15, %v633_v10  ;;  %v434_v21 = vmax.f32 %v380_v48, 0.0  ;;  %v4173_v22 = vmax.f32 %v381_v52, 0.0  ;;  %v322_v23 = vmul.f32 %v4074_v11, %v261_v61  ;;  %v267_v52 = vld [vmem:[%s4087_s15 + $0x90] sm:$0xff]  ;;  %v269_v61 = vld [vmem:[%s4087_s15 + $0xa0] sm:$0x3] }
  0x22   : > { %3401 = vmatmul.mubr.msk.bf16.vlgmr.msra.gmra.mrb[0].mxu1 %vm751_vm1, %v734_v9  ;;  %3536 = vmatprep.mubr.msk.bf16.mxu0 %vm751_vm1, %v734_v9  ;;  %v436_v24 = vmax.f32 %v382_v16, 0.0  ;;  %v323_v25 = vmul.f32 %v4074_v11, %v262_v2  ;;  %v324_v27 = vmul.f32 %v4074_v11, %v263_v3  ;;  %v325_v29 = vmul.f32 %v4074_v11, %v264_v6  ;;  %v270_v16 = vld [vmem:[%s4087_s15 + $0xa8] sm:$0xff] }
  0x23   : > { %5412 = vst [vmem:[#allocation4_spill] sm:$0xff] %v4171_v20  ;;  %3433 = vmatpush3.bf16.msra.mxu1 %v4099_v18  ;;  %3537 = vmatmul.mubr.msk.bf16.vlgmr.msra.gmra.mrb[0].mxu0 %vm751_vm1, %v4171_v20  ;;  %v4192_v31 = vsel %vm483_vm2, %v434_v21, 0.0  ;;  %v637_v32 = vrot.slane %v4173_v22, 1  ;;  %v383_v33 = vadd.f32 %v4092_v14, %v322_v23  ;;  %v326_v34 = vmul.f32 %v4074_v11, %v265_v17  ;;  %v271_v17 = vld [vmem:[%s4087_s15 + $0xb0] sm:$0xff] }
  0x24   : > { %3569 = vmatpush3.bf16.msra.mxu0 %v4102_v19  ;;  %3404 = vmatprep.mubr.msk.bf16.mxu1 %vm751_vm1, %v4171_v20  ;;  %v4202_v18 = vsel %vm494_vm4, %v436_v24, 0.0  ;;  %v636_v35 = vrot.slane %v4192_v31, 1  ;;  %v384_v36 = vadd.f32 %v4092_v14, %v323_v25  ;;  %v385_v37 = vadd.f32 %v4092_v14, %v324_v27  ;;  %v272_v27 = vld [vmem:[%s4087_s15 + $0xb8] sm:$0x3]  ;;  %v295_v20 = vld [vmem:[%s4087_s15 + $0x170] sm:$0xff] }
  0x25   : > { %v639_v38 = vrot.slane %v4202_v18, 1  ;;  %v437_v39 = vmax.f32 %v383_v33, 0.0  ;;  %v327_v19 = vmul.f32 %v4074_v11, %v266_v28  ;;  %v386_v40 = vadd.f32 %v4092_v14, %v325_v29  ;;  %3969 = vmatprep.subr.msk.bf16.mxu0 %vm800_vm0, %v4082_v13  ;;  %3964 = vmatprep.subr.msk.bf16.mxu1 %vm800_vm0, %v4185_v30 }
  0x26   : > { %v638_v41 = vsel %vm620_vm3, %v636_v35, %v637_v32  ;;  %v4215_v43 = vmax.f32 %v384_v36, 0.0  ;;  %v439_v44 = vmax.f32 %v385_v37, 0.0  ;;  %v387_v45 = vadd.f32 %v4092_v14, %v326_v34 }
  0x27   : > { %v640_v47 = vsel %vm620_vm3, %v637_v32, %v639_v38  ;;  %v4221_v48 = vsel %vm483_vm2, %v437_v39, 0.0  ;;  %v388_v51 = vadd.f32 %v4092_v14, %v327_v19  ;;  %v440_v13 = vmax.f32 %v386_v40, 0.0  ;;  %v273_v38 = vld [vmem:[%s4087_s15 + $0xc0] sm:$0xff] }
  0x28   : > { %v4226_v54 = vpack.c.bf16 %v640_v47, %v638_v41  ;;  %v4230_v57 = vsel %vm494_vm4, %v439_v44, 0.0  ;;  %v641_v58 = vrot.slane %v4221_v48, 1  ;;  %v642_v59 = vrot.slane %v4215_v43, 1 }
  0x29   : > { %v644_v62 = vrot.slane %v4230_v57, 1  ;;  %v4236_v63 = vmax.f32 %v387_v45, 0.0  ;;  %v442_v2 = vmax.f32 %v388_v51, 0.0  ;;  %v4240_v3 = vsel %vm483_vm2, %v440_v13, 0.0  ;;  %v274_v13 = vld [vmem:[%s4087_s15 + $0xc8] sm:$0xff] }
  0x2a   : > { %5413 = vst [vmem:[#allocation5_spill] sm:$0xff] %v4226_v54  ;;  %3405 = vmatmul.mubr.msk.bf16.gmra.mrb[4].mxu1 %vm751_vm1, %v4226_v54  ;;  %3540 = vmatprep.mubr.msk.bf16.mxu0 %vm751_vm1, %v4226_v54  ;;  %v643_v6 = vsel %vm620_vm3, %v641_v58, %v642_v59  ;;  %v646_v9 = vrot.slane %v4240_v3, 1  ;;  %v328_v10 = vmul.f32 %v4074_v11, %v267_v52  ;;  %v275_v52 = vld [vmem:[%s4087_s15 + $0xd0] sm:$0x3]  ;;  %v1199_v5 = vrot.slane %v4215_v43, 2  ;;  %v294_v54 = vld [vmem:[%s4087_s15 + $0x168] sm:$0xff] }
  0x2b   : > { %v329_v15 = vmul.f32 %v4074_v11, %v268_v53  ;;  %v645_v21 = vsel %vm620_vm3, %v642_v59, %v644_v62  ;;  %v4255_v23 = vsel %vm494_vm4, %v442_v2, 0.0  ;;  %v647_v24 = vrot.slane %v4236_v63, 1 }
  0x2c   : > { %v330_v25 = vmul.f32 %v4074_v11, %v269_v61  ;;  %v4260_v28 = vpack.c.bf16 %v645_v21, %v643_v6  ;;  %v649_v29 = vrot.slane %v4255_v23, 1  ;;  %v389_v32 = vadd.f32 %v4092_v14, %v328_v10 }
  0x2d   : > { %v390_v33 = vadd.f32 %v4092_v14, %v329_v15  ;;  %v648_v34 = vsel %vm620_vm3, %v646_v9, %v647_v24  ;;  %v331_v36 = vmul.f32 %v4074_v11, %v270_v16  ;;  %v332_v37 = vmul.f32 %v4074_v11, %v271_v17 }
  0x2e   : > { %5414 = vst [vmem:[#allocation6_spill] sm:$0xff] %v4260_v28  ;;  %v391_v35 = vadd.f32 %v4092_v14, %v330_v25  ;;  %3541 = vmatmul.mubr.msk.bf16.gmra.mrb[4].mxu0 %vm751_vm1, %v4260_v28  ;;  %3408 = vmatprep.mubr.msk.bf16.mxu1 %vm751_vm1, %v4260_v28  ;;  %v650_v39 = vsel %vm620_vm3, %v647_v24, %v649_v29  ;;  %v443_v19 = vmax.f32 %v389_v32, 0.0  ;;  %v276_v29 = vld [vmem:[%s4087_s15 + $0xd8] sm:$0xff]  ;;  %v277_v32 = vld [vmem:[%s4087_s15 + $0xe0] sm:$0xff]  ;;  %v1201_v4 = vrot.slane %v4230_v57, 2 }
  0x2f   : > { %v4275_v40 = vmax.f32 %v390_v33, 0.0  ;;  %v333_v41 = vmul.f32 %v4074_v11, %v272_v27  ;;  %v4278_v44 = vpack.c.bf16 %v650_v39, %v648_v34  ;;  %v392_v47 = vadd.f32 %v4092_v14, %v331_v36 }
  0x30   : > { %v445_v45 = vmax.f32 %v391_v35, 0.0  ;;  %v393_v51 = vadd.f32 %v4092_v14, %v332_v37  ;;  %v4286_v53 = vsel %vm483_vm2, %v443_v19, 0.0  ;;  %v334_v61 = vmul.f32 %v4074_v11, %v273_v38  ;;  %v278_v37 = vld [vmem:[%s4087_s15 + $0xe8] sm:$0x3] }
  0x31   : > { %5415 = vst [vmem:[#allocation7_spill] sm:$0xff] %v4278_v44  ;;  %v652_v58 = vrot.slane %v4275_v40, 1  ;;  %v394_v59 = vadd.f32 %v4092_v14, %v333_v41  ;;  %3544 = vmatprep.mubr.msk.bf16.mxu0 %vm751_vm1, %v4278_v44  ;;  %v651_v2 = vrot.slane %v4286_v53, 1  ;;  %v446_v6 = vmax.f32 %v392_v47, 0.0 }
  0x32   : > { %v4295_v62 = vsel %vm494_vm4, %v445_v45, 0.0  ;;  %v4298_v9 = vmax.f32 %v393_v51, 0.0  ;;  %3409 = vmatmul.mubr.msk.bf16.gmra.mrb[8].mxu1 %vm751_vm1, %v4278_v44  ;;  %v335_v16 = vmul.f32 %v4074_v11, %v274_v13  ;;  %v336_v17 = vmul.f32 %v4074_v11, %v275_v52 }
  0x33   : > { %v654_v10 = vrot.slane %v4295_v62, 1  ;;  %v448_v15 = vmax.f32 %v394_v59, 0.0  ;;  %v653_v21 = vsel %vm620_vm3, %v651_v2, %v652_v58  ;;  %v4308_v24 = vsel %vm483_vm2, %v446_v6, 0.0 }
  0x34   : > { %v657_v25 = vrot.slane %v4298_v9, 1  ;;  %v395_v27 = vadd.f32 %v4092_v14, %v334_v61  ;;  %v656_v35 = vrot.slane %v4308_v24, 1  ;;  %v396_v36 = vadd.f32 %v4092_v14, %v335_v16 }
  0x35   : > { %v655_v33 = vsel %vm620_vm3, %v652_v58, %v654_v10  ;;  %v4317_v34 = vsel %vm494_vm4, %v448_v15, 0.0  ;;  %v397_v19 = vadd.f32 %v4092_v14, %v336_v17  ;;  %v337_v51 = vmul.f32 %v4074_v11, %v276_v29 }
  0x36   : > { %v4322_v38 = vpack.c.bf16 %v655_v33, %v653_v21  ;;  %v659_v39 = vrot.slane %v4317_v34, 1  ;;  %v449_v41 = vmax.f32 %v395_v27, 0.0  ;;  %v658_v45 = vsel %vm620_vm3, %v656_v35, %v657_v25 }
  0x37   : > { %v4327_v47 = vmax.f32 %v396_v36, 0.0  ;;  %v338_v13 = vmul.f32 %v4074_v11, %v277_v32  ;;  %v451_v58 = vmax.f32 %v397_v19, 0.0  ;;  %v339_v61 = vmul.f32 %v4074_v11, %v278_v37  ;;  %v279_v19 = vld [vmem:[%s4087_s15 + $0xf0] sm:$0xff] }
  0x38   : > { %5416 = vst [vmem:[#allocation8_spill] sm:$0xff] %v4322_v38  ;;  %3545 = vmatmul.mubr.msk.bf16.gmra.mrb[8].mxu0 %vm751_vm1, %v4322_v38  ;;  %3412 = vmatprep.mubr.msk.bf16.mxu1 %vm751_vm1, %v4322_v38  ;;  %v660_v52 = vsel %vm620_vm3, %v657_v25, %v659_v39  ;;  %v4338_v59 = vsel %vm483_vm2, %v449_v41, 0.0  ;;  %v398_v15 = vadd.f32 %v4092_v14, %v337_v51  ;;  %v1183_v25 = vrot.slane %v4137_v49, 2 }
  0x39   : > { %v4341_v2 = vpack.c.bf16 %v660_v52, %v658_v45  ;;  %v661_v6 = vrot.slane %v4338_v59, 1  ;;  %v662_v10 = vrot.slane %v4327_v47, 1  ;;  %v4348_v16 = vsel %vm494_vm4, %v451_v58, 0.0 }
  0x3a   : > { %v399_v17 = vadd.f32 %v4092_v14, %v338_v13  ;;  %v400_v21 = vadd.f32 %v4092_v14, %v339_v61  ;;  %v664_v29 = vrot.slane %v4348_v16, 1  ;;  %v452_v32 = vmax.f32 %v398_v15, 0.0  ;;  %v280_v13 = vld [vmem:[%s4087_s15 + $0xf8] sm:$0xff] }
  0x3b   : > { %5417 = vst [vmem:[#allocation9_spill] sm:$0xff] %v4341_v2  ;;  %3413 = vmatmul.mubr.msk.bf16.gmra.mrb[12].mxu1 %vm751_vm1, %v4341_v2  ;;  %3548 = vmatprep.mubr.msk.bf16.mxu0 %vm751_vm1, %v4341_v2  ;;  %v663_v27 = vsel %vm620_vm3, %v661_v6, %v662_v10  ;;  %v1184_v33 = vrot.slane %v4129_v42, 2  ;;  %v1186_v37 = vrot.slane %v4141_v50, 2  ;;  %v1190_v39 = vsel %vm1177_vm5, %v1188_v60, %v1189_v0  ;;  %v281_v6 = vld [vmem:[%s4087_s15 + $0x100] sm:$0x3] }
  0x3c   : > { %v4360_v35 = vmax.f32 %v399_v17, 0.0  ;;  %v454_v36 = vmax.f32 %v400_v21, 0.0  ;;  %v665_v41 = vsel %vm620_vm3, %v662_v10, %v664_v29  ;;  %v4372_v45 = vsel %vm483_vm2, %v452_v32, 0.0  ;;  %v282_v10 = vld [vmem:[%s4087_s15 + $0x108] sm:$0xff]  ;;  %v284_v21 = vld [vmem:[%s4087_s15 + $0x118] sm:$0x3] }
  0x3d   : > { %v1185_v51 = vsel %vm1177_vm5, %v1183_v25, %v1184_v33  ;;  %v1192_v50 = vsel %vm1177_vm5, %v1189_v0, %v1191_v1  ;;  %v4381_v52 = vpack.c.bf16 %v665_v41, %v663_v27  ;;  %v666_v58 = vrot.slane %v4372_v45, 1  ;;  %v283_v1 = vld [vmem:[%s4087_s15 + $0x110] sm:$0xff] }
  0x3e   : > { %v4385_v60 = vsel %vm494_vm4, %v454_v36, 0.0  ;;  %v667_v61 = vrot.slane %v4360_v35, 1  ;;  %v1187_v56 = vsel %vm1177_vm5, %v1184_v33, %v1186_v37  ;;  %v4393_v17 = vpack.c.bf16 %v1192_v50, %v1190_v39 }
  0x3f   : > { %5418 = vst [vmem:[#allocation10_spill] sm:$0xff] %v4381_v52  ;;  %v669_v15 = vrot.slane %v4385_v60, 1  ;;  %v340_v0 = vmul.f32 %v4074_v11, %v279_v19  ;;  %3416 = vmatprep.mubr.msk.bf16.mxu1 %vm751_vm1, %v4381_v52  ;;  %v4403_v27 = vpack.c.bf16 %v1187_v56, %v1185_v51  ;;  %v341_v29 = vmul.f32 %v4074_v11, %v280_v13 }
  0x40   : > { %3549 = vmatmul.mubr.msk.bf16.gmra.mrb[12].mxu0 %vm751_vm1, %v4381_v52  ;;  %v668_v25 = vsel %vm620_vm3, %v666_v58, %v667_v61  ;;  %v1193_v32 = vrot.slane %v4192_v31, 2  ;;  %v342_v36 = vmul.f32 %v4074_v11, %v281_v6  ;;  %v343_v39 = vmul.f32 %v4074_v11, %v282_v10  ;;  %v288_v52 = vld [vmem:[%s4087_s15 + $0x138] sm:$0xff] }
  0x41   : > { %v670_v33 = vsel %vm620_vm3, %v667_v61, %v669_v15  ;;  %v401_v37 = vadd.f32 %v4092_v14, %v340_v0  ;;  %3570 = vmatprep.mubr.msk.bf16.mxu0 %vm751_vm1, %v4403_v27  ;;  %v402_v41 = vadd.f32 %v4092_v14, %v341_v29  ;;  %v344_v51 = vmul.f32 %v4074_v11, %v283_v1 }
  0x42   : > { %v4411_v19 = vpack.c.bf16 %v670_v33, %v668_v25  ;;  %v345_v50 = vmul.f32 %v4074_v11, %v284_v21  ;;  %v403_v13 = vadd.f32 %v4092_v14, %v342_v36  ;;  %v404_v61 = vadd.f32 %v4092_v14, %v343_v39 }
  0x43   : > { %v455_v58 = vmax.f32 %v401_v37, 0.0  ;;  %v1194_v6 = vrot.slane %v4173_v22, 2  ;;  %v4423_v10 = vmax.f32 %v402_v41, 0.0  ;;  %v405_v15 = vadd.f32 %v4092_v14, %v344_v51  ;;  %v4440_v41 = vld [vmem:[%s5376_s3 + $0xe] sm:$0x3] }
  0x44   : > { %5419 = vst [vmem:[#allocation11_spill] sm:$0xff] %v4411_v19  ;;  %3417 = vmatmul.mubr.msk.bf16.gmra.mrb[16].mxu1 %vm751_vm1, %v4411_v19  ;;  %v406_v56 = vadd.f32 %v4092_v14, %v345_v50  ;;  %v1196_v0 = vrot.slane %v4202_v18, 2  ;;  %v457_v1 = vmax.f32 %v403_v13, 0.0  ;;  %v458_v25 = vmax.f32 %v404_v61, 0.0  ;;  %v285_v13 = vld [vmem:[%s4087_s15 + $0x120] sm:$0xff] }
  0x45   : > { %v4430_v21 = vsel %vm483_vm2, %v455_v58, 0.0  ;;  %v1195_v29 = vsel %vm1177_vm5, %v1193_v32, %v1194_v6  ;;  %v672_v36 = vrot.slane %v4423_v10, 1  ;;  %v4435_v37 = vmax.f32 %v405_v15, 0.0  ;;  %v286_v58 = vld [vmem:[%s4087_s15 + $0x128] sm:$0xff] }
  0x46   : > { %v671_v33 = vrot.slane %v4430_v21, 1  ;;  %v460_v39 = vmax.f32 %v406_v56, 0.0  ;;  %v4444_v18 = vsel %vm494_vm4, %v457_v1, 0.0  ;;  %v4448_v32 = vsel %vm483_vm2, %v458_v25, 0.0 }
  0x47   : > { %v1197_v51 = vsel %vm1177_vm5, %v1194_v6, %v1196_v0  ;;  %v1198_v50 = vrot.slane %v4221_v48, 2  ;;  %v674_v15 = vrot.slane %v4444_v18, 1  ;;  %v676_v1 = vrot.slane %v4448_v32, 1 }
  0x48   : > { %3571 = vmatmul.mubr.msk.bf16.vlgmr.msra.gmra.mrb[0].mxu0 %vm751_vm1, %v4393_v17  ;;  %v673_v61 = vsel %vm620_vm3, %v671_v33, %v672_v36  ;;  %v4460_v56 = vsel %vm494_vm4, %v460_v39, 0.0  ;;  %v677_v6 = vrot.slane %v4435_v37, 1  ;;  %v4466_v25 = vpack.c.bf16 %v1197_v51, %v1195_v29  ;;  %v287_v33 = vld [vmem:[%s4087_s15 + $0x130] sm:$0x3] }
  0x49   : > { %3603 = vmatpush3.bf16.msra.mxu0 %v4112_v26  ;;  %v679_v0 = vrot.slane %v4460_v56, 1  ;;  %v675_v8 = vsel %vm620_vm3, %v672_v36, %v674_v15  ;;  %v346_v39 = vmul.f32 %v4074_v11, %v285_v13  ;;  %v347_v19 = vmul.f32 %v4074_v11, %v286_v58  ;;  %v289_v26 = vld [vmem:[%s4087_s15 + $0x140] sm:$0xff]  ;;  %v290_v36 = vld [vmem:[%s4087_s15 + $0x148] sm:$0x3] }
  0x4a   : > { %3970 = vmatprep.subr.msk.bf16.mxu0 %vm800_vm0, %v4440_v41  ;;  %v4478_v2 = vpack.c.bf16 %v675_v8, %v673_v61  ;;  %v678_v29 = vsel %vm620_vm3, %v676_v1, %v677_v6  ;;  %3574 = vmatprep.mubr.msk.bf16.mxu0 %vm751_vm1, %v4466_v25  ;;  %v1200_v57 = vsel %vm1177_vm5, %v1198_v50, %v1199_v5  ;;  %v1211_v44 = vrot.slane %v4295_v62, 2 }
  0x4b   : > { %v680_v51 = vsel %vm620_vm3, %v677_v6, %v679_v0  ;;  %v1202_v58 = vsel %vm1177_vm5, %v1199_v5, %v1201_v4  ;;  %v348_v15 = vmul.f32 %v4074_v11, %v287_v33  ;;  %v407_v38 = vadd.f32 %v4092_v14, %v346_v39 }
  0x4c   : > { %5420 = vst [vmem:[#allocation12_spill] sm:$0xff] %v4478_v2  ;;  %v4486_v13 = vpack.c.bf16 %v680_v51, %v678_v29  ;;  %3420 = vmatprep.mubr.msk.bf16.mxu1 %vm751_vm1, %v4478_v2  ;;  %v4493_v8 = vpack.c.bf16 %v1202_v58, %v1200_v57  ;;  %v408_v61 = vadd.f32 %v4092_v14, %v347_v19  ;;  %v1203_v0 = vrot.slane %v4240_v3, 2 }
  0x4d   : > { %v349_v1 = vmul.f32 %v4074_v11, %v288_v52  ;;  %v350_v50 = vmul.f32 %v4074_v11, %v289_v26  ;;  %v409_v4 = vadd.f32 %v4092_v14, %v348_v15  ;;  %v461_v5 = vmax.f32 %v407_v38, 0.0 }
  0x4e   : > { %5421 = vst [vmem:[#allocation13_spill] sm:$0xff] %v4486_v13  ;;  %5422 = vst [vmem:[#allocation14_spill] sm:$0xff] %v4493_v8  ;;  %3421 = vmatmul.mubr.msk.bf16.gmra.mrb[20].mxu1 %vm751_vm1, %v4486_v13  ;;  %v351_v6 = vmul.f32 %v4074_v11, %v290_v36  ;;  %v4503_v33 = vmax.f32 %v408_v61, 0.0  ;;  %v1204_v52 = vrot.slane %v4236_v63, 2  ;;  %v1206_v51 = vrot.slane %v4255_v23, 2  ;;  %v292_v13 = vld [vmem:[%s4087_s15 + $0x158] sm:$0xff] }
  0x4f   : > { %v410_v39 = vadd.f32 %v4092_v14, %v349_v1  ;;  %v411_v19 = vadd.f32 %v4092_v14, %v350_v50  ;;  %v463_v26 = vmax.f32 %v409_v4, 0.0  ;;  %v4512_v38 = vsel %vm483_vm2, %v461_v5, 0.0 }
  0x50   : > { %3575 = vmatmul.mubr.msk.bf16.gmra.mrb[4].mxu0 %vm751_vm1, %v4493_v8  ;;  %v412_v29 = vadd.f32 %v4092_v14, %v351_v6  ;;  %v681_v57 = vrot.slane %v4512_v38, 1  ;;  %v682_v36 = vrot.slane %v4503_v33, 1  ;;  %v1205_v50 = vsel %vm1177_vm5, %v1203_v0, %v1204_v52 }
  0x51   : > { %v464_v58 = vmax.f32 %v410_v39, 0.0  ;;  %v4518_v15 = vmax.f32 %v411_v19, 0.0  ;;  %v4522_v61 = vsel %vm494_vm4, %v463_v26, 0.0  ;;  %v1207_v4 = vsel %vm1177_vm5, %v1204_v52, %v1206_v51  ;;  %v291_v19 = vld [vmem:[%s4087_s15 + $0x150] sm:$0xff]  ;;  %v293_v51 = vld [vmem:[%s4087_s15 + $0x160] sm:$0x3] }
  0x52   : > { %v466_v1 = vmax.f32 %v412_v29, 0.0  ;;  %v683_v5 = vsel %vm620_vm3, %v681_v57, %v682_v36  ;;  %v684_v23 = vrot.slane %v4522_v61, 1  ;;  %v4540_v52 = vpack.c.bf16 %v1207_v4, %v1205_v50 }
  0x53   : > { %v4530_v6 = vsel %vm483_vm2, %v464_v58, 0.0  ;;  %v687_v39 = vrot.slane %v4518_v15, 1  ;;  %v1208_v29 = vrot.slane %v4286_v53, 2  ;;  %v1209_v2 = vrot.slane %v4275_v40, 2 }
  0x54   : > { %v4537_v26 = vsel %vm494_vm4, %v466_v1, 0.0  ;;  %v686_v0 = vrot.slane %v4530_v6, 1  ;;  %5423 = vst [vmem:[#allocation15_spill] sm:$0xff] %v4540_v52  ;;  %v685_v57 = vsel %vm620_vm3, %v682_v36, %v684_v23  ;;  %3578 = vmatprep.mubr.msk.bf16.mxu0 %vm751_vm1, %v4540_v52  ;;  %v352_v50 = vmul.f32 %v4074_v11, %v291_v19  ;;  %v296_v36 = vld [vmem:[%s4087_s15 + $0x178] sm:$0x3] }
  0x55   : > { %v689_v58 = vrot.slane %v4537_v26, 1  ;;  %v4548_v28 = vpack.c.bf16 %v685_v57, %v683_v5  ;;  %v353_v4 = vmul.f32 %v4074_v11, %v292_v13  ;;  %v1210_v8 = vsel %vm1177_vm5, %v1208_v29, %v1209_v2 }
  0x56   : > { %v688_v1 = vsel %vm620_vm3, %v686_v0, %v687_v39  ;;  %v1212_v62 = vsel %vm1177_vm5, %v1209_v2, %v1211_v44  ;;  %v354_v5 = vmul.f32 %v4074_v11, %v293_v51  ;;  %v413_v13 = vadd.f32 %v4092_v14, %v352_v50 }
  0x57   : > { %5424 = vst [vmem:[#allocation16_spill] sm:$0xff] %v4548_v28  ;;  %v690_v23 = vsel %vm620_vm3, %v687_v39, %v689_v58  ;;  %3424 = vmatprep.mubr.msk.bf16.mxu1 %vm751_vm1, %v4548_v28  ;;  %v4566_v57 = vpack.c.bf16 %v1212_v62, %v1210_v8  ;;  %v414_v19 = vadd.f32 %v4092_v14, %v353_v4  ;;  %v1213_v51 = vrot.slane %v4308_v24, 2 }
  0x58   : > { %v4564_v0 = vpack.c.bf16 %v690_v23, %v688_v1  ;;  %v415_v52 = vadd.f32 %v4092_v14, %v354_v5  ;;  %v355_v39 = vmul.f32 %v4074_v11, %v294_v54  ;;  %v356_v29 = vmul.f32 %v4074_v11, %v295_v20 }
  0x59   : > { %5426 = vst [vmem:[#allocation18_spill] sm:$0xff] %v4566_v57  ;;  %v357_v44 = vmul.f32 %v4074_v11, %v296_v36  ;;  %3579 = vmatmul.mubr.msk.bf16.gmra.mrb[8].mxu0 %vm751_vm1, %v4566_v57  ;;  %v467_v2 = vmax.f32 %v413_v13, 0.0  ;;  %v4578_v8 = vmax.f32 %v414_v19, 0.0  ;;  %v1214_v58 = vrot.slane %v4298_v9, 2 }
  0x5a   : > { %5425 = vst [vmem:[#allocation17_spill] sm:$0xff] %v4564_v0  ;;  %3425 = vmatmul.mubr.msk.bf16.gmra.mrb[24].mxu1 %vm751_vm1, %v4564_v0  ;;  %v469_v1 = vmax.f32 %v415_v52, 0.0  ;;  %v416_v54 = vadd.f32 %v4092_v14, %v355_v39  ;;  %v417_v20 = vadd.f32 %v4092_v14, %v356_v29  ;;  %v1216_v62 = vrot.slane %v4317_v34, 2 }
  0x5b   : > { %v418_v50 = vadd.f32 %v4092_v14, %v357_v44  ;;  %v4587_v4 = vsel %vm483_vm2, %v467_v2, 0.0  ;;  %v692_v36 = vrot.slane %v4578_v8, 1  ;;  %v1215_v23 = vsel %vm1177_vm5, %v1213_v51, %v1214_v58 }
  0x5c   : > { %v4594_v5 = vsel %vm494_vm4, %v469_v1, 0.0  ;;  %v691_v52 = vrot.slane %v4587_v4, 1  ;;  %v470_v13 = vmax.f32 %v416_v54, 0.0  ;;  %v4597_v19 = vmax.f32 %v417_v20, 0.0 }
  0x5d   : > { %v694_v39 = vrot.slane %v4594_v5, 1  ;;  %v472_v29 = vmax.f32 %v418_v50, 0.0  ;;  %v1217_v44 = vsel %vm1177_vm5, %v1214_v58, %v1216_v62  ;;  %v1218_v2 = vrot.slane %v4338_v59, 2 }
  0x5e   : > { %v693_v51 = vsel %vm620_vm3, %v691_v52, %v692_v36  ;;  %v4605_v34 = vsel %vm483_vm2, %v470_v13, 0.0  ;;  %v697_v1 = vrot.slane %v4597_v19, 1  ;;  %v4608_v0 = vpack.c.bf16 %v1217_v44, %v1215_v23 }
  0x5f   : > { %v695_v54 = vsel %vm620_vm3, %v692_v36, %v694_v39  ;;  %v4613_v20 = vsel %vm494_vm4, %v472_v29, 0.0  ;;  %v696_v58 = vrot.slane %v4605_v34, 1  ;;  %v1219_v50 = vrot.slane %v4327_v47, 2 }
  0x60   : > { %5427 = vst [vmem:[#allocation19_spill] sm:$0xff] %v4608_v0  ;;  %v4617_v62 = vpack.c.bf16 %v695_v54, %v693_v51  ;;  %v699_v52 = vrot.slane %v4613_v20, 1  ;;  %3582 = vmatprep.mubr.msk.bf16.mxu0 %vm751_vm1, %v4608_v0  ;;  %v1221_v23 = vrot.slane %v4348_v16, 2  ;;  %v1223_v39 = vrot.slane %v4372_v45, 2 }
  0x61   : > { %v698_v13 = vsel %vm620_vm3, %v696_v58, %v697_v1  ;;  %v1220_v36 = vsel %vm1177_vm5, %v1218_v2, %v1219_v50  ;;  %v1224_v29 = vrot.slane %v4360_v35, 2  ;;  %v1226_v54 = vrot.slane %v4385_v60, 2 }
  0x62   : > { %5428 = vst [vmem:[#allocation20_spill] sm:$0xff] %v4617_v62  ;;  %3428 = vmatprep.mubr.msk.bf16.mxu1 %vm751_vm1, %v4617_v62  ;;  %v700_v44 = vsel %vm620_vm3, %v697_v1, %v699_v52  ;;  %v1222_v51 = vsel %vm1177_vm5, %v1219_v50, %v1221_v23  ;;  %v1228_v28 = vrot.slane %v4430_v21, 2  ;;  %v1229_v0 = vrot.slane %v4423_v10, 2 }
  0x63   : > { %v4633_v16 = vpack.c.bf16 %v700_v44, %v698_v13  ;;  %v4635_v58 = vpack.c.bf16 %v1222_v51, %v1220_v36  ;;  %v1225_v2 = vsel %vm1177_vm5, %v1223_v39, %v1224_v29  ;;  %v1227_v57 = vsel %vm1177_vm5, %v1224_v29, %v1226_v54  ;;  %v297_v54 = vld [vmem:[%s4087_s15 + $0x180] sm:$0xff] }
  0x64   : > { %v1231_v62 = vrot.slane %v4444_v18, 2  ;;  %v4645_v60 = vpack.c.bf16 %v1227_v57, %v1225_v2  ;;  %v1230_v1 = vsel %vm1177_vm5, %v1228_v28, %v1229_v0  ;;  %v1233_v50 = vrot.slane %v4448_v32, 2 }
  0x65   : > { %3429 = vmatmul.mubr.msk.bf16.gmra.mrb[28].mxu1 %vm751_vm1, %v4633_v16  ;;  %3583 = vmatmul.mubr.msk.bf16.gmra.mrb[12].mxu0 %vm751_vm1, %v4635_v58  ;;  %v1234_v52 = vrot.slane %v4435_v37, 2  ;;  %v3994_v23 = vmov 0.0|0.0   ;;  %v1236_v18 = vrot.slane %v4460_v56, 2  ;;  %v1238_v36 = vrot.slane %v4512_v38, 2 }
  0x66   : > { %3434 = vmatprep.mubr.bf16.mxu1 %v3994_v23  ;;  %v1232_v13 = vsel %vm1177_vm5, %v1229_v0, %v1231_v62  ;;  %v1239_v39 = vrot.slane %v4503_v33, 2  ;;  %v4657_v57 = vpack.c.bf16 %v4129_v42, %v4137_v49  ;;  %3586 = vmatprep.mubr.msk.bf16.mxu0 %vm751_vm1, %v4645_v60  ;;  %v1241_v29 = vrot.slane %v4522_v61, 2 }
  0x67   : > { %v4661_v28 = vpack.c.bf16 %v1232_v13, %v1230_v1  ;;  %v4666_v56 = vpack.c.bf16 %v4215_v43, %v4221_v48  ;;  %v1235_v0 = vsel %vm1177_vm5, %v1233_v50, %v1234_v52  ;;  %v1237_v62 = vsel %vm1177_vm5, %v1234_v52, %v1236_v18  ;;  %v298_v50 = vld [vmem:[%s4087_s15 + $0x188] sm:$0xff] }
  0x68   : > { %v1240_v42 = vsel %vm1177_vm5, %v1238_v36, %v1239_v39  ;;  %v4673_v49 = vpack.c.bf16 %v4236_v63, %v4240_v3  ;;  %v1242_v44 = vsel %vm1177_vm5, %v1239_v39, %v1241_v29  ;;  %v1243_v61 = vrot.slane %v4530_v6, 2 }
  0x69   : > { %v1244_v51 = vrot.slane %v4518_v15, 2  ;;  %v1246_v43 = vrot.slane %v4537_v26, 2  ;;  %v4681_v48 = vpack.c.bf16 %v4132_v46, %v4149_v55  ;;  %v1357_v2 = vsel %vm800_vm0, %v4185_v30, 0  ;;  %v299_v26 = vld [vmem:[%s4087_s15 + $0x190] sm:$0x3] }
  0x6a   : > { %v4686_v1 = vpack.c.bf16 %v1237_v62, %v1235_v0  ;;  %v4690_v63 = vpack.c.bf16 %v4275_v40, %v4286_v53  ;;  %v4694_v3 = vpack.c.bf16 %v4298_v9, %v4308_v24  ;;  %v4700_v46 = vpack.c.bf16 %v4173_v22, %v4192_v31  ;;  %v4714_v9 = vld [vmem:[%s5376_s3 + $0x6] sm:$0x3] }
  0x6b   : > { %v4702_v55 = vpack.c.bf16 %v1242_v44, %v1240_v42  ;;  %v1245_v30 = vsel %vm1177_vm5, %v1243_v61, %v1244_v51  ;;  %v1247_v40 = vsel %vm1177_vm5, %v1244_v51, %v1246_v43  ;;  %v358_v53 = vmul.f32 %v4074_v11, %v297_v54 }
  0x6c   : > { %v1248_v22 = vrot.slane %v4587_v4, 2  ;;  %v359_v31 = vmul.f32 %v4074_v11, %v298_v50  ;;  %v360_v24 = vmul.f32 %v4074_v11, %v299_v26  ;;  %v4723_v52 = vpack.c.bf16 %v4327_v47, %v4338_v59 }
  0x6d   : > { %3435 = vmatmul.mubr.msk.bf16.vlgmr.msra.gmra.mrb[0].mxu1 %vm751_vm1, %v4657_v57  ;;  %3587 = vmatmul.mubr.msk.bf16.gmra.mrb[16].mxu0 %vm751_vm1, %v4661_v28  ;;  %v1249_v13 = vrot.slane %v4578_v8, 2  ;;  %v1251_v18 = vrot.slane %v4594_v5, 2  ;;  %v419_v36 = vadd.f32 %v4092_v14, %v358_v53  ;;  %v4732_v39 = vpack.c.bf16 %v4360_v35, %v4372_v45  ;;  %v3225_v53 = vld [vmem:[%s5376_s3 + $0x10] sm:$0x3] }
  0x6e   : > { %3467 = vmatpush3.bf16.msra.mxu1 %v1357_v2  ;;  %3438 = vmatprep.mubr.msk.bf16.mxu1 %vm751_vm1, %v4681_v48  ;;  %v4734_v29 = vpack.c.bf16 %v1247_v40, %v1245_v30  ;;  %v420_v11 = vadd.f32 %v4092_v14, %v359_v31  ;;  %v421_v47 = vadd.f32 %v4092_v14, %v360_v24  ;;  %v2394_v40 = vsel %vm800_vm0, %v4440_v41, 0 }
  0x6f   : > { %3590 = vmatprep.mubr.msk.bf16.mxu0 %vm751_vm1, %v4686_v1  ;;  %v4740_v59 = vpack.c.bf16 %v4423_v10, %v4430_v21  ;;  %3965 = vmatprep.subr.msk.bf16.mxu1 %vm800_vm0, %v4714_v9  ;;  %v473_v5 = vmax.f32 %v419_v36, 0.0  ;;  %v4746_v0 = vpack.c.bf16 %v4435_v37, %v4448_v32  ;;  %v4750_v35 = vpack.c.bf16 %v4503_v33, %v4512_v38  ;;  %v5432_v36 = vld [vmem:[#allocation18_spill] sm:$0xff] }
  0x70   : > { %v4754_v45 = vpack.c.bf16 %v4518_v15, %v4530_v6  ;;  %v4756_v14 = vmax.f32 %v420_v11, 0.0  ;;  %v475_v10 = vmax.f32 %v421_v47, 0.0  ;;  %v4760_v21 = vpack.c.bf16 %v4578_v8, %v4587_v4  ;;  %v5433_v11 = vld [vmem:[#allocation19_spill] sm:$0xff]  ;;  %v5434_v47 = vld [vmem:[#allocation4_spill] sm:$0xff] }
  0x71   : > { %v4764_v62 = vpack.c.bf16 %v4597_v19, %v4605_v34  ;;  %v1253_v37 = vrot.slane %v4605_v34, 2  ;;  %v1254_v32 = vrot.slane %v4597_v19, 2  ;;  %v1256_v33 = vrot.slane %v4613_v20, 2 }
  0x72   : > { %v4771_v38 = vsel %vm483_vm2, %v473_v5, 0.0  ;;  %v551_v15 = vsel %vm494_vm4, %v475_v10, 0.0  ;;  %v1967_v8 = vrot.slane %v4756_v14, 2  ;;  %v1250_v7 = vsel %vm1177_vm5, %v1248_v22, %v1249_v13  ;;  %v5436_v10 = vld [vmem:[#allocation6_spill] sm:$0xff] }
  0x73   : > { %v1966_v6 = vrot.slane %v4771_v38, 2  ;;  %v1969_v4 = vrot.slane %v551_v15, 2  ;;  %v1252_v12 = vsel %vm1177_vm5, %v1249_v13, %v1251_v18  ;;  %v1255_v34 = vsel %vm1177_vm5, %v1253_v37, %v1254_v32  ;;  %v3984_v13 = vld [vmem:[%s5376_s3 + $0x8] sm:$0x3]  ;;  %v5438_v37 = vld [vmem:[#allocation8_spill] sm:$0xff] }
  0x74   : > { %v1257_v20 = vsel %vm1177_vm5, %v1254_v32, %v1256_v33  ;;  %v4793_v61 = vpack.c.bf16 %v1252_v12, %v1250_v7  ;;  %v1757_v43 = vrot.slane %v4771_v38, 1  ;;  %v1758_v54 = vrot.slane %v4756_v14, 1  ;;  %v5431_v18 = vld [vmem:[#allocation15_spill] sm:$0xff]  ;;  %v5439_v32 = vld [vmem:[#allocation9_spill] sm:$0xff]  ;;  %v5440_v33 = vld [vmem:[#allocation10_spill] sm:$0xff] }
  0x75   : > { %3439 = vmatmul.mubr.msk.bf16.gmra.mrb[4].mxu1 %vm751_vm1, %v4700_v46  ;;  %3591 = vmatmul.mubr.msk.bf16.gmra.mrb[20].mxu0 %vm751_vm1, %v4702_v55  ;;  %v1968_v19 = vsel %vm1177_vm5, %v1966_v6, %v1967_v8  ;;  %v1970_v42 = vsel %vm1177_vm5, %v1967_v8, %v1969_v4  ;;  %v4795_v51 = vpack.c.bf16 %v1257_v20, %v1255_v34  ;;  %v1760_v2 = vrot.slane %v551_v15, 1  ;;  %v5442_v15 = vld [vmem:[#allocation12_spill] sm:$0xff]  ;;  %v5443_v6 = vld [vmem:[#allocation13_spill] sm:$0xff]  ;;  %v5444_v8 = vld [vmem:[#allocation2_spill] sm:$0xff] }
  0x76   : > { %3442 = vmatprep.mubr.msk.bf16.mxu1 %vm751_vm1, %v4666_v56  ;;  %3594 = vmatprep.mubr.msk.bf16.mxu0 %vm751_vm1, %v4734_v29  ;;  %v4791_v44 = vpack.c.bf16 %v1970_v42, %v1968_v19  ;;  %v1759_v50 = vsel %vm620_vm3, %v1757_v43, %v1758_v54  ;;  %v5429_v41 = vmov 0.0   ;;  %v1559_v24 = vsel %vm800_vm0, %v4714_v9, 0  ;;  %v5445_v4 = vld [vmem:[#allocation16_spill] sm:$0xff] }
  0x77   : > { %v1761_v26 = vsel %vm620_vm3, %v1758_v54, %v1760_v2  ;;  %v1178_v22 = vrot.slane %v5429_v41, 2  ;;  %v1552_v9 = vpack.c.bf16 %v4756_v14, %v4771_v38  ;;  %v2603_v5 = vsel %vm800_vm0, %v3225_v53, 0  ;;  %v5435_v14 = vld [vmem:[#allocation5_spill] sm:$0xff]  ;;  %v5441_v38 = vld [vmem:[#allocation11_spill] sm:$0xff] }
  0x78   : > { %v4809_v30 = vpack.c.bf16 %v1761_v26, %v1759_v50 }
  0x79   : > { %v4850_v31 = vpack.c.bf16 %v1178_v22, %v1178_v22 }
  0x7d   : > { %3443 = vmatmul.mubr.msk.bf16.gmra.mrb[8].mxu1 %vm751_vm1, %v4673_v49  ;;  %3595 = vmatmul.mubr.msk.bf16.gmra.mrb[24].mxu0 %vm751_vm1, %v4793_v61 }
  0x7e   : > { %3446 = vmatprep.mubr.msk.bf16.mxu1 %vm751_vm1, %v4690_v63  ;;  %3598 = vmatprep.mubr.msk.bf16.mxu0 %vm751_vm1, %v4795_v51 }
  0x85   : > { %3447 = vmatmul.mubr.msk.bf16.gmra.mrb[12].mxu1 %vm751_vm1, %v4694_v3  ;;  %3599 = vmatmul.mubr.msk.bf16.gmra.mrb[28].mxu0 %vm751_vm1, %v4791_v44 }
  0x86   : > { %3450 = vmatprep.mubr.msk.bf16.mxu1 %vm751_vm1, %v4723_v52  ;;  %3604 = vmatprep.mubr.msk.bf16.mxu0 %vm751_vm1, %v4681_v48 }
  0x8d   : > { %3451 = vmatmul.mubr.msk.bf16.gmra.mrb[16].mxu1 %vm751_vm1, %v4732_v39  ;;  %3605 = vmatmul.mubr.msk.bf16.vlgmr.msra.gmra.mrb[0].mxu0 %vm751_vm1, %v4700_v46 }
  0x8e   : > { %3637 = vmatpush3.bf16.msra.mxu0 %v2394_v40  ;;  %3454 = vmatprep.mubr.msk.bf16.mxu1 %vm751_vm1, %v4740_v59 }
  0x8f   : > { %3608 = vmatprep.mubr.msk.bf16.mxu0 %vm751_vm1, %v4666_v56  ;;  %3971 = vmatprep.subr.msk.bf16.mxu0 %vm800_vm0, %v3225_v53 }
  0x95   : > { %3455 = vmatmul.mubr.msk.bf16.gmra.mrb[20].mxu1 %vm751_vm1, %v4746_v0  ;;  %3609 = vmatmul.mubr.msk.bf16.gmra.mrb[4].mxu0 %vm751_vm1, %v4673_v49 }
  0x96   : > { %3458 = vmatprep.mubr.msk.bf16.mxu1 %vm751_vm1, %v4750_v35  ;;  %3612 = vmatprep.mubr.msk.bf16.mxu0 %vm751_vm1, %v4690_v63 }
  0x9d   : > { %3459 = vmatmul.mubr.msk.bf16.gmra.mrb[24].mxu1 %vm751_vm1, %v4754_v45  ;;  %3613 = vmatmul.mubr.msk.bf16.gmra.mrb[8].mxu0 %vm751_vm1, %v4694_v3 }
  0x9e   : > { %3462 = vmatprep.mubr.msk.bf16.mxu1 %vm751_vm1, %v4760_v21  ;;  %3616 = vmatprep.mubr.msk.bf16.mxu0 %vm751_vm1, %v4723_v52 }
  0xa5   : > { %3463 = vmatmul.mubr.msk.bf16.gmra.mrb[28].mxu1 %vm751_vm1, %v4764_v62  ;;  %3617 = vmatmul.mubr.msk.bf16.gmra.mrb[12].mxu0 %vm751_vm1, %v4732_v39 }
  0xa6   : > { %3468 = vmatprep.mubr.msk.bf16.mxu1 %vm751_vm1, %v4850_v31  ;;  %3620 = vmatprep.mubr.msk.bf16.mxu0 %vm751_vm1, %v4740_v59 }
  0xad   : > { %3469 = vmatmul.mubr.msk.bf16.vlgmr.msra.gmra.mrb[0].mxu1 %vm751_vm1, %v4403_v27  ;;  %3621 = vmatmul.mubr.msk.bf16.gmra.mrb[16].mxu0 %vm751_vm1, %v4746_v0  ;;  %v5430_v27 = vld [vmem:[#allocation14_spill] sm:$0xff] }
  0xae   : > { %3501 = vmatpush3.bf16.msra.mxu1 %v1559_v24  ;;  %3472 = vmatprep.mubr.msk.bf16.mxu1 %vm751_vm1, %v4393_v17 }
  0xaf   : > { %3624 = vmatprep.mubr.msk.bf16.mxu0 %vm751_vm1, %v4750_v35  ;;  %3967 = vmatprep.subr.msk.bf16.mxu1 %vm800_vm0, %v3984_v13 }
  0xb5   : > { %3473 = vmatmul.mubr.msk.bf16.gmra.mrb[4].mxu1 %vm751_vm1, %v4466_v25  ;;  %3625 = vmatmul.mubr.msk.bf16.gmra.mrb[20].mxu0 %vm751_vm1, %v4754_v45 }
  0xb6   : > { %3476 = vmatprep.mubr.msk.bf16.mxu1 %vm751_vm1, %v5430_v27  ;;  %3628 = vmatprep.mubr.msk.bf16.mxu0 %vm751_vm1, %v4760_v21 }
  0xbd   : > { %3477 = vmatmul.mubr.msk.bf16.gmra.mrb[8].mxu1 %vm751_vm1, %v5431_v18  ;;  %3629 = vmatmul.mubr.msk.bf16.gmra.mrb[24].mxu0 %vm751_vm1, %v4764_v62 }
  0xbe   : > { %3480 = vmatprep.mubr.msk.bf16.mxu1 %vm751_vm1, %v5432_v36  ;;  %3632 = vmatprep.mubr.msk.bf16.mxu0 %vm751_vm1, %v1552_v9 }
  0xc5   : > { %3481 = vmatmul.mubr.msk.bf16.gmra.mrb[12].mxu1 %vm751_vm1, %v5433_v11  ;;  %3633 = vmatmul.mubr.bf16.gmra.mrb[28].mxu0 %v3994_v23  ;;  %v5437_v23 = vld [vmem:[#allocation7_spill] sm:$0xff] }
  0xc6   : > { %3484 = vmatprep.mubr.msk.bf16.mxu1 %vm751_vm1, %v4635_v58  ;;  %3638 = vmatprep.mubr.msk.bf16.mxu0 %vm751_vm1, %v5434_v47 }
  0xcd   : > { %3485 = vmatmul.mubr.msk.bf16.gmra.mrb[16].mxu1 %vm751_vm1, %v4645_v60  ;;  %3639 = vmatmul.mubr.msk.bf16.vlgmr.msra.gmra.mrb[0].mxu0 %vm751_vm1, %v5435_v14 }
  0xce   : > { %3671 = vmatpush3.bf16.msra.mxu0 %v2603_v5  ;;  %3488 = vmatprep.mubr.msk.bf16.mxu1 %vm751_vm1, %v4661_v28 }
  0xcf   : > { %3642 = vmatprep.mubr.msk.bf16.mxu0 %vm751_vm1, %v5436_v10 }
  0xd5   : > { %3489 = vmatmul.mubr.msk.bf16.gmra.mrb[20].mxu1 %vm751_vm1, %v4686_v1  ;;  %3643 = vmatmul.mubr.msk.bf16.gmra.mrb[4].mxu0 %vm751_vm1, %v5437_v23 }
  0xd6   : > { %3492 = vmatprep.mubr.msk.bf16.mxu1 %vm751_vm1, %v4702_v55  ;;  %3646 = vmatprep.mubr.msk.bf16.mxu0 %vm751_vm1, %v5438_v37 }
  0xdd   : > { %3493 = vmatmul.mubr.msk.bf16.gmra.mrb[24].mxu1 %vm751_vm1, %v4734_v29  ;;  %3647 = vmatmul.mubr.msk.bf16.gmra.mrb[8].mxu0 %vm751_vm1, %v5439_v32 }
  0xde   : > { %3496 = vmatprep.mubr.msk.bf16.mxu1 %vm751_vm1, %v4793_v61  ;;  %3650 = vmatprep.mubr.msk.bf16.mxu0 %vm751_vm1, %v5440_v33 }
  0xe5   : > { %3497 = vmatmul.mubr.msk.bf16.gmra.mrb[28].mxu1 %vm751_vm1, %v4795_v51  ;;  %3651 = vmatmul.mubr.msk.bf16.gmra.mrb[12].mxu0 %vm751_vm1, %v5441_v38 }
  0xe6   : > { %3502 = vmatprep.mubr.msk.bf16.mxu1 %vm751_vm1, %v4657_v57  ;;  %3654 = vmatprep.mubr.msk.bf16.mxu0 %vm751_vm1, %v5442_v15  ;;  %v5446_v57 = vld [vmem:[#allocation17_spill] sm:$0xff] }
  0xed   : > { %3503 = vmatmul.mubr.msk.bf16.vlgmr.msra.gmra.mrb[0].mxu1 %vm751_vm1, %v4681_v48  ;;  %3655 = vmatmul.mubr.msk.bf16.gmra.mrb[16].mxu0 %vm751_vm1, %v5443_v6  ;;  %v5447_v48 = vld [vmem:[#allocation20_spill] sm:$0xff] }
  0xee   : > { %3705 = vmatpush3.bf16.msra.mxu1 %v5444_v8  ;;  %3506 = vmatprep.mubr.msk.bf16.mxu1 %vm751_vm1, %v4700_v46 }
  0xef   : > { %3658 = vmatprep.mubr.msk.bf16.mxu0 %vm751_vm1, %v5445_v4 }
  0xf5   : > { %3507 = vmatmul.mubr.msk.bf16.gmra.mrb[4].mxu1 %vm751_vm1, %v4666_v56  ;;  %3659 = vmatmul.mubr.msk.bf16.gmra.mrb[20].mxu0 %vm751_vm1, %v5446_v57  ;;  %v5448_v56 = vld [vmem:[#allocation3_spill] sm:$0xff] }
  0xf6   : > { %3510 = vmatprep.mubr.msk.bf16.mxu1 %vm751_vm1, %v4673_v49  ;;  %3662 = vmatprep.mubr.msk.bf16.mxu0 %vm751_vm1, %v5447_v48 }
  0xfd   : > { %3511 = vmatmul.mubr.msk.bf16.gmra.mrb[8].mxu1 %vm751_vm1, %v4690_v63  ;;  %3663 = vmatmul.mubr.msk.bf16.gmra.mrb[24].mxu0 %vm751_vm1, %v4633_v16 }
  0xfe   : > { %3514 = vmatprep.mubr.msk.bf16.mxu1 %vm751_vm1, %v4694_v3  ;;  %3666 = vmatprep.mubr.msk.bf16.mxu0 %vm751_vm1, %v4809_v30 }
 0x105   : > { %3515 = vmatmul.mubr.msk.bf16.gmra.mrb[12].mxu1 %vm751_vm1, %v4723_v52  ;;  %3667 = vmatmul.mubr.msk.bf16.gmra.mrb[28].mxu0 %vm751_vm1, %v5448_v56 }
 0x106   : > { %3518 = vmatprep.mubr.msk.bf16.mxu1 %vm751_vm1, %v4732_v39  ;;  %3672 = vmatprep.mubr.msk.bf16.mxu0 %vm751_vm1, %v4393_v17 }
 0x10d   : > { %3519 = vmatmul.mubr.msk.bf16.gmra.mrb[16].mxu1 %vm751_vm1, %v4740_v59  ;;  %3673 = vmatmul.mubr.msk.bf16.vlgmr.msra.gmra.mrb[0].mxu0 %vm751_vm1, %v4466_v25 }
 0x10e   : > { %3522 = vmatprep.mubr.msk.bf16.mxu1 %vm751_vm1, %v4746_v0  ;;  %3676 = vmatprep.mubr.msk.bf16.mxu0 %vm751_vm1, %v5430_v27 }
 0x115   : > { %3523 = vmatmul.mubr.msk.bf16.gmra.mrb[20].mxu1 %vm751_vm1, %v4750_v35  ;;  %3677 = vmatmul.mubr.msk.bf16.gmra.mrb[4].mxu0 %vm751_vm1, %v5431_v18 }
 0x116   : > { %3526 = vmatprep.mubr.msk.bf16.mxu1 %vm751_vm1, %v4754_v45  ;;  %3680 = vmatprep.mubr.msk.bf16.mxu0 %vm751_vm1, %v5432_v36 }
 0x11d   : > { %3527 = vmatmul.mubr.msk.bf16.gmra.mrb[24].mxu1 %vm751_vm1, %v4760_v21  ;;  %3681 = vmatmul.mubr.msk.bf16.gmra.mrb[8].mxu0 %vm751_vm1, %v5433_v11 }
 0x11e   : > { %3530 = vmatprep.mubr.msk.bf16.mxu1 %vm751_vm1, %v4764_v62  ;;  %3684 = vmatprep.mubr.msk.bf16.mxu0 %vm751_vm1, %v4635_v58 }
 0x125   : > { %3531 = vmatmul.mubr.msk.bf16.gmra.mrb[28].mxu1 %vm751_vm1, %v1552_v9  ;;  %3685 = vmatmul.mubr.msk.bf16.gmra.mrb[12].mxu0 %vm751_vm1, %v4645_v60 }
 0x126   : > { %3552 = vmatprep.mubr.msk.bf16.mxu1 %vm751_vm1, %v5441_v38  ;;  %3688 = vmatprep.mubr.msk.bf16.mxu0 %vm751_vm1, %v4661_v28 }
 0x12d   : > { %3553 = vmatmul.mubr.msk.bf16.vlgmr.msra.gmra.mrb[16].mxu1 %vm751_vm1, %v5442_v15  ;;  %3689 = vmatmul.mubr.msk.bf16.gmra.mrb[16].mxu0 %vm751_vm1, %v4686_v1 }
 0x12e   : > { %3556 = vmatprep.mubr.msk.bf16.mxu1 %vm751_vm1, %v5443_v6  ;;  %3692 = vmatprep.mubr.msk.bf16.mxu0 %vm751_vm1, %v4702_v55 }
 0x135   : > { %3557 = vmatmul.mubr.msk.bf16.gmra.mrb[20].mxu1 %vm751_vm1, %v5445_v4  ;;  %3693 = vmatmul.mubr.msk.bf16.gmra.mrb[20].mxu0 %vm751_vm1, %v4734_v29 }
 0x136   : > { %3560 = vmatprep.mubr.msk.bf16.mxu1 %vm751_vm1, %v5446_v57  ;;  %3696 = vmatprep.mubr.msk.bf16.mxu0 %vm751_vm1, %v4793_v61 }
 0x13d   : > { %3561 = vmatmul.mubr.msk.bf16.gmra.mrb[24].mxu1 %vm751_vm1, %v5447_v48  ;;  %3697 = vmatmul.mubr.msk.bf16.gmra.mrb[24].mxu0 %vm751_vm1, %v4795_v51 }
 0x13e   : > { %3564 = vmatprep.mubr.msk.bf16.mxu1 %vm751_vm1, %v4633_v16  ;;  %3700 = vmatprep.mubr.msk.bf16.mxu0 %vm751_vm1, %v4791_v44 }
 0x145   : > { %3565 = vmatmul.mubr.msk.bf16.gmra.mrb[28].mxu1 %vm751_vm1, %v4809_v30  ;;  %3701 = vmatmul.mubr.msk.bf16.gmra.mrb[28].mxu0 %vm751_vm1, %v4850_v31 }
 0x1c0   : > { %v3504_v17 = vpop.f32.mrb[0].mxu1 }
 0x1c1   : > { %v1595_v25 = vpop.f32.mrb[1].mxu1 }
 0x1c2   : > { %v3505_v58 = vpop.f32.mrb[2].mxu1 }
 0x1c3   : > { %v1598_v60 = vpop.f32.mrb[3].mxu1 }
 0x1c8   : > { %v3508_v28 = vpop.f32.mrb[4].mxu1 }
 0x1c9   : > { %v1611_v49 = vpop.f32.mrb[5].mxu1 }
 0x1ca   : > { %v3509_v1 = vpop.f32.mrb[6].mxu1 }
 0x1cb   : > { %v1614_v63 = vpop.f32.mrb[7].mxu1 }
 0x1d0   : > { %v3512_v3 = vpop.f32.mrb[8].mxu1 }
 0x1d1   : > { %v1627_v46 = vpop.f32.mrb[9].mxu1 }
 0x1d2   : > { %v3513_v16 = vpop.f32.mrb[10].mxu1 }
 0x1d3   : > { %v1630_v55 = vpop.f32.mrb[11].mxu1 }
 0x1d8   : > { %v3516_v52 = vpop.f32.mrb[12].mxu1 }
 0x1d9   : > { %v1643_v39 = vpop.f32.mrb[13].mxu1 }
 0x1da   : > { %v3517_v29 = vpop.f32.mrb[14].mxu1 }
 0x1db   : > { %v1646_v59 = vpop.f32.mrb[15].mxu1 }
 0x1e0   : > { %v3674_v0 = vpop.f32.mrb[0].mxu0 }
 0x1e1   : > { %v5029_v35 = vadd.f32 %v3674_v0, %v3504_v17  ;;  %v2639_v45 = vpop.f32.mrb[1].mxu0 }
 0x1e2   : > { %v5031_v21 = vadd.f32 %v2639_v45, %v1595_v25  ;;  %v3675_v62 = vpop.f32.mrb[2].mxu0 }
 0x1e3   : > { %2800 = vst.msk [vmem:[%s5027_s10 + $0x10] sm:$0xff] %vm751_vm1, %v5029_v35  ;;  %v5036_v7 = vadd.f32 %v3675_v62, %v3505_v58  ;;  %v2642_v12 = vpop.f32.mrb[3].mxu0 }
 0x1e4   : > { %2798 = vst.msk [vmem:[%s5027_s10] sm:$0xff] %vm751_vm1, %v5031_v21  ;;  %v5041_v19 = vadd.f32 %v2642_v12, %v1598_v60 }
 0x1e5   : > { %2801 = vst.msk [vmem:[%s5027_s10 + $0x18] sm:$0xff] %vm751_vm1, %v5036_v7 }
 0x1e6   : > { %2799 = vst.msk [vmem:[%s5027_s10 + $0x8] sm:$0xff] %vm751_vm1, %v5041_v19 }
 0x1e8   : > { %v3678_v34 = vpop.f32.mrb[4].mxu0 }
 0x1e9   : > { %v5049_v20 = vadd.f32 %v3678_v34, %v3508_v28  ;;  %v2655_v42 = vpop.f32.mrb[5].mxu0 }
 0x1ea   : > { %v5051_v44 = vadd.f32 %v2655_v42, %v1611_v49  ;;  %v3679_v61 = vpop.f32.mrb[6].mxu0 }
 0x1eb   : > { %2804 = vst.msk [vmem:[%s5027_s10 + $0x30] sm:$0xff] %vm751_vm1, %v5049_v20  ;;  %v5056_v51 = vadd.f32 %v3679_v61, %v3509_v1  ;;  %v2658_v43 = vpop.f32.mrb[7].mxu0 }
 0x1ec   : > { %2802 = vst.msk [vmem:[%s5027_s10 + $0x20] sm:$0xff] %vm751_vm1, %v5051_v44  ;;  %v5061_v54 = vadd.f32 %v2658_v43, %v1614_v63 }
 0x1ed   : > { %2805 = vst.msk [vmem:[%s5027_s10 + $0x38] sm:$0xff] %vm751_vm1, %v5056_v51 }
 0x1ee   : > { %2803 = vst.msk [vmem:[%s5027_s10 + $0x28] sm:$0xff] %vm751_vm1, %v5061_v54 }
 0x1f0   : > { %v3682_v2 = vpop.f32.mrb[8].mxu0 }
 0x1f1   : > { %v5069_v50 = vadd.f32 %v3682_v2, %v3512_v3  ;;  %v2671_v26 = vpop.f32.mrb[9].mxu0 }
 0x1f2   : > { %v5071_v30 = vadd.f32 %v2671_v26, %v1627_v46  ;;  %v3683_v40 = vpop.f32.mrb[10].mxu0 }
 0x1f3   : > { %2808 = vst.msk [vmem:[%s5027_s10 + $0x50] sm:$0xff] %vm751_vm1, %v5069_v50  ;;  %v5076_v53 = vadd.f32 %v3683_v40, %v3513_v16  ;;  %v2674_v41 = vpop.f32.mrb[11].mxu0 }
 0x1f4   : > { %2806 = vst.msk [vmem:[%s5027_s10 + $0x40] sm:$0xff] %vm751_vm1, %v5071_v30  ;;  %v5081_v22 = vadd.f32 %v2674_v41, %v1630_v55 }
 0x1f5   : > { %2809 = vst.msk [vmem:[%s5027_s10 + $0x58] sm:$0xff] %vm751_vm1, %v5076_v53 }
 0x1f6   : > { %2807 = vst.msk [vmem:[%s5027_s10 + $0x48] sm:$0xff] %vm751_vm1, %v5081_v22 }
 0x1f8   : > { %v3686_v31 = vpop.f32.mrb[12].mxu0 }
 0x1f9   : > { %v5089_v24 = vadd.f32 %v3686_v31, %v3516_v52  ;;  %v2687_v13 = vpop.f32.mrb[13].mxu0 }
 0x1fa   : > { %v5091_v27 = vadd.f32 %v2687_v13, %v1643_v39  ;;  %v3687_v9 = vpop.f32.mrb[14].mxu0 }
 0x1fb   : > { %2812 = vst.msk [vmem:[%s5027_s10 + $0x70] sm:$0xff] %vm751_vm1, %v5089_v24  ;;  %v5096_v18 = vadd.f32 %v3687_v9, %v3517_v29  ;;  %v2690_v36 = vpop.f32.mrb[15].mxu0 }
 0x1fc   : > { %2810 = vst.msk [vmem:[%s5027_s10 + $0x60] sm:$0xff] %vm751_vm1, %v5091_v27  ;;  %v5101_v11 = vadd.f32 %v2690_v36, %v1646_v59 }
 0x1fd   : > { %2813 = vst.msk [vmem:[%s5027_s10 + $0x78] sm:$0xff] %vm751_vm1, %v5096_v18 }
 0x1fe   : > { %2811 = vst.msk [vmem:[%s5027_s10 + $0x68] sm:$0xff] %vm751_vm1, %v5101_v11 }
 0x200   : > { %v3554_v47 = vpop.f32.mrb[16].mxu1  ;;  %v3690_v5 = vpop.f32.mrb[16].mxu0 }
 0x201   : > { %v1871_v14 = vpop.f32.mrb[17].mxu1  ;;  %v5109_v10 = vadd.f32 %v3690_v5, %v3554_v47  ;;  %v2703_v23 = vpop.f32.mrb[17].mxu0  ;;  %v3995_v47 = vmov (!%p3242_p5), 0.0  }
 0x202   : > { %v3555_v37 = vpop.f32.mrb[18].mxu1  ;;  %v5111_v32 = vadd.f32 %v2703_v23, %v1871_v14  ;;  %v3691_v33 = vpop.f32.mrb[18].mxu0  ;;  %2835 = vst.msk [vmem:[%s5378_s5] sm:$0x1] (!%p3242_p5), %vm2834_vm6, %v3995_v47  ;;  %2836 = vst.msk [vmem:[%s5379_s6] sm:$0x1] (!%p3242_p5), %vm2834_vm6, %v3995_v47 }
 0x203   : > { %2816 = vst.msk [vmem:[%s5027_s10 + $0x90] sm:$0xff] %vm751_vm1, %v5109_v10  ;;  %v1874_v38 = vpop.f32.mrb[19].mxu1  ;;  %v5116_v15 = vadd.f32 %v3691_v33, %v3555_v37  ;;  %v2706_v6 = vpop.f32.mrb[19].mxu0 }
 0x204   : > { %2814 = vst.msk [vmem:[%s5027_s10 + $0x80] sm:$0xff] %vm751_vm1, %v5111_v32  ;;  %v5121_v8 = vadd.f32 %v2706_v6, %v1874_v38 }
 0x205   : > { %2817 = vst.msk [vmem:[%s5027_s10 + $0x98] sm:$0xff] %vm751_vm1, %v5116_v15 }
 0x206   : > { %2815 = vst.msk [vmem:[%s5027_s10 + $0x88] sm:$0xff] %vm751_vm1, %v5121_v8 }
 0x208   : > { %v3558_v4 = vpop.f32.mrb[20].mxu1  ;;  %v3694_v57 = vpop.f32.mrb[20].mxu0 }
 0x209   : > { %v1887_v48 = vpop.f32.mrb[21].mxu1  ;;  %v5129_v56 = vadd.f32 %v3694_v57, %v3558_v4  ;;  %v2719_v17 = vpop.f32.mrb[21].mxu0 }
 0x20a   : > { %v3559_v25 = vpop.f32.mrb[22].mxu1  ;;  %v5131_v58 = vadd.f32 %v2719_v17, %v1887_v48  ;;  %v3695_v60 = vpop.f32.mrb[22].mxu0 }
 0x20b   : > { %2820 = vst.msk [vmem:[%s5027_s10 + $0xb0] sm:$0xff] %vm751_vm1, %v5129_v56  ;;  %v1890_v28 = vpop.f32.mrb[23].mxu1  ;;  %v5136_v49 = vadd.f32 %v3695_v60, %v3559_v25  ;;  %v2722_v1 = vpop.f32.mrb[23].mxu0 }
 0x20c   : > { %2818 = vst.msk [vmem:[%s5027_s10 + $0xa0] sm:$0xff] %vm751_vm1, %v5131_v58  ;;  %v5141_v63 = vadd.f32 %v2722_v1, %v1890_v28 }
 0x20d   : > { %2821 = vst.msk [vmem:[%s5027_s10 + $0xb8] sm:$0xff] %vm751_vm1, %v5136_v49 }
 0x20e   : > { %2819 = vst.msk [vmem:[%s5027_s10 + $0xa8] sm:$0xff] %vm751_vm1, %v5141_v63 }
 0x210   : > { %v3562_v3 = vpop.f32.mrb[24].mxu1  ;;  %v3698_v46 = vpop.f32.mrb[24].mxu0 }
 0x211   : > { %v1903_v16 = vpop.f32.mrb[25].mxu1  ;;  %v5149_v55 = vadd.f32 %v3698_v46, %v3562_v3  ;;  %v2735_v52 = vpop.f32.mrb[25].mxu0 }
 0x212   : > { %v3563_v39 = vpop.f32.mrb[26].mxu1  ;;  %v5151_v29 = vadd.f32 %v2735_v52, %v1903_v16  ;;  %v3699_v59 = vpop.f32.mrb[26].mxu0 }
 0x213   : > { %2824 = vst.msk [vmem:[%s5027_s10 + $0xd0] sm:$0xff] %vm751_vm1, %v5149_v55  ;;  %v1906_v0 = vpop.f32.mrb[27].mxu1  ;;  %v5156_v45 = vadd.f32 %v3699_v59, %v3563_v39  ;;  %v2738_v62 = vpop.f32.mrb[27].mxu0 }
 0x214   : > { %2822 = vst.msk [vmem:[%s5027_s10 + $0xc0] sm:$0xff] %vm751_vm1, %v5151_v29  ;;  %v5161_v12 = vadd.f32 %v2738_v62, %v1906_v0 }
 0x215   : > { %2825 = vst.msk [vmem:[%s5027_s10 + $0xd8] sm:$0xff] %vm751_vm1, %v5156_v45 }
 0x216   : > { %2823 = vst.msk [vmem:[%s5027_s10 + $0xc8] sm:$0xff] %vm751_vm1, %v5161_v12 }
 0x218   : > { %v3566_v34 = vpop.f32.mrb[28].mxu1  ;;  %v3702_v42 = vpop.f32.mrb[28].mxu0  ;;  %2833 = sbr.rel (%p3242_p5) target bundleno = 543 (0x21f), region = 40 }
 0x219   : > { %v1919_v61 = vpop.f32.mrb[29].mxu1  ;;  %v5169_v43 = vadd.f32 %v3702_v42, %v3566_v34  ;;  %v2751_v2 = vpop.f32.mrb[29].mxu0 }
 0x21a   : > { %v3567_v26 = vpop.f32.mrb[30].mxu1  ;;  %v5171_v40 = vadd.f32 %v2751_v2, %v1919_v61  ;;  %v3703_v41 = vpop.f32.mrb[30].mxu0 }
 0x21b   : > { %2828 = vst.msk [vmem:[%s5027_s10 + $0xf0] sm:$0xff] %vm751_vm1, %v5169_v43  ;;  %v1922_v31 = vpop.f32.mrb[31].mxu1  ;;  %v5176_v13 = vadd.f32 %v3703_v41, %v3567_v26  ;;  %v2754_v9 = vpop.f32.mrb[31].mxu0 }
 0x21c   : > { %2826 = vst.msk [vmem:[%s5027_s10 + $0xe0] sm:$0xff] %vm751_vm1, %v5171_v40  ;;  %v5181_v36 = vadd.f32 %v2754_v9, %v1922_v31 }
 0x21d   : > { %2829 = vst.msk [vmem:[%s5027_s10 + $0xf8] sm:$0xff] %vm751_vm1, %v5176_v13 }
 0x21e   : > { %2827 = vst.msk [vmem:[%s5027_s10 + $0xe8] sm:$0xff] %vm751_vm1, %v5181_v36 }
 0x21f PF: > { %v2838_v5 = vsel %vm751_vm1, %v5031_v21, 0.0  ;;  %v2839_v14 = vsel %vm751_vm1, %v5041_v19, 0.0  ;;  %v2841_v23 = vsel %vm751_vm1, %v5029_v35, 0.0  ;;  %v2843_v33 = vsel %vm751_vm1, %v5036_v7, 0.0 }
 0x220   : > { %v2840_v37 = vadd.f32 %v2839_v14, %v2838_v5  ;;  %v2845_v6 = vsel %vm751_vm1, %v5051_v44, 0.0  ;;  %v2847_v57 = vsel %vm751_vm1, %v5061_v54, 0.0  ;;  %v2849_v17 = vsel %vm751_vm1, %v5049_v20, 0.0 }
 0x221   : > { %v2851_v60 = vsel %vm751_vm1, %v5056_v51, 0.0  ;;  %v2853_v1 = vsel %vm751_vm1, %v5071_v30, 0.0  ;;  %v2855_v46 = vsel %vm751_vm1, %v5081_v22, 0.0  ;;  %v2911_v16 = vmul.f32 %v5031_v21, %v5031_v21 }
 0x222   : > { %v2842_v38 = vadd.f32 %v2841_v23, %v2840_v37  ;;  %v2912_v52 = vmul.f32 %v5041_v19, %v5041_v19  ;;  %v2913_v59 = vmul.f32 %v5029_v35, %v5029_v35  ;;  %v2857_v0 = vsel %vm751_vm1, %v5069_v50, 0.0 }
 0x223   : > { %v2914_v62 = vmul.f32 %v5036_v7, %v5036_v7  ;;  %v2859_v42 = vsel %vm751_vm1, %v5076_v53, 0.0  ;;  %v2915_v21 = vmul.f32 %v5051_v44, %v5051_v44  ;;  %v2943_v61 = vsel %vm751_vm1, %v2911_v16, 0.0 }
 0x224   : > { %v2844_v4 = vadd.f32 %v2843_v33, %v2842_v38  ;;  %v2944_v19 = vsel %vm751_vm1, %v2912_v52, 0.0  ;;  %v2946_v35 = vsel %vm751_vm1, %v2913_v59, 0.0  ;;  %v2861_v41 = vsel %vm751_vm1, %v5091_v27, 0.0 }
 0x225   : > { %v2945_v26 = vadd.f32 %v2944_v19, %v2943_v61  ;;  %v2916_v7 = vmul.f32 %v5061_v54, %v5061_v54  ;;  %v2948_v31 = vsel %vm751_vm1, %v2914_v62, 0.0  ;;  %v2863_v44 = vsel %vm751_vm1, %v5101_v11, 0.0 }
 0x226   : > { %v2846_v48 = vadd.f32 %v2845_v6, %v2844_v4  ;;  %v2917_v5 = vmul.f32 %v5049_v20, %v5049_v20  ;;  %v2950_v14 = vsel %vm751_vm1, %v2915_v21, 0.0  ;;  %v2865_v33 = vsel %vm751_vm1, %v5089_v24, 0.0 }
 0x227   : > { %v2947_v47 = vadd.f32 %v2946_v35, %v2945_v26  ;;  %v2918_v54 = vmul.f32 %v5056_v51, %v5056_v51  ;;  %v2952_v38 = vsel %vm751_vm1, %v2916_v7, 0.0  ;;  %v2919_v20 = vmul.f32 %v5071_v30, %v5071_v30 }
 0x228   : > { %v2848_v25 = vadd.f32 %v2847_v57, %v2846_v48  ;;  %v2867_v57 = vsel %vm751_vm1, %v5096_v18, 0.0  ;;  %v2954_v48 = vsel %vm751_vm1, %v2917_v5, 0.0  ;;  %v2920_v51 = vmul.f32 %v5081_v22, %v5081_v22 }
 0x229   : > { %v2949_v37 = vadd.f32 %v2948_v31, %v2947_v47  ;;  %v2921_v30 = vmul.f32 %v5069_v50, %v5069_v50  ;;  %v2958_v16 = vsel %vm751_vm1, %v2919_v20, 0.0  ;;  %v2873_v59 = vsel %vm751_vm1, %v5109_v10, 0.0 }
 0x22a   : > { %v2850_v28 = vadd.f32 %v2849_v17, %v2848_v25  ;;  %v2922_v22 = vmul.f32 %v5076_v53, %v5076_v53  ;;  %v2923_v50 = vmul.f32 %v5091_v27, %v5091_v27  ;;  %v2924_v53 = vmul.f32 %v5101_v11, %v5101_v11 }
 0x22b   : > { %v2951_v4 = vadd.f32 %v2950_v14, %v2949_v37  ;;  %v2962_v21 = vsel %vm751_vm1, %v2921_v30, 0.0  ;;  %v2879_v7 = vsel %vm751_vm1, %v5141_v63, 0.0  ;;  %v2925_v27 = vmul.f32 %v5089_v24, %v5089_v24 }
 0x22c   : > { %v2852_v3 = vadd.f32 %v2851_v60, %v2850_v28  ;;  %v2869_v60 = vsel %vm751_vm1, %v5111_v32, 0.0  ;;  %v2956_v28 = vsel %vm751_vm1, %v2918_v54, 0.0  ;;  %v2964_v26 = vsel %vm751_vm1, %v2922_v22, 0.0 }
 0x22d   : > { %v2953_v25 = vadd.f32 %v2952_v38, %v2951_v4  ;;  %v2966_v31 = vsel %vm751_vm1, %v2923_v50, 0.0  ;;  %v2926_v11 = vmul.f32 %v5096_v18, %v5096_v18  ;;  %v2968_v5 = vsel %vm751_vm1, %v2924_v53, 0.0 }
 0x22e   : > { %v2854_v39 = vadd.f32 %v2853_v1, %v2852_v3  ;;  %v2883_v37 = vsel %vm751_vm1, %v5136_v49, 0.0  ;;  %v2927_v24 = vmul.f32 %v5111_v32, %v5111_v32  ;;  %v2928_v18 = vmul.f32 %v5121_v8, %v5121_v8 }
 0x22f   : > { %v2955_v3 = vadd.f32 %v2954_v48, %v2953_v25  ;;  %v2972_v4 = vsel %vm751_vm1, %v2926_v11, 0.0  ;;  %v2887_v48 = vsel %vm751_vm1, %v5161_v12, 0.0  ;;  %v2929_v32 = vmul.f32 %v5109_v10, %v5109_v10 }
 0x230   : > { %v2856_v34 = vadd.f32 %v2855_v46, %v2854_v39  ;;  %v2871_v46 = vsel %vm751_vm1, %v5121_v8, 0.0  ;;  %v2930_v8 = vmul.f32 %v5116_v15, %v5116_v15  ;;  %v2931_v10 = vmul.f32 %v5131_v58, %v5131_v58 }
 0x231   : > { %v2957_v39 = vadd.f32 %v2956_v28, %v2955_v3  ;;  %v2976_v28 = vsel %vm751_vm1, %v2928_v18, 0.0  ;;  %v2978_v30 = vsel %vm751_vm1, %v2929_v32, 0.0  ;;  %v2899_v53 = vsel %vm751_vm1, %v5176_v13, 0.0 }
 0x232   : > { %v2858_v2 = vadd.f32 %v2857_v0, %v2856_v34  ;;  %v2960_v0 = vsel %vm751_vm1, %v2920_v51, 0.0  ;;  %v2889_v51 = vsel %vm751_vm1, %v5149_v55, 0.0  ;;  %vm2908_vm7 = vcmask 24576  }
 0x233   : > { %v2959_v34 = vadd.f32 %v2958_v16, %v2957_v39  ;;  %v2893_v39 = vsel %vm751_vm1, %v5171_v40, 0.0 }
 0x234   : > { %v2860_v9 = vadd.f32 %v2859_v42, %v2858_v2  ;;  %v2875_v42 = vsel %vm751_vm1, %v5116_v15, 0.0  ;;  %v2877_v2 = vsel %vm751_vm1, %v5131_v58, 0.0  ;;  %v2932_v15 = vmul.f32 %v5141_v63, %v5141_v63 }
 0x235   : > { %v2961_v19 = vadd.f32 %v2960_v0, %v2959_v34  ;;  %v2933_v58 = vmul.f32 %v5129_v56, %v5129_v56  ;;  %v2982_v34 = vsel %vm751_vm1, %v2931_v10, 0.0  ;;  %v2934_v63 = vmul.f32 %v5136_v49, %v5136_v49  ;;  %v2910_v10 = vld [vmem:[%s5379_s6] sm:$0x1] }
 0x236   : > { %v2862_v23 = vadd.f32 %v2861_v41, %v2860_v9 }
 0x237   : > { %v2963_v41 = vadd.f32 %v2962_v21, %v2961_v19  ;;  %v2897_v21 = vsel %vm751_vm1, %v5169_v43, 0.0 }
 0x238   : > { %v2864_v6 = vadd.f32 %v2863_v44, %v2862_v23  ;;  %v2881_v44 = vsel %vm751_vm1, %v5129_v56, 0.0  ;;  %v2935_v56 = vmul.f32 %v5151_v29, %v5151_v29 }
 0x239   : > { %v2965_v47 = vadd.f32 %v2964_v26, %v2963_v41  ;;  %v2986_v26 = vsel %vm751_vm1, %v2933_v58, 0.0 }
 0x23a   : > { %v2866_v17 = vadd.f32 %v2865_v33, %v2864_v6  ;;  %v2970_v33 = vsel %vm751_vm1, %v2925_v27, 0.0  ;;  %v2885_v6 = vsel %vm751_vm1, %v5151_v29, 0.0  ;;  %v2988_v27 = vsel %vm751_vm1, %v2934_v63, 0.0 }
 0x23b   : > { %v2967_v23 = vadd.f32 %v2966_v31, %v2965_v47  ;;  %v2990_v47 = vsel %vm751_vm1, %v2935_v56, 0.0  ;;  %v2938_v29 = vmul.f32 %v5156_v45, %v5156_v45 }
 0x23c   : > { %v2868_v1 = vadd.f32 %v2867_v57, %v2866_v17  ;;  %v2974_v17 = vsel %vm751_vm1, %v2927_v24, 0.0 }
 0x23d   : > { %v2969_v38 = vadd.f32 %v2968_v5, %v2967_v23 }
 0x23e   : > { %v2870_v52 = vadd.f32 %v2869_v60, %v2868_v1 }
 0x23f   : > { %v2971_v20 = vadd.f32 %v2970_v33, %v2969_v38 }
 0x240   : > { %v2872_v62 = vadd.f32 %v2871_v46, %v2870_v52  ;;  %v2891_v46 = vsel %vm751_vm1, %v5156_v45, 0.0  ;;  %v2941_v45 = vmul.f32 %v5169_v43, %v5169_v43 }
 0x241   : > { %v2973_v60 = vadd.f32 %v2972_v4, %v2971_v20  ;;  %v2942_v20 = vmul.f32 %v5176_v13, %v5176_v13 }
 0x242   : > { %v2874_v61 = vadd.f32 %v2873_v59, %v2872_v62  ;;  %v2980_v59 = vsel %vm751_vm1, %v2930_v8, 0.0  ;;  %v2895_v62 = vsel %vm751_vm1, %v5181_v36, 0.0 }
 0x243   : > { %v2975_v3 = vadd.f32 %v2974_v17, %v2973_v60  ;;  %v3002_v17 = vsel %vm751_vm1, %v2941_v45, 0.0  ;;  %v3004_v60 = vsel %vm751_vm1, %v2942_v20, 0.0 }
 0x244   : > { %v2876_v35 = vadd.f32 %v2875_v42, %v2874_v61  ;;  %v2984_v61 = vsel %vm751_vm1, %v2932_v15, 0.0 }
 0x245   : > { %v2977_v52 = vadd.f32 %v2976_v28, %v2975_v3 }
 0x246   : > { %v2878_v9 = vadd.f32 %v2877_v2, %v2876_v35 }
 0x247   : > { %v2979_v0 = vadd.f32 %v2978_v30, %v2977_v52 }
 0x248   : > { %v2880_v14 = vadd.f32 %v2879_v7, %v2878_v9  ;;  %v2936_v7 = vmul.f32 %v5161_v12, %v5161_v12  ;;  %v2937_v9 = vmul.f32 %v5149_v55, %v5149_v55  ;;  %v2939_v12 = vmul.f32 %v5171_v40, %v5171_v40  ;;  %v2837_v40 = vld [vmem:[%s5378_s5] sm:$0x1] }
 0x249   : > { %v2981_v50 = vadd.f32 %v2980_v59, %v2979_v0  ;;  %v2940_v55 = vmul.f32 %v5181_v36, %v5181_v36 }
 0x24a   : > { %v2882_v54 = vadd.f32 %v2881_v44, %v2880_v14  ;;  %v2992_v5 = vsel %vm751_vm1, %v2936_v7, 0.0  ;;  %v2998_v18 = vsel %vm751_vm1, %v2939_v12, 0.0 }
 0x24b   : > { %v2983_v2 = vadd.f32 %v2982_v34, %v2981_v50  ;;  %v3000_v36 = vsel %vm751_vm1, %v2940_v55, 0.0 }
 0x24c   : > { %v2884_v57 = vadd.f32 %v2883_v37, %v2882_v54  ;;  %v2994_v37 = vsel %vm751_vm1, %v2937_v9, 0.0  ;;  %v2996_v54 = vsel %vm751_vm1, %v2938_v29, 0.0 }
 0x24d   : > { %v2985_v41 = vadd.f32 %v2984_v61, %v2983_v2 }
 0x24e   : > { %v2886_v25 = vadd.f32 %v2885_v6, %v2884_v57 }
 0x24f   : > { %v2987_v31 = vadd.f32 %v2986_v26, %v2985_v41 }
 0x250   : > { %v2888_v1 = vadd.f32 %v2887_v48, %v2886_v25 }
 0x251   : > { %v2989_v11 = vadd.f32 %v2988_v27, %v2987_v31 }
 0x252   : > { %v2890_v16 = vadd.f32 %v2889_v51, %v2888_v1 }
 0x253   : > { %v2991_v23 = vadd.f32 %v2990_v47, %v2989_v11 }
 0x254   : > { %v2892_v22 = vadd.f32 %v2891_v46, %v2890_v16 }
 0x255   : > { %v2993_v33 = vadd.f32 %v2992_v5, %v2991_v23 }
 0x256   : > { %v2894_v42 = vadd.f32 %v2893_v39, %v2892_v22 }
 0x257   : > { %v2995_v6 = vadd.f32 %v2994_v37, %v2993_v33 }
 0x258   : > { %v2896_v19 = vadd.f32 %v2895_v62, %v2894_v42 }
 0x259   : > { %v2997_v57 = vadd.f32 %v2996_v54, %v2995_v6 }
 0x25a   : > { %v2898_v35 = vadd.f32 %v2897_v21, %v2896_v19 }
 0x25b   : > { %v2999_v32 = vadd.f32 %v2998_v18, %v2997_v57 }
 0x25c   : > { %v2900_v49 = vadd.f32 %v2899_v53, %v2898_v35 }
 0x25d   : > { %v3001_v43 = vadd.f32 %v3000_v36, %v2999_v32 }
 0x25e   : > { %v2901_v44 = vrot.slane %v2900_v49, 4 }
 0x25f   : > { %v3003_v51 = vadd.f32 %v3002_v17, %v3001_v43 }
 0x260   : > { %v2902_v14 = vadd.f32 %v2901_v44, %v2900_v49 }
 0x261   : > { %v3005_v8 = vadd.f32 %v3004_v60, %v3003_v51 }
 0x262   : > { %v2903_v24 = vrot.slane %v2902_v14, 2 }
 0x263   : > { %v3006_v28 = vrot.slane %v3005_v8, 4 }
 0x264   : > { %v2904_v38 = vadd.f32 %v2903_v24, %v2902_v14 }
 0x265   : > { %v3007_v13 = vadd.f32 %v3006_v28, %v3005_v8 }
 0x266   : > { %v2905_v4 = vrot.slane %v2904_v38, 1 }
 0x267   : > { %v3008_v1 = vrot.slane %v3007_v13, 2 }
 0x268   : > { %v2906_v48 = vadd.f32 %v2905_v4, %v2904_v38 }
 0x269   : > { %v3009_v3 = vadd.f32 %v3008_v1, %v3007_v13 }
 0x26a   : > { %v2907_v25 = vadd.f32 %v2906_v48, %v2837_v40 }
 0x26b   : > { %v3010_v46 = vrot.slane %v3009_v3, 1 }
 0x26c   : > { %2909 = vst.msk [vmem:[%s5378_s5] sm:$0x1] %vm2908_vm7, %v2907_v25 }
 0x26d   : > { %v3011_v30 = vadd.f32 %v3010_v46, %v3009_v3 }
 0x26f   : > { %v3012_v16 = vadd.f32 %v3011_v30, %v2910_v10 }
 0x271   : > { %3013 = vst.msk [vmem:[%s5379_s6] sm:$0x1] %vm2908_vm7, %v3012_v16 }
 0x272 PF: > { %s17_s21 = sadd.s32 1, %s3991_s21  }
 0x273   : > { %p14_p6 = scmp.ge.s32.totalorder %s17_s21, 4  }
 0x275   :  { %16 = sbr.rel (!%p14_p6) target bundleno = 1 (0x1), region = 94 }

</bundles_post_ra>
